<compile_context>
chip_gen: v6e
topology: v6e:2x2x1
jax: 0.10.0
libtpu: 0.0.40
codegen_flags: <defaults>
</compile_context>

<pallas_src>
import jax
import jax.numpy as jnp
from jax.experimental import pallas as pl
from jax.experimental.pallas import tpu as pltpu


# ----------------------------------------------------------------------------
# VMEM budget per TPU generation
# ----------------------------------------------------------------------------
def _pick_vmem_limit():
    try:
        kind = jax.devices()[0].device_kind.lower()
    except Exception:
        return None
    if "v7" in kind:
        return 48 * 1024 * 1024       # 64 MiB physical VMEM -> leave headroom
    if "v5" in kind or "v6" in kind:
        return 96 * 1024 * 1024       # 128 MiB physical VMEM -> deeper buffering OK
    return None                        # unknown chip: keep the compiler default


# ----------------------------------------------------------------------------
# Decoder stack: ONE pallas_call, grid=(L,).  Per-layer weights are selected by
# layer-indexed BlockSpecs (layer l+1 weights prefetch while l computes).
# ----------------------------------------------------------------------------
def make_decoder_stack_call(B, S, H, F, L, num_head, vmem_limit=None):
    nh = num_head
    d = H // nh
    M = B * S
    inv_sqrt_d = 1.0 / (d ** 0.5)
    bf16 = jnp.bfloat16

    def kernel(x_ref, enc_ref, wqv_ref, bqv_ref, wk_ref, bk_ref, wo_ref, bo_ref,
               lnw_ref, lnb_ref, w1_ref, b1_ref, w2_ref, b2_ref,
               o_ref, head_buf):
        l = pl.program_id(0)

        @pl.when(l == 0)
        def _():
            o_ref[...] = x_ref[...]

        x = o_ref[...]                       # (M, H) f32, resident across layers
        enc = enc_ref[...]                   # (M, H) f32

        def layernorm(v, i):
            mu = jnp.mean(v, axis=-1, keepdims=True)
            var = jnp.mean((v - mu) ** 2, axis=-1, keepdims=True)
            return (v - mu) * jax.lax.rsqrt(var + 1e-5) * lnw_ref[0, i] + lnb_ref[0, i]

        def add_norm(v, i):
            # Add_Norm: v + LayerNorm(v); dropout is identity in eval mode.
            return v + layernorm(v, i)

        def softmax_last(v):
            m = jnp.max(v, axis=-1, keepdims=True)
            e = jnp.exp(v - m)
            s = jnp.sum(e, axis=-1, keepdims=True)
            r = pl.reciprocal(s, approx=True)       # EUP slot
            r = r * (2.0 - s * r)                   # one Newton step -> f32 accuracy
            return e * r

        def split_heads(t2d):
            # (M, H) -> (B*nh, S, d) via static row/lane slices (no matmul work).
            parts = []
            for b in range(B):
                rows = t2d[b * S:(b + 1) * S, :]
                for h in range(nh):
                    parts.append(rows[:, h * d:(h + 1) * d])
            return jnp.stack(parts, axis=0)

        def mulatt(K_in, QV_in, m):
            # Fused lane-dense projections (bf16 MXU inputs, f32 accumulation).
            qv = jnp.dot(QV_in.astype(bf16), wqv_ref[0, m],
                         preferred_element_type=jnp.float32) + bqv_ref[0, m]   # (M,2H)
            k2d = jnp.dot(K_in.astype(bf16), wk_ref[0, m],
                          preferred_element_type=jnp.float32) + bk_ref[0, m]   # (M,H)
            q2d = qv[:, :H] * inv_sqrt_d          # 1/sqrt(d) folded into Q
            v2d = qv[:, H:]

            qh = split_heads(q2d)
            kh = split_heads(k2d)
            vh = split_heads(v2d)
            score = jnp.einsum('nqd,nkd->nqk', qh, kh,
                               preferred_element_type=jnp.float32)   # (B*nh, S, S)
            s2 = jnp.einsum('nqk,nkd->nqd', score, vh,
                            preferred_element_type=jnp.float32)      # (B*nh, S, d)
            # DotAtt: softmax applied to (score @ V) along its per-head last dim.
            att = softmax_last(s2)

            # Reassemble concat-head (M, H) layout in VMEM scratch, then ONE
            # full-width output-projection matmul (no (nh,S,H) intermediate, no
            # cross-sublane head reduction).
            for b in range(B):
                for h in range(nh):
                    head_buf[b * S:(b + 1) * S, h * d:(h + 1) * d] = att[b * nh + h]
            att2d = head_buf[...]
            return (jnp.dot(att2d.astype(bf16), wo_ref[0, m],
                            preferred_element_type=jnp.float32) + bo_ref[0, m])

        # state[2][i] is None in the reference (and never updated) -> kv = x
        x1 = mulatt(x, x, 0)                        # attention1: K=x, Q=V=x
        y = add_norm(x1, 0) + add_norm(x, 1)
        y1 = mulatt(y, enc, 1)                      # attention2: K=y, Q=V=enc
        z = add_norm(y, 2) + add_norm(y1, 3)

        # Position-wise FFN (bf16 MXU inputs, f32 accumulate).
        # TODO(synk): for large F, tile the F dim (inner loop over w1/w2 column blocks)
        #             to bound the (M, F) intermediate and per-layer weight VMEM.
        hid = jnp.maximum(
            jnp.dot(z.astype(bf16), w1_ref[0],
                    preferred_element_type=jnp.float32) + b1_ref[0], 0.0)
        ffn = jnp.dot(hid.astype(bf16), w2_ref[0],
                      preferred_element_type=jnp.float32) + b2_ref[0]
        o_ref[...] = add_norm(z, 4) + add_norm(ffn, 5)

    # TODO(synk): on v7x (2 TensorCores) add a 2-way "parallel" leading grid axis that
    #             splits the B*S rows across cores (weights then stream 2x).
    return pl.pallas_call(
        kernel,
        out_shape=jax.ShapeDtypeStruct((M, H), jnp.float32),
        grid=(L,),
        in_specs=[
            pl.BlockSpec((M, H), lambda l: (0, 0)),                  # x (read at l==0)
            pl.BlockSpec((M, H), lambda l: (0, 0)),                  # enc_outputs
            pl.BlockSpec((1, 2, H, 2 * H), lambda l: (l, 0, 0, 0)),  # [Wq|Wv]  bf16
            pl.BlockSpec((1, 2, 1, 2 * H), lambda l: (l, 0, 0, 0)),  # [bq|bv]
            pl.BlockSpec((1, 2, H, H), lambda l: (l, 0, 0, 0)),      # Wk       bf16
            pl.BlockSpec((1, 2, 1, H), lambda l: (l, 0, 0, 0)),      # bk
            pl.BlockSpec((1, 2, H, H), lambda l: (l, 0, 0, 0)),      # Wo       bf16
            pl.BlockSpec((1, 2, 1, H), lambda l: (l, 0, 0, 0)),      # bo
            pl.BlockSpec((1, 6, H), lambda l: (l, 0, 0)),            # layernorm w
            pl.BlockSpec((1, 6, H), lambda l: (l, 0, 0)),            # layernorm b
            pl.BlockSpec((1, H, F), lambda l: (l, 0, 0)),            # ffn w1   bf16
            pl.BlockSpec((1, 1, F), lambda l: (l, 0, 0)),            # ffn b1
            pl.BlockSpec((1, F, H), lambda l: (l, 0, 0)),            # ffn w2   bf16
            pl.BlockSpec((1, 1, H), lambda l: (l, 0, 0)),            # ffn b2
        ],
        # Same output block every layer -> activation stays resident in VMEM across the
        # whole stack and is written back to HBM once after the last layer.
        out_specs=pl.BlockSpec((M, H), lambda l: (0, 0)),
        scratch_shapes=[pltpu.VMEM((M, H), jnp.float32)],    # concat-head buffer
        compiler_params=pltpu.CompilerParams(
            dimension_semantics=("arbitrary",),
            vmem_limit_bytes=vmem_limit),
    )


# ----------------------------------------------------------------------------
# Final dense (vocab) projection: vocab-tiled, lane-dense output, bf16 weights.
# ----------------------------------------------------------------------------
def _pick_vocab_tile(vpad, max_tile=2048):
    # vpad is a multiple of 128; largest lane-dense tile (<= max_tile) dividing vpad.
    t = max(min(vpad, max_tile) // 128 * 128, 128)
    while vpad % t:
        t -= 128
    return t


def make_dense_call(R, H, Vpad, Tv, vmem_limit=None):
    def kernel(x_ref, w_ref, b_ref, o_ref):
        o_ref[...] = (jnp.dot(x_ref[...].astype(jnp.bfloat16), w_ref[...],
                              preferred_element_type=jnp.float32)
                      + b_ref[...]).astype(o_ref.dtype)

    n_steps = Vpad // Tv
    if n_steps >= 3:
        # Pure weight-streaming call: 3-deep buffering on the vocab weight hides DMA.
        w_spec = pl.BlockSpec((H, Tv), lambda v: (0, v), pipeline_mode=pl.Buffered(3))
    else:
        w_spec = pl.BlockSpec((H, Tv), lambda v: (0, v))

    return pl.pallas_call(
        kernel,
        out_shape=jax.ShapeDtypeStruct((R, Vpad), jnp.float32),
        grid=(n_steps,),
        in_specs=[
            pl.BlockSpec((R, H), lambda v: (0, 0)),    # activations stay resident
            w_spec,                                    # vocab-tiled bf16 weight
            pl.BlockSpec((1, Tv), lambda v: (0, v)),
        ],
        out_specs=pl.BlockSpec((R, Tv), lambda v: (0, v)),
        compiler_params=pltpu.CompilerParams(
            dimension_semantics=("parallel",),
            vmem_limit_bytes=vmem_limit),
    )


# ----------------------------------------------------------------------------
# Host-side weight preparation (layer stacking, (in,out) layout, bf16 storage)
# ----------------------------------------------------------------------------
def prepare_kernel_params(params, num_head):
    wdt = jnp.bfloat16
    wqv, bqv, wk, bk, wo, bo, lnw, lnb, w1, b1, w2, b2 = ([] for _ in range(12))
    for lp in params["layers"]:
        attw, attb = lp["attw"], lp["attb"]   # (8,H,H)/(8,H): [q1,k1,v1,o1,q2,k2,v2,o2]
        wqv_l, bqv_l, wk_l, bk_l, wo_l, bo_l = [], [], [], [], [], []
        for m in range(2):
            Wq = attw[m * 4 + 0].T                         # (in H, out H), head-major cols
            Wk = attw[m * 4 + 1].T
            Wv = attw[m * 4 + 2].T
            Wo = attw[m * 4 + 3].T                         # (in H, out H), concat-head rows
            wqv_l.append(jnp.concatenate([Wq, Wv], axis=1))                    # (H, 2H)
            bqv_l.append(jnp.concatenate([attb[m * 4 + 0],
                                          attb[m * 4 + 2]]).reshape(1, -1))    # (1, 2H)
            wk_l.append(Wk)
            bk_l.append(attb[m * 4 + 1].reshape(1, -1))
            wo_l.append(Wo)
            bo_l.append(attb[m * 4 + 3].reshape(1, -1))
        wqv.append(jnp.stack(wqv_l)); bqv.append(jnp.stack(bqv_l))
        wk.append(jnp.stack(wk_l));   bk.append(jnp.stack(bk_l))
        wo.append(jnp.stack(wo_l));   bo.append(jnp.stack(bo_l))
        lnw.append(lp["lnw"]);        lnb.append(lp["lnb"])
        w1.append(lp["w1"].T);        b1.append(lp["b1"].reshape(1, -1))
        w2.append(lp["w2"].T);        b2.append(lp["b2"].reshape(1, -1))

    stack = lambda xs: jnp.stack(xs, axis=0)
    return dict(
        wqv=stack(wqv).astype(wdt), bqv=stack(bqv),
        wk=stack(wk).astype(wdt),   bk=stack(bk),
        wo=stack(wo).astype(wdt),   bo=stack(bo),
        lnw=stack(lnw), lnb=stack(lnb),
        w1=stack(w1).astype(wdt), b1=stack(b1),
        w2=stack(w2).astype(wdt), b2=stack(b2),
        dense_w=params["dense_w"].T.astype(wdt),       # (H, Vcap) bf16
        dense_b=params["dense_b"].reshape(1, -1),      # (1, Vcap) f32
    )


# ----------------------------------------------------------------------------
# Glue (embedding, positional encoding, kernel calls)
# ----------------------------------------------------------------------------
def positional_encoding(max_len, H):
    pos = jnp.arange(max_len, dtype=jnp.float32).reshape(-1, 1)
    i = jnp.arange(0, H, 2, dtype=jnp.float32)
    angle = pos / jnp.power(10000.0, i / H)
    pe = jnp.zeros((1, max_len, H), jnp.float32)
    pe = pe.at[:, :, 0::2].set(jnp.sin(angle))
    pe = pe.at[:, :, 1::2].set(jnp.cos(angle))
    return pe


def transformer_decoder_forward(token_ids, enc_outputs, params, num_head, max_len):
    B, S = token_ids.shape
    H = params["embedding"].shape[1]
    F = params["layers"][0]["w1"].shape[0]
    L = len(params["layers"])
    Vcap = params["dense_w"].shape[0]
    M = B * S

    kp = prepare_kernel_params(params, num_head)
    vmem_limit = _pick_vmem_limit()

    x = params["embedding"][token_ids] * (H ** 0.5)
    x = x + positional_encoding(max_len, H)[:, :S, :]
    x2d = x.reshape(M, H).astype(jnp.float32)
    enc2d = enc_outputs.reshape(M, H).astype(jnp.float32)

    stack_call = make_decoder_stack_call(B, S, H, F, L, num_head, vmem_limit)
    y2d = stack_call(x2d, enc2d,
                     kp["wqv"], kp["bqv"], kp["wk"], kp["bk"], kp["wo"], kp["bo"],
                     kp["lnw"], kp["lnb"], kp["w1"], kp["b1"], kp["w2"], kp["b2"])

    # Vocab projection: pad Vcap to a multiple of 128 so the vocab tile never degrades
    # to a single whole-vocab block; slice the padding back off afterwards.
    Vpad = ((Vcap + 127) // 128) * 128
    dw = jnp.pad(kp["dense_w"], ((0, 0), (0, Vpad - Vcap)))
    db = jnp.pad(kp["dense_b"], ((0, 0), (0, Vpad - Vcap)))
    Tv = _pick_vocab_tile(Vpad)
    dense_call = make_dense_call(M, H, Vpad, Tv, vmem_limit)
    logits = dense_call(y2d, dw, db)[:, :Vcap].reshape(B, S, Vcap)

    state = [enc_outputs, None, [None] * L]
    return logits, state


# ----------------------------------------------------------------------------
# Deterministic parameter initialization (synthetic, no checkpoints)
# ----------------------------------------------------------------------------
def init_params(key, dict_cap, H, F, layer_num):
    keys = jax.random.split(key, 3 + layer_num)
    params = {
        "embedding": jax.random.normal(keys[0], (dict_cap, H), jnp.float32) * 0.1,
        "dense_w": jax.random.normal(keys[1], (dict_cap, H), jnp.float32) * 0.1,
        "dense_b": jax.random.normal(keys[2], (dict_cap,), jnp.float32) * 0.01,
        "layers": [],
    }
    for l in range(layer_num):
        lk = jax.random.split(keys[3 + l], 6)
        params["layers"].append(dict(
            attw=jax.random.normal(lk[0], (8, H, H), jnp.float32) * 0.1,
            attb=jax.random.normal(lk[1], (8, H), jnp.float32) * 0.01,
            lnw=jnp.ones((6, H), jnp.float32),
            lnb=jnp.zeros((6, H), jnp.float32),
            w1=jax.random.normal(lk[2], (F, H), jnp.float32) * 0.1,
            b1=jax.random.normal(lk[3], (F,), jnp.float32) * 0.01,
            w2=jax.random.normal(lk[4], (H, F), jnp.float32) * 0.1,
            b2=jax.random.normal(lk[5], (H,), jnp.float32) * 0.01,
        ))
    return params


# ----------------------------------------------------------------------------
# Pure-JAX reference (mirrors the PyTorch module in eval mode).  Matmuls use the
# same bf16-weight / bf16-input, f32-accumulate quantization the kernel uses, so
# the comparison isolates kernel-implementation correctness.
# ----------------------------------------------------------------------------
def _mm(a, w):
    return jnp.dot(a.astype(jnp.bfloat16), w.astype(jnp.bfloat16),
                   preferred_element_type=jnp.float32)


def _ln_ref(v, w, b):
    mu = v.mean(-1, keepdims=True)
    var = ((v - mu) ** 2).mean(-1, keepdims=True)
    return (v - mu) / jnp.sqrt(var + 1e-5) * w + b


def _addnorm_ref(v, w, b):
    return v + _ln_ref(v, w, b)


def _mulatt_ref(K_in, V_in, Q_in, attw, attb, base, h):
    Q = _mm(Q_in, attw[base + 0].T) + attb[base + 0]
    K = _mm(K_in, attw[base + 1].T) + attb[base + 1]
    V = _mm(V_in, attw[base + 2].T) + attb[base + 2]
    B, Sq, H = Q.shape
    d = H // h

    def split(t):
        return t.reshape(t.shape[0], t.shape[1], h, d).transpose(0, 2, 1, 3).reshape(
            -1, t.shape[1], d)

    tq, tk, tv = split(Q), split(K), split(V)
    score = jnp.einsum("bqd,bkd->bqk", tq, tk) / d ** 0.5
    att = jax.nn.softmax(jnp.einsum("bqk,bkd->bqd", score, tv), axis=-1)
    out = att.reshape(-1, h, att.shape[1], d).transpose(0, 2, 1, 3).reshape(B, Sq, H)
    return _mm(out, attw[base + 3].T) + attb[base + 3]


def _block_ref(x, enc, lp, h):
    attw, attb, lnw, lnb = lp["attw"], lp["attb"], lp["lnw"], lp["lnb"]
    kv = x
    x1 = _mulatt_ref(x, kv, kv, attw, attb, 0, h)
    y = _addnorm_ref(x1, lnw[0], lnb[0]) + _addnorm_ref(x, lnw[1], lnb[1])
    y1 = _mulatt_ref(y, enc, enc, attw, attb, 4, h)
    z = _addnorm_ref(y, lnw[2], lnb[2]) + _addnorm_ref(y1, lnw[3], lnb[3])
    hid = jnp.maximum(_mm(z, lp["w1"].T) + lp["b1"], 0.0)
    ffn = _mm(hid, lp["w2"].T) + lp["b2"]
    return _addnorm_ref(z, lnw[4], lnb[4]) + _addnorm_ref(ffn, lnw[5], lnb[5])


def reference_forward(token_ids, enc, params, num_head, max_len):
    H = params["embedding"].shape[1]
    x = params["embedding"][token_ids] * (H ** 0.5)
    x = x + positional_encoding(max_len, H)[:, :token_ids.shape[1], :]
    for lp in params["layers"]:
        x = _block_ref(x, enc, lp, num_head)
    return _mm(x, params["dense_w"].T) + params["dense_b"]


# ----------------------------------------------------------------------------
if __name__ == "__main__":
    B, S, H, head = 2, 8, 32, 4
    F, Vcap, L, max_len = 64, 64, 2, 16

    key = jax.random.PRNGKey(0)
    kparam, kt, ke = jax.random.split(key, 3)
    params = init_params(kparam, Vcap, H, F, L)
    token_ids = jax.random.randint(kt, (B, S), 0, Vcap, dtype=jnp.int32)
    enc_outputs = jax.random.normal(ke, (B, S, H), jnp.float32)

    logits, state = transformer_decoder_forward(token_ids, enc_outputs, params, head, max_len)
    logits = jax.block_until_ready(logits)

    ref = reference_forward(token_ids, enc_outputs, params, head, max_len)
    assert logits.shape == (B, S, Vcap), logits.shape
    max_err = float(jnp.max(jnp.abs(logits - ref)))
    assert jnp.allclose(logits, ref, atol=1e-2, rtol=1e-2), max_err

    print("KERNEL_OK")
</pallas_src>

<mosaic_0001>
module attributes {stable_mosaic.version = 11 : i64} {
  func.func @kernel(%arg0: i32, %arg1: memref<16x32xf32, #tpu.memory_space<vmem>>, %arg2: memref<16x32xf32, #tpu.memory_space<vmem>>, %arg3: memref<1x2x32x64xbf16, #tpu.memory_space<vmem>>, %arg4: memref<1x2x1x64xf32, #tpu.memory_space<vmem>>, %arg5: memref<1x2x32x32xbf16, #tpu.memory_space<vmem>>, %arg6: memref<1x2x1x32xf32, #tpu.memory_space<vmem>>, %arg7: memref<1x2x32x32xbf16, #tpu.memory_space<vmem>>, %arg8: memref<1x2x1x32xf32, #tpu.memory_space<vmem>>, %arg9: memref<1x6x32xf32, #tpu.memory_space<vmem>>, %arg10: memref<1x6x32xf32, #tpu.memory_space<vmem>>, %arg11: memref<1x32x64xbf16, #tpu.memory_space<vmem>>, %arg12: memref<1x1x64xf32, #tpu.memory_space<vmem>>, %arg13: memref<1x64x32xbf16, #tpu.memory_space<vmem>>, %arg14: memref<1x1x32xf32, #tpu.memory_space<vmem>>, %arg15: memref<16x32xf32, #tpu.memory_space<vmem>>, %arg16: memref<16x32xf32, #tpu.memory_space<vmem>>) attributes {dimension_semantics = [#tpu.dimension_semantics<arbitrary>], iteration_bounds = array<i64: 2>, scalar_prefetch = 0 : i64, scratch_operands = 1 : i64, tpu.core_type = #tpu.core_type<tc>, window_params = [{pipeline_mode = #tpu.pipeline_mode<synchronous>, transform_indices = @transform_0, window_bounds = array<i64: 16, 32>}, {pipeline_mode = #tpu.pipeline_mode<synchronous>, transform_indices = @transform_1, window_bounds = array<i64: 16, 32>}, {transform_indices = @transform_2, window_bounds = array<i64: 1, 2, 32, 64>}, {transform_indices = @transform_3, window_bounds = array<i64: 1, 2, 1, 64>}, {transform_indices = @transform_4, window_bounds = array<i64: 1, 2, 32, 32>}, {transform_indices = @transform_5, window_bounds = array<i64: 1, 2, 1, 32>}, {transform_indices = @transform_6, window_bounds = array<i64: 1, 2, 32, 32>}, {transform_indices = @transform_7, window_bounds = array<i64: 1, 2, 1, 32>}, {transform_indices = @transform_8, window_bounds = array<i64: 1, 6, 32>}, {transform_indices = @transform_9, window_bounds = array<i64: 1, 6, 32>}, {transform_indices = @transform_10, window_bounds = array<i64: 1, 32, 64>}, {transform_indices = @transform_11, window_bounds = array<i64: 1, 1, 64>}, {transform_indices = @transform_12, window_bounds = array<i64: 1, 64, 32>}, {transform_indices = @transform_13, window_bounds = array<i64: 1, 1, 32>}, {pipeline_mode = #tpu.pipeline_mode<synchronous>, transform_indices = @transform_14, window_bounds = array<i64: 16, 32>}]} {
    %c0_i32 = arith.constant 0 : i32
    %0 = arith.cmpi eq, %arg0, %c0_i32 : i32
    %1 = arith.extui %0 : i1 to i32
    %c0_i32_0 = arith.constant 0 : i32
    %2 = arith.cmpi ne, %1, %c0_i32_0 : i32
    scf.if %2 {
      %c0_180 = arith.constant 0 : index
      %c0_181 = arith.constant 0 : index
      %453 = vector.load %arg1[%c0_180, %c0_181] : memref<16x32xf32, #tpu.memory_space<vmem>>, vector<16x32xf32>
      %c0_182 = arith.constant 0 : index
      %c0_183 = arith.constant 0 : index
      %454 = vector.load %arg15[%c0_182, %c0_183] : memref<16x32xf32, #tpu.memory_space<vmem>>, vector<16x32xf32>
      tpu.vector_store %arg15[%c0_182, %c0_183], %453 {strides = array<i32>} : memref<16x32xf32, #tpu.memory_space<vmem>>, vector<16x32xf32>,
    } else {
    }
    %c0 = arith.constant 0 : index
    %c0_1 = arith.constant 0 : index
    %3 = vector.load %arg15[%c0, %c0_1] : memref<16x32xf32, #tpu.memory_space<vmem>>, vector<16x32xf32>
    %c0_2 = arith.constant 0 : index
    %c0_3 = arith.constant 0 : index
    %4 = vector.load %arg2[%c0_2, %c0_3] : memref<16x32xf32, #tpu.memory_space<vmem>>, vector<16x32xf32>
    %5 = arith.truncf %3 : vector<16x32xf32> to vector<16x32xbf16>
    %c0_4 = arith.constant 0 : index
    %c0_5 = arith.constant 0 : index
    %c0_6 = arith.constant 0 : index
    %c0_7 = arith.constant 0 : index
    %6 = vector.load %arg3[%c0_4, %c0_5, %c0_6, %c0_7] : memref<1x2x32x64xbf16, #tpu.memory_space<vmem>>, vector<1x1x32x64xbf16>
    %7 = vector.shape_cast %6 : vector<1x1x32x64xbf16> to vector<32x64xbf16>
    %cst = arith.constant dense<0.000000e+00> : vector<16x64xf32>
    %8 = tpu.matmul %5, %7, %cst {dimension_numbers = #tpu.dot_dimension_numbers<[1], [0], [0], [1], [0, 0, 1, 1], [], []>} : vector<16x32xbf16>, vector<32x64xbf16>, vector<16x64xf32> -> vector<16x64xf32>
    %c0_8 = arith.constant 0 : index
    %c0_9 = arith.constant 0 : index
    %c0_10 = arith.constant 0 : index
    %c0_11 = arith.constant 0 : index
    %9 = vector.load %arg4[%c0_8, %c0_9, %c0_10, %c0_11] : memref<1x2x1x64xf32, #tpu.memory_space<vmem>>, vector<1x1x1x64xf32>
    %10 = vector.shape_cast %9 : vector<1x1x1x64xf32> to vector<1x64xf32>
    %11 = vector.broadcast %10 : vector<1x64xf32> to vector<16x64xf32>
    %12 = arith.addf %8, %11 : vector<16x64xf32>
    %13 = arith.truncf %3 : vector<16x32xf32> to vector<16x32xbf16>
    %c0_12 = arith.constant 0 : index
    %c0_13 = arith.constant 0 : index
    %c0_14 = arith.constant 0 : index
    %c0_15 = arith.constant 0 : index
    %14 = vector.load %arg5[%c0_12, %c0_13, %c0_14, %c0_15] : memref<1x2x32x32xbf16, #tpu.memory_space<vmem>>, vector<1x1x32x32xbf16>
    %15 = vector.shape_cast %14 : vector<1x1x32x32xbf16> to vector<32x32xbf16>
    %cst_16 = arith.constant dense<0.000000e+00> : vector<16x32xf32>
    %16 = tpu.matmul %13, %15, %cst_16 {dimension_numbers = #tpu.dot_dimension_numbers<[1], [0], [0], [1], [0, 0, 1, 1], [], []>} : vector<16x32xbf16>, vector<32x32xbf16>, vector<16x32xf32> -> vector<16x32xf32>
    %c0_17 = arith.constant 0 : index
    %c0_18 = arith.constant 0 : index
    %c0_19 = arith.constant 0 : index
    %c0_20 = arith.constant 0 : index
    %17 = vector.load %arg6[%c0_17, %c0_18, %c0_19, %c0_20] : memref<1x2x1x32xf32, #tpu.memory_space<vmem>>, vector<1x1x1x32xf32>
    %18 = vector.shape_cast %17 : vector<1x1x1x32xf32> to vector<1x32xf32>
    %19 = vector.broadcast %18 : vector<1x32xf32> to vector<16x32xf32>
    %20 = arith.addf %16, %19 : vector<16x32xf32>
    %21 = vector.extract_strided_slice %12 {offsets = [0, 0], sizes = [16, 32], strides = [1, 1]} : vector<16x64xf32> to vector<16x32xf32>
    %cst_21 = arith.constant 0.353553385 : f32
    %22 = vector.broadcast %cst_21 : f32 to vector<16x32xf32>
    %23 = arith.mulf %21, %22 : vector<16x32xf32>
    %24 = vector.extract_strided_slice %12 {offsets = [0, 32], sizes = [16, 32], strides = [1, 1]} : vector<16x64xf32> to vector<16x32xf32>
    %25 = vector.extract_strided_slice %23 {offsets = [0, 0], sizes = [8, 32], strides = [1, 1]} : vector<16x32xf32> to vector<8x32xf32>
    %26 = vector.extract_strided_slice %25 {offsets = [0, 0], sizes = [8, 8], strides = [1, 1]} : vector<8x32xf32> to vector<8x8xf32>
    %27 = vector.extract_strided_slice %25 {offsets = [0, 8], sizes = [8, 8], strides = [1, 1]} : vector<8x32xf32> to vector<8x8xf32>
    %28 = vector.extract_strided_slice %25 {offsets = [0, 16], sizes = [8, 8], strides = [1, 1]} : vector<8x32xf32> to vector<8x8xf32>
    %29 = vector.extract_strided_slice %25 {offsets = [0, 24], sizes = [8, 8], strides = [1, 1]} : vector<8x32xf32> to vector<8x8xf32>
    %30 = vector.extract_strided_slice %23 {offsets = [8, 0], sizes = [8, 32], strides = [1, 1]} : vector<16x32xf32> to vector<8x32xf32>
    %31 = vector.extract_strided_slice %30 {offsets = [0, 0], sizes = [8, 8], strides = [1, 1]} : vector<8x32xf32> to vector<8x8xf32>
    %32 = vector.extract_strided_slice %30 {offsets = [0, 8], sizes = [8, 8], strides = [1, 1]} : vector<8x32xf32> to vector<8x8xf32>
    %33 = vector.extract_strided_slice %30 {offsets = [0, 16], sizes = [8, 8], strides = [1, 1]} : vector<8x32xf32> to vector<8x8xf32>
    %34 = vector.extract_strided_slice %30 {offsets = [0, 24], sizes = [8, 8], strides = [1, 1]} : vector<8x32xf32> to vector<8x8xf32>
    %35 = vector.shape_cast %26 : vector<8x8xf32> to vector<1x8x8xf32>
    %36 = vector.shape_cast %27 : vector<8x8xf32> to vector<1x8x8xf32>
    %37 = vector.shape_cast %28 : vector<8x8xf32> to vector<1x8x8xf32>
    %38 = vector.shape_cast %29 : vector<8x8xf32> to vector<1x8x8xf32>
    %39 = vector.shape_cast %31 : vector<8x8xf32> to vector<1x8x8xf32>
    %40 = vector.shape_cast %32 : vector<8x8xf32> to vector<1x8x8xf32>
    %41 = vector.shape_cast %33 : vector<8x8xf32> to vector<1x8x8xf32>
    %42 = vector.shape_cast %34 : vector<8x8xf32> to vector<1x8x8xf32>
    %43 = tpu.concatenate %35, %36, %37, %38, %39, %40, %41, %42 in 0 : vector<1x8x8xf32>, vector<1x8x8xf32>, vector<1x8x8xf32>, vector<1x8x8xf32>, vector<1x8x8xf32>, vector<1x8x8xf32>, vector<1x8x8xf32>, vector<1x8x8xf32> -> vector<8x8x8xf32>
    %44 = vector.extract_strided_slice %20 {offsets = [0, 0], sizes = [8, 32], strides = [1, 1]} : vector<16x32xf32> to vector<8x32xf32>
    %45 = vector.extract_strided_slice %44 {offsets = [0, 0], sizes = [8, 8], strides = [1, 1]} : vector<8x32xf32> to vector<8x8xf32>
    %46 = vector.extract_strided_slice %44 {offsets = [0, 8], sizes = [8, 8], strides = [1, 1]} : vector<8x32xf32> to vector<8x8xf32>
    %47 = vector.extract_strided_slice %44 {offsets = [0, 16], sizes = [8, 8], strides = [1, 1]} : vector<8x32xf32> to vector<8x8xf32>
    %48 = vector.extract_strided_slice %44 {offsets = [0, 24], sizes = [8, 8], strides = [1, 1]} : vector<8x32xf32> to vector<8x8xf32>
    %49 = vector.extract_strided_slice %20 {offsets = [8, 0], sizes = [8, 32], strides = [1, 1]} : vector<16x32xf32> to vector<8x32xf32>
    %50 = vector.extract_strided_slice %49 {offsets = [0, 0], sizes = [8, 8], strides = [1, 1]} : vector<8x32xf32> to vector<8x8xf32>
    %51 = vector.extract_strided_slice %49 {offsets = [0, 8], sizes = [8, 8], strides = [1, 1]} : vector<8x32xf32> to vector<8x8xf32>
    %52 = vector.extract_strided_slice %49 {offsets = [0, 16], sizes = [8, 8], strides = [1, 1]} : vector<8x32xf32> to vector<8x8xf32>
    %53 = vector.extract_strided_slice %49 {offsets = [0, 24], sizes = [8, 8], strides = [1, 1]} : vector<8x32xf32> to vector<8x8xf32>
    %54 = vector.shape_cast %45 : vector<8x8xf32> to vector<1x8x8xf32>
    %55 = vector.shape_cast %46 : vector<8x8xf32> to vector<1x8x8xf32>
    %56 = vector.shape_cast %47 : vector<8x8xf32> to vector<1x8x8xf32>
    %57 = vector.shape_cast %48 : vector<8x8xf32> to vector<1x8x8xf32>
    %58 = vector.shape_cast %50 : vector<8x8xf32> to vector<1x8x8xf32>
    %59 = vector.shape_cast %51 : vector<8x8xf32> to vector<1x8x8xf32>
    %60 = vector.shape_cast %52 : vector<8x8xf32> to vector<1x8x8xf32>
    %61 = vector.shape_cast %53 : vector<8x8xf32> to vector<1x8x8xf32>
    %62 = tpu.concatenate %54, %55, %56, %57, %58, %59, %60, %61 in 0 : vector<1x8x8xf32>, vector<1x8x8xf32>, vector<1x8x8xf32>, vector<1x8x8xf32>, vector<1x8x8xf32>, vector<1x8x8xf32>, vector<1x8x8xf32>, vector<1x8x8xf32> -> vector<8x8x8xf32>
    %63 = vector.extract_strided_slice %24 {offsets = [0, 0], sizes = [8, 32], strides = [1, 1]} : vector<16x32xf32> to vector<8x32xf32>
    %64 = vector.extract_strided_slice %63 {offsets = [0, 0], sizes = [8, 8], strides = [1, 1]} : vector<8x32xf32> to vector<8x8xf32>
    %65 = vector.extract_strided_slice %63 {offsets = [0, 8], sizes = [8, 8], strides = [1, 1]} : vector<8x32xf32> to vector<8x8xf32>
    %66 = vector.extract_strided_slice %63 {offsets = [0, 16], sizes = [8, 8], strides = [1, 1]} : vector<8x32xf32> to vector<8x8xf32>
    %67 = vector.extract_strided_slice %63 {offsets = [0, 24], sizes = [8, 8], strides = [1, 1]} : vector<8x32xf32> to vector<8x8xf32>
    %68 = vector.extract_strided_slice %24 {offsets = [8, 0], sizes = [8, 32], strides = [1, 1]} : vector<16x32xf32> to vector<8x32xf32>
    %69 = vector.extract_strided_slice %68 {offsets = [0, 0], sizes = [8, 8], strides = [1, 1]} : vector<8x32xf32> to vector<8x8xf32>
    %70 = vector.extract_strided_slice %68 {offsets = [0, 8], sizes = [8, 8], strides = [1, 1]} : vector<8x32xf32> to vector<8x8xf32>
    %71 = vector.extract_strided_slice %68 {offsets = [0, 16], sizes = [8, 8], strides = [1, 1]} : vector<8x32xf32> to vector<8x8xf32>
    %72 = vector.extract_strided_slice %68 {offsets = [0, 24], sizes = [8, 8], strides = [1, 1]} : vector<8x32xf32> to vector<8x8xf32>
    %73 = vector.shape_cast %64 : vector<8x8xf32> to vector<1x8x8xf32>
    %74 = vector.shape_cast %65 : vector<8x8xf32> to vector<1x8x8xf32>
    %75 = vector.shape_cast %66 : vector<8x8xf32> to vector<1x8x8xf32>
    %76 = vector.shape_cast %67 : vector<8x8xf32> to vector<1x8x8xf32>
    %77 = vector.shape_cast %69 : vector<8x8xf32> to vector<1x8x8xf32>
    %78 = vector.shape_cast %70 : vector<8x8xf32> to vector<1x8x8xf32>
    %79 = vector.shape_cast %71 : vector<8x8xf32> to vector<1x8x8xf32>
    %80 = vector.shape_cast %72 : vector<8x8xf32> to vector<1x8x8xf32>
    %81 = tpu.concatenate %73, %74, %75, %76, %77, %78, %79, %80 in 0 : vector<1x8x8xf32>, vector<1x8x8xf32>, vector<1x8x8xf32>, vector<1x8x8xf32>, vector<1x8x8xf32>, vector<1x8x8xf32>, vector<1x8x8xf32>, vector<1x8x8xf32> -> vector<8x8x8xf32>
    "tpu.trace_start"() <{level = 10 : i32, message = "nqd,nkd->nqk"}> : () -> ()
    %cst_22 = arith.constant dense<0.000000e+00> : vector<8x8x8xf32>
    %82 = tpu.matmul %43, %62, %cst_22 {dimension_numbers = #tpu.dot_dimension_numbers<[2], [2], [1], [1], [0, 0, 0, 1, 1, 1], [0], [0]>} : vector<8x8x8xf32>, vector<8x8x8xf32>, vector<8x8x8xf32> -> vector<8x8x8xf32>
    "tpu.trace_stop"() : () -> ()
    "tpu.trace_start"() <{level = 10 : i32, message = "nqk,nkd->nqd"}> : () -> ()
    %cst_23 = arith.constant dense<0.000000e+00> : vector<8x8x8xf32>
    %83 = tpu.matmul %82, %81, %cst_23 {dimension_numbers = #tpu.dot_dimension_numbers<[2], [1], [1], [2], [0, 0, 0, 1, 1, 2], [0], [0]>} : vector<8x8x8xf32>, vector<8x8x8xf32>, vector<8x8x8xf32> -> vector<8x8x8xf32>
    "tpu.trace_stop"() : () -> ()
    %cst_24 = arith.constant dense<0xFF800000> : vector<8x8xf32>
    %84 = vector.multi_reduction <maximumf>, %83, %cst_24 [2] : vector<8x8x8xf32> to vector<8x8xf32>
    %85 = vector.shape_cast %84 : vector<8x8xf32> to vector<8x8x1xf32>
    %86 = vector.broadcast %85 : vector<8x8x1xf32> to vector<8x8x8xf32>
    %87 = arith.subf %83, %86 : vector<8x8x8xf32>
    %88 = math.exp %87 : vector<8x8x8xf32>
    %cst_25 = arith.constant dense<0.000000e+00> : vector<8x8xf32>
    %89 = vector.multi_reduction <add>, %88, %cst_25 [2] : vector<8x8x8xf32> to vector<8x8xf32>
    %90 = vector.shape_cast %89 : vector<8x8xf32> to vector<8x8x1xf32>
    %91 = tpu.reciprocal %90 {approx = true} : vector<8x8x1xf32> -> vector<8x8x1xf32>
    %92 = arith.mulf %90, %91 : vector<8x8x1xf32>
    %cst_26 = arith.constant 2.000000e+00 : f32
    %93 = vector.broadcast %cst_26 : f32 to vector<8x8x1xf32>
    %94 = arith.subf %93, %92 : vector<8x8x1xf32>
    %95 = arith.mulf %91, %94 : vector<8x8x1xf32>
    %96 = vector.broadcast %95 : vector<8x8x1xf32> to vector<8x8x8xf32>
    %97 = arith.mulf %88, %96 : vector<8x8x8xf32>
    %98 = vector.extract_strided_slice %97 {offsets = [0, 0, 0], sizes = [1, 8, 8], strides = [1, 1, 1]} : vector<8x8x8xf32> to vector<1x8x8xf32>
    %99 = vector.shape_cast %98 : vector<1x8x8xf32> to vector<8x8xf32>
    %c0_27 = arith.constant 0 : index
    %c0_28 = arith.constant 0 : index
    %100 = vector.load %arg16[%c0_27, %c0_28] : memref<16x32xf32, #tpu.memory_space<vmem>>, vector<8x8xf32>
    tpu.vector_store %arg16[%c0_27, %c0_28], %99 {strides = array<i32>} : memref<16x32xf32, #tpu.memory_space<vmem>>, vector<8x8xf32>,
    %101 = vector.extract_strided_slice %97 {offsets = [1, 0, 0], sizes = [1, 8, 8], strides = [1, 1, 1]} : vector<8x8x8xf32> to vector<1x8x8xf32>
    %102 = vector.shape_cast %101 : vector<1x8x8xf32> to vector<8x8xf32>
    %c0_29 = arith.constant 0 : index
    %c8 = arith.constant 8 : index
    %103 = vector.load %arg16[%c0_29, %c8] : memref<16x32xf32, #tpu.memory_space<vmem>>, vector<8x8xf32>
    tpu.vector_store %arg16[%c0_29, %c8], %102 {strides = array<i32>} : memref<16x32xf32, #tpu.memory_space<vmem>>, vector<8x8xf32>,
    %104 = vector.extract_strided_slice %97 {offsets = [2, 0, 0], sizes = [1, 8, 8], strides = [1, 1, 1]} : vector<8x8x8xf32> to vector<1x8x8xf32>
    %105 = vector.shape_cast %104 : vector<1x8x8xf32> to vector<8x8xf32>
    %c0_30 = arith.constant 0 : index
    %c16 = arith.constant 16 : index
    %106 = vector.load %arg16[%c0_30, %c16] : memref<16x32xf32, #tpu.memory_space<vmem>>, vector<8x8xf32>
    tpu.vector_store %arg16[%c0_30, %c16], %105 {strides = array<i32>} : memref<16x32xf32, #tpu.memory_space<vmem>>, vector<8x8xf32>,
    %107 = vector.extract_strided_slice %97 {offsets = [3, 0, 0], sizes = [1, 8, 8], strides = [1, 1, 1]} : vector<8x8x8xf32> to vector<1x8x8xf32>
    %108 = vector.shape_cast %107 : vector<1x8x8xf32> to vector<8x8xf32>
    %c0_31 = arith.constant 0 : index
    %c24 = arith.constant 24 : index
    %109 = vector.load %arg16[%c0_31, %c24] : memref<16x32xf32, #tpu.memory_space<vmem>>, vector<8x8xf32>
    tpu.vector_store %arg16[%c0_31, %c24], %108 {strides = array<i32>} : memref<16x32xf32, #tpu.memory_space<vmem>>, vector<8x8xf32>,
    %110 = vector.extract_strided_slice %97 {offsets = [4, 0, 0], sizes = [1, 8, 8], strides = [1, 1, 1]} : vector<8x8x8xf32> to vector<1x8x8xf32>
    %111 = vector.shape_cast %110 : vector<1x8x8xf32> to vector<8x8xf32>
    %c8_32 = arith.constant 8 : index
    %c0_33 = arith.constant 0 : index
    %112 = vector.load %arg16[%c8_32, %c0_33] : memref<16x32xf32, #tpu.memory_space<vmem>>, vector<8x8xf32>
    tpu.vector_store %arg16[%c8_32, %c0_33], %111 {strides = array<i32>} : memref<16x32xf32, #tpu.memory_space<vmem>>, vector<8x8xf32>,
    %113 = vector.extract_strided_slice %97 {offsets = [5, 0, 0], sizes = [1, 8, 8], strides = [1, 1, 1]} : vector<8x8x8xf32> to vector<1x8x8xf32>
    %114 = vector.shape_cast %113 : vector<1x8x8xf32> to vector<8x8xf32>
    %c8_34 = arith.constant 8 : index
    %c8_35 = arith.constant 8 : index
    %115 = vector.load %arg16[%c8_34, %c8_35] : memref<16x32xf32, #tpu.memory_space<vmem>>, vector<8x8xf32>
    tpu.vector_store %arg16[%c8_34, %c8_35], %114 {strides = array<i32>} : memref<16x32xf32, #tpu.memory_space<vmem>>, vector<8x8xf32>,
    %116 = vector.extract_strided_slice %97 {offsets = [6, 0, 0], sizes = [1, 8, 8], strides = [1, 1, 1]} : vector<8x8x8xf32> to vector<1x8x8xf32>
    %117 = vector.shape_cast %116 : vector<1x8x8xf32> to vector<8x8xf32>
    %c8_36 = arith.constant 8 : index
    %c16_37 = arith.constant 16 : index
    %118 = vector.load %arg16[%c8_36, %c16_37] : memref<16x32xf32, #tpu.memory_space<vmem>>, vector<8x8xf32>
    tpu.vector_store %arg16[%c8_36, %c16_37], %117 {strides = array<i32>} : memref<16x32xf32, #tpu.memory_space<vmem>>, vector<8x8xf32>,
    %119 = vector.extract_strided_slice %97 {offsets = [7, 0, 0], sizes = [1, 8, 8], strides = [1, 1, 1]} : vector<8x8x8xf32> to vector<1x8x8xf32>
    %120 = vector.shape_cast %119 : vector<1x8x8xf32> to vector<8x8xf32>
    %c8_38 = arith.constant 8 : index
    %c24_39 = arith.constant 24 : index
    %121 = vector.load %arg16[%c8_38, %c24_39] : memref<16x32xf32, #tpu.memory_space<vmem>>, vector<8x8xf32>
    tpu.vector_store %arg16[%c8_38, %c24_39], %120 {strides = array<i32>} : memref<16x32xf32, #tpu.memory_space<vmem>>, vector<8x8xf32>,
    %c0_40 = arith.constant 0 : index
    %c0_41 = arith.constant 0 : index
    %122 = vector.load %arg16[%c0_40, %c0_41] : memref<16x32xf32, #tpu.memory_space<vmem>>, vector<16x32xf32>
    %123 = arith.truncf %122 : vector<16x32xf32> to vector<16x32xbf16>
    %c0_42 = arith.constant 0 : index
    %c0_43 = arith.constant 0 : index
    %c0_44 = arith.constant 0 : index
    %c0_45 = arith.constant 0 : index
    %124 = vector.load %arg7[%c0_42, %c0_43, %c0_44, %c0_45] : memref<1x2x32x32xbf16, #tpu.memory_space<vmem>>, vector<1x1x32x32xbf16>
    %125 = vector.shape_cast %124 : vector<1x1x32x32xbf16> to vector<32x32xbf16>
    %cst_46 = arith.constant dense<0.000000e+00> : vector<16x32xf32>
    %126 = tpu.matmul %123, %125, %cst_46 {dimension_numbers = #tpu.dot_dimension_numbers<[1], [0], [0], [1], [0, 0, 1, 1], [], []>} : vector<16x32xbf16>, vector<32x32xbf16>, vector<16x32xf32> -> vector<16x32xf32>
    %c0_47 = arith.constant 0 : index
    %c0_48 = arith.constant 0 : index
    %c0_49 = arith.constant 0 : index
    %c0_50 = arith.constant 0 : index
    %127 = vector.load %arg8[%c0_47, %c0_48, %c0_49, %c0_50] : memref<1x2x1x32xf32, #tpu.memory_space<vmem>>, vector<1x1x1x32xf32>
    %128 = vector.shape_cast %127 : vector<1x1x1x32xf32> to vector<1x32xf32>
    %129 = vector.broadcast %128 : vector<1x32xf32> to vector<16x32xf32>
    %130 = arith.addf %126, %129 : vector<16x32xf32>
    %cst_51 = arith.constant dense<0.000000e+00> : vector<16xf32>
    %131 = vector.multi_reduction <add>, %130, %cst_51 [1] : vector<16x32xf32> to vector<16xf32>
    %132 = vector.shape_cast %131 : vector<16xf32> to vector<16x1xf32>
    %cst_52 = arith.constant 3.200000e+01 : f32
    %133 = vector.broadcast %cst_52 : f32 to vector<16x1xf32>
    %134 = arith.divf %132, %133 : vector<16x1xf32>
    %135 = vector.broadcast %134 : vector<16x1xf32> to vector<16x32xf32>
    %136 = arith.subf %130, %135 : vector<16x32xf32>
    %137 = arith.mulf %136, %136 : vector<16x32xf32>
    %cst_53 = arith.constant dense<0.000000e+00> : vector<16xf32>
    %138 = vector.multi_reduction <add>, %137, %cst_53 [1] : vector<16x32xf32> to vector<16xf32>
    %139 = vector.shape_cast %138 : vector<16xf32> to vector<16x1xf32>
    %cst_54 = arith.constant 3.200000e+01 : f32
    %140 = vector.broadcast %cst_54 : f32 to vector<16x1xf32>
    %141 = arith.divf %139, %140 : vector<16x1xf32>
    %142 = vector.broadcast %134 : vector<16x1xf32> to vector<16x32xf32>
    %143 = arith.subf %130, %142 : vector<16x32xf32>
    %cst_55 = arith.constant 9.99999974E-6 : f32
    %144 = vector.broadcast %cst_55 : f32 to vector<16x1xf32>
    %145 = arith.addf %141, %144 : vector<16x1xf32>
    %146 = math.rsqrt %145 : vector<16x1xf32>
    %147 = vector.broadcast %146 : vector<16x1xf32> to vector<16x32xf32>
    %148 = arith.mulf %143, %147 : vector<16x32xf32>
    %c0_56 = arith.constant 0 : index
    %c0_57 = arith.constant 0 : index
    %c0_58 = arith.constant 0 : index
    %149 = vector.load %arg9[%c0_56, %c0_57, %c0_58] : memref<1x6x32xf32, #tpu.memory_space<vmem>>, vector<1x1x32xf32>
    %150 = vector.shape_cast %149 : vector<1x1x32xf32> to vector<32xf32>
    %151 = vector.shape_cast %150 : vector<32xf32> to vector<1x32xf32>
    %152 = vector.broadcast %151 : vector<1x32xf32> to vector<16x32xf32>
    %153 = arith.mulf %148, %152 : vector<16x32xf32>
    %c0_59 = arith.constant 0 : index
    %c0_60 = arith.constant 0 : index
    %c0_61 = arith.constant 0 : index
    %154 = vector.load %arg10[%c0_59, %c0_60, %c0_61] : memref<1x6x32xf32, #tpu.memory_space<vmem>>, vector<1x1x32xf32>
    %155 = vector.shape_cast %154 : vector<1x1x32xf32> to vector<32xf32>
    %156 = vector.shape_cast %155 : vector<32xf32> to vector<1x32xf32>
    %157 = vector.broadcast %156 : vector<1x32xf32> to vector<16x32xf32>
    %158 = arith.addf %153, %157 : vector<16x32xf32>
    %159 = arith.addf %130, %158 : vector<16x32xf32>
    %cst_62 = arith.constant dense<0.000000e+00> : vector<16xf32>
    %160 = vector.multi_reduction <add>, %3, %cst_62 [1] : vector<16x32xf32> to vector<16xf32>
    %161 = vector.shape_cast %160 : vector<16xf32> to vector<16x1xf32>
    %cst_63 = arith.constant 3.200000e+01 : f32
    %162 = vector.broadcast %cst_63 : f32 to vector<16x1xf32>
    %163 = arith.divf %161, %162 : vector<16x1xf32>
    %164 = vector.broadcast %163 : vector<16x1xf32> to vector<16x32xf32>
    %165 = arith.subf %3, %164 : vector<16x32xf32>
    %166 = arith.mulf %165, %165 : vector<16x32xf32>
    %cst_64 = arith.constant dense<0.000000e+00> : vector<16xf32>
    %167 = vector.multi_reduction <add>, %166, %cst_64 [1] : vector<16x32xf32> to vector<16xf32>
    %168 = vector.shape_cast %167 : vector<16xf32> to vector<16x1xf32>
    %cst_65 = arith.constant 3.200000e+01 : f32
    %169 = vector.broadcast %cst_65 : f32 to vector<16x1xf32>
    %170 = arith.divf %168, %169 : vector<16x1xf32>
    %171 = vector.broadcast %163 : vector<16x1xf32> to vector<16x32xf32>
    %172 = arith.subf %3, %171 : vector<16x32xf32>
    %cst_66 = arith.constant 9.99999974E-6 : f32
    %173 = vector.broadcast %cst_66 : f32 to vector<16x1xf32>
    %174 = arith.addf %170, %173 : vector<16x1xf32>
    %175 = math.rsqrt %174 : vector<16x1xf32>
    %176 = vector.broadcast %175 : vector<16x1xf32> to vector<16x32xf32>
    %177 = arith.mulf %172, %176 : vector<16x32xf32>
    %c0_67 = arith.constant 0 : index
    %c1 = arith.constant 1 : index
    %c0_68 = arith.constant 0 : index
    %178 = vector.load %arg9[%c0_67, %c1, %c0_68] : memref<1x6x32xf32, #tpu.memory_space<vmem>>, vector<1x1x32xf32>
    %179 = vector.shape_cast %178 : vector<1x1x32xf32> to vector<32xf32>
    %180 = vector.shape_cast %179 : vector<32xf32> to vector<1x32xf32>
    %181 = vector.broadcast %180 : vector<1x32xf32> to vector<16x32xf32>
    %182 = arith.mulf %177, %181 : vector<16x32xf32>
    %c0_69 = arith.constant 0 : index
    %c1_70 = arith.constant 1 : index
    %c0_71 = arith.constant 0 : index
    %183 = vector.load %arg10[%c0_69, %c1_70, %c0_71] : memref<1x6x32xf32, #tpu.memory_space<vmem>>, vector<1x1x32xf32>
    %184 = vector.shape_cast %183 : vector<1x1x32xf32> to vector<32xf32>
    %185 = vector.shape_cast %184 : vector<32xf32> to vector<1x32xf32>
    %186 = vector.broadcast %185 : vector<1x32xf32> to vector<16x32xf32>
    %187 = arith.addf %182, %186 : vector<16x32xf32>
    %188 = arith.addf %3, %187 : vector<16x32xf32>
    %189 = arith.addf %159, %188 : vector<16x32xf32>
    %190 = arith.truncf %4 : vector<16x32xf32> to vector<16x32xbf16>
    %c0_72 = arith.constant 0 : index
    %c1_73 = arith.constant 1 : index
    %c0_74 = arith.constant 0 : index
    %c0_75 = arith.constant 0 : index
    %191 = vector.load %arg3[%c0_72, %c1_73, %c0_74, %c0_75] : memref<1x2x32x64xbf16, #tpu.memory_space<vmem>>, vector<1x1x32x64xbf16>
    %192 = vector.shape_cast %191 : vector<1x1x32x64xbf16> to vector<32x64xbf16>
    %cst_76 = arith.constant dense<0.000000e+00> : vector<16x64xf32>
    %193 = tpu.matmul %190, %192, %cst_76 {dimension_numbers = #tpu.dot_dimension_numbers<[1], [0], [0], [1], [0, 0, 1, 1], [], []>} : vector<16x32xbf16>, vector<32x64xbf16>, vector<16x64xf32> -> vector<16x64xf32>
    %c0_77 = arith.constant 0 : index
    %c1_78 = arith.constant 1 : index
    %c0_79 = arith.constant 0 : index
    %c0_80 = arith.constant 0 : index
    %194 = vector.load %arg4[%c0_77, %c1_78, %c0_79, %c0_80] : memref<1x2x1x64xf32, #tpu.memory_space<vmem>>, vector<1x1x1x64xf32>
    %195 = vector.shape_cast %194 : vector<1x1x1x64xf32> to vector<1x64xf32>
    %196 = vector.broadcast %195 : vector<1x64xf32> to vector<16x64xf32>
    %197 = arith.addf %193, %196 : vector<16x64xf32>
    %198 = arith.truncf %189 : vector<16x32xf32> to vector<16x32xbf16>
    %c0_81 = arith.constant 0 : index
    %c1_82 = arith.constant 1 : index
    %c0_83 = arith.constant 0 : index
    %c0_84 = arith.constant 0 : index
    %199 = vector.load %arg5[%c0_81, %c1_82, %c0_83, %c0_84] : memref<1x2x32x32xbf16, #tpu.memory_space<vmem>>, vector<1x1x32x32xbf16>
    %200 = vector.shape_cast %199 : vector<1x1x32x32xbf16> to vector<32x32xbf16>
    %cst_85 = arith.constant dense<0.000000e+00> : vector<16x32xf32>
    %201 = tpu.matmul %198, %200, %cst_85 {dimension_numbers = #tpu.dot_dimension_numbers<[1], [0], [0], [1], [0, 0, 1, 1], [], []>} : vector<16x32xbf16>, vector<32x32xbf16>, vector<16x32xf32> -> vector<16x32xf32>
    %c0_86 = arith.constant 0 : index
    %c1_87 = arith.constant 1 : index
    %c0_88 = arith.constant 0 : index
    %c0_89 = arith.constant 0 : index
    %202 = vector.load %arg6[%c0_86, %c1_87, %c0_88, %c0_89] : memref<1x2x1x32xf32, #tpu.memory_space<vmem>>, vector<1x1x1x32xf32>
    %203 = vector.shape_cast %202 : vector<1x1x1x32xf32> to vector<1x32xf32>
    %204 = vector.broadcast %203 : vector<1x32xf32> to vector<16x32xf32>
    %205 = arith.addf %201, %204 : vector<16x32xf32>
    %206 = vector.extract_strided_slice %197 {offsets = [0, 0], sizes = [16, 32], strides = [1, 1]} : vector<16x64xf32> to vector<16x32xf32>
    %cst_90 = arith.constant 0.353553385 : f32
    %207 = vector.broadcast %cst_90 : f32 to vector<16x32xf32>
    %208 = arith.mulf %206, %207 : vector<16x32xf32>
    %209 = vector.extract_strided_slice %197 {offsets = [0, 32], sizes = [16, 32], strides = [1, 1]} : vector<16x64xf32> to vector<16x32xf32>
    %210 = vector.extract_strided_slice %208 {offsets = [0, 0], sizes = [8, 32], strides = [1, 1]} : vector<16x32xf32> to vector<8x32xf32>
    %211 = vector.extract_strided_slice %210 {offsets = [0, 0], sizes = [8, 8], strides = [1, 1]} : vector<8x32xf32> to vector<8x8xf32>
    %212 = vector.extract_strided_slice %210 {offsets = [0, 8], sizes = [8, 8], strides = [1, 1]} : vector<8x32xf32> to vector<8x8xf32>
    %213 = vector.extract_strided_slice %210 {offsets = [0, 16], sizes = [8, 8], strides = [1, 1]} : vector<8x32xf32> to vector<8x8xf32>
    %214 = vector.extract_strided_slice %210 {offsets = [0, 24], sizes = [8, 8], strides = [1, 1]} : vector<8x32xf32> to vector<8x8xf32>
    %215 = vector.extract_strided_slice %208 {offsets = [8, 0], sizes = [8, 32], strides = [1, 1]} : vector<16x32xf32> to vector<8x32xf32>
    %216 = vector.extract_strided_slice %215 {offsets = [0, 0], sizes = [8, 8], strides = [1, 1]} : vector<8x32xf32> to vector<8x8xf32>
    %217 = vector.extract_strided_slice %215 {offsets = [0, 8], sizes = [8, 8], strides = [1, 1]} : vector<8x32xf32> to vector<8x8xf32>
    %218 = vector.extract_strided_slice %215 {offsets = [0, 16], sizes = [8, 8], strides = [1, 1]} : vector<8x32xf32> to vector<8x8xf32>
    %219 = vector.extract_strided_slice %215 {offsets = [0, 24], sizes = [8, 8], strides = [1, 1]} : vector<8x32xf32> to vector<8x8xf32>
    %220 = vector.shape_cast %211 : vector<8x8xf32> to vector<1x8x8xf32>
    %221 = vector.shape_cast %212 : vector<8x8xf32> to vector<1x8x8xf32>
    %222 = vector.shape_cast %213 : vector<8x8xf32> to vector<1x8x8xf32>
    %223 = vector.shape_cast %214 : vector<8x8xf32> to vector<1x8x8xf32>
    %224 = vector.shape_cast %216 : vector<8x8xf32> to vector<1x8x8xf32>
    %225 = vector.shape_cast %217 : vector<8x8xf32> to vector<1x8x8xf32>
    %226 = vector.shape_cast %218 : vector<8x8xf32> to vector<1x8x8xf32>
    %227 = vector.shape_cast %219 : vector<8x8xf32> to vector<1x8x8xf32>
    %228 = tpu.concatenate %220, %221, %222, %223, %224, %225, %226, %227 in 0 : vector<1x8x8xf32>, vector<1x8x8xf32>, vector<1x8x8xf32>, vector<1x8x8xf32>, vector<1x8x8xf32>, vector<1x8x8xf32>, vector<1x8x8xf32>, vector<1x8x8xf32> -> vector<8x8x8xf32>
    %229 = vector.extract_strided_slice %205 {offsets = [0, 0], sizes = [8, 32], strides = [1, 1]} : vector<16x32xf32> to vector<8x32xf32>
    %230 = vector.extract_strided_slice %229 {offsets = [0, 0], sizes = [8, 8], strides = [1, 1]} : vector<8x32xf32> to vector<8x8xf32>
    %231 = vector.extract_strided_slice %229 {offsets = [0, 8], sizes = [8, 8], strides = [1, 1]} : vector<8x32xf32> to vector<8x8xf32>
    %232 = vector.extract_strided_slice %229 {offsets = [0, 16], sizes = [8, 8], strides = [1, 1]} : vector<8x32xf32> to vector<8x8xf32>
    %233 = vector.extract_strided_slice %229 {offsets = [0, 24], sizes = [8, 8], strides = [1, 1]} : vector<8x32xf32> to vector<8x8xf32>
    %234 = vector.extract_strided_slice %205 {offsets = [8, 0], sizes = [8, 32], strides = [1, 1]} : vector<16x32xf32> to vector<8x32xf32>
    %235 = vector.extract_strided_slice %234 {offsets = [0, 0], sizes = [8, 8], strides = [1, 1]} : vector<8x32xf32> to vector<8x8xf32>
    %236 = vector.extract_strided_slice %234 {offsets = [0, 8], sizes = [8, 8], strides = [1, 1]} : vector<8x32xf32> to vector<8x8xf32>
    %237 = vector.extract_strided_slice %234 {offsets = [0, 16], sizes = [8, 8], strides = [1, 1]} : vector<8x32xf32> to vector<8x8xf32>
    %238 = vector.extract_strided_slice %234 {offsets = [0, 24], sizes = [8, 8], strides = [1, 1]} : vector<8x32xf32> to vector<8x8xf32>
    %239 = vector.shape_cast %230 : vector<8x8xf32> to vector<1x8x8xf32>
    %240 = vector.shape_cast %231 : vector<8x8xf32> to vector<1x8x8xf32>
    %241 = vector.shape_cast %232 : vector<8x8xf32> to vector<1x8x8xf32>
    %242 = vector.shape_cast %233 : vector<8x8xf32> to vector<1x8x8xf32>
    %243 = vector.shape_cast %235 : vector<8x8xf32> to vector<1x8x8xf32>
    %244 = vector.shape_cast %236 : vector<8x8xf32> to vector<1x8x8xf32>
    %245 = vector.shape_cast %237 : vector<8x8xf32> to vector<1x8x8xf32>
    %246 = vector.shape_cast %238 : vector<8x8xf32> to vector<1x8x8xf32>
    %247 = tpu.concatenate %239, %240, %241, %242, %243, %244, %245, %246 in 0 : vector<1x8x8xf32>, vector<1x8x8xf32>, vector<1x8x8xf32>, vector<1x8x8xf32>, vector<1x8x8xf32>, vector<1x8x8xf32>, vector<1x8x8xf32>, vector<1x8x8xf32> -> vector<8x8x8xf32>
    %248 = vector.extract_strided_slice %209 {offsets = [0, 0], sizes = [8, 32], strides = [1, 1]} : vector<16x32xf32> to vector<8x32xf32>
    %249 = vector.extract_strided_slice %248 {offsets = [0, 0], sizes = [8, 8], strides = [1, 1]} : vector<8x32xf32> to vector<8x8xf32>
    %250 = vector.extract_strided_slice %248 {offsets = [0, 8], sizes = [8, 8], strides = [1, 1]} : vector<8x32xf32> to vector<8x8xf32>
    %251 = vector.extract_strided_slice %248 {offsets = [0, 16], sizes = [8, 8], strides = [1, 1]} : vector<8x32xf32> to vector<8x8xf32>
    %252 = vector.extract_strided_slice %248 {offsets = [0, 24], sizes = [8, 8], strides = [1, 1]} : vector<8x32xf32> to vector<8x8xf32>
    %253 = vector.extract_strided_slice %209 {offsets = [8, 0], sizes = [8, 32], strides = [1, 1]} : vector<16x32xf32> to vector<8x32xf32>
    %254 = vector.extract_strided_slice %253 {offsets = [0, 0], sizes = [8, 8], strides = [1, 1]} : vector<8x32xf32> to vector<8x8xf32>
    %255 = vector.extract_strided_slice %253 {offsets = [0, 8], sizes = [8, 8], strides = [1, 1]} : vector<8x32xf32> to vector<8x8xf32>
    %256 = vector.extract_strided_slice %253 {offsets = [0, 16], sizes = [8, 8], strides = [1, 1]} : vector<8x32xf32> to vector<8x8xf32>
    %257 = vector.extract_strided_slice %253 {offsets = [0, 24], sizes = [8, 8], strides = [1, 1]} : vector<8x32xf32> to vector<8x8xf32>
    %258 = vector.shape_cast %249 : vector<8x8xf32> to vector<1x8x8xf32>
    %259 = vector.shape_cast %250 : vector<8x8xf32> to vector<1x8x8xf32>
    %260 = vector.shape_cast %251 : vector<8x8xf32> to vector<1x8x8xf32>
    %261 = vector.shape_cast %252 : vector<8x8xf32> to vector<1x8x8xf32>
    %262 = vector.shape_cast %254 : vector<8x8xf32> to vector<1x8x8xf32>
    %263 = vector.shape_cast %255 : vector<8x8xf32> to vector<1x8x8xf32>
    %264 = vector.shape_cast %256 : vector<8x8xf32> to vector<1x8x8xf32>
    %265 = vector.shape_cast %257 : vector<8x8xf32> to vector<1x8x8xf32>
    %266 = tpu.concatenate %258, %259, %260, %261, %262, %263, %264, %265 in 0 : vector<1x8x8xf32>, vector<1x8x8xf32>, vector<1x8x8xf32>, vector<1x8x8xf32>, vector<1x8x8xf32>, vector<1x8x8xf32>, vector<1x8x8xf32>, vector<1x8x8xf32> -> vector<8x8x8xf32>
    "tpu.trace_start"() <{level = 10 : i32, message = "nqd,nkd->nqk"}> : () -> ()
    %cst_91 = arith.constant dense<0.000000e+00> : vector<8x8x8xf32>
    %267 = tpu.matmul %228, %247, %cst_91 {dimension_numbers = #tpu.dot_dimension_numbers<[2], [2], [1], [1], [0, 0, 0, 1, 1, 1], [0], [0]>} : vector<8x8x8xf32>, vector<8x8x8xf32>, vector<8x8x8xf32> -> vector<8x8x8xf32>
    "tpu.trace_stop"() : () -> ()
    "tpu.trace_start"() <{level = 10 : i32, message = "nqk,nkd->nqd"}> : () -> ()
    %cst_92 = arith.constant dense<0.000000e+00> : vector<8x8x8xf32>
    %268 = tpu.matmul %267, %266, %cst_92 {dimension_numbers = #tpu.dot_dimension_numbers<[2], [1], [1], [2], [0, 0, 0, 1, 1, 2], [0], [0]>} : vector<8x8x8xf32>, vector<8x8x8xf32>, vector<8x8x8xf32> -> vector<8x8x8xf32>
    "tpu.trace_stop"() : () -> ()
    %cst_93 = arith.constant dense<0xFF800000> : vector<8x8xf32>
    %269 = vector.multi_reduction <maximumf>, %268, %cst_93 [2] : vector<8x8x8xf32> to vector<8x8xf32>
    %270 = vector.shape_cast %269 : vector<8x8xf32> to vector<8x8x1xf32>
    %271 = vector.broadcast %270 : vector<8x8x1xf32> to vector<8x8x8xf32>
    %272 = arith.subf %268, %271 : vector<8x8x8xf32>
    %273 = math.exp %272 : vector<8x8x8xf32>
    %cst_94 = arith.constant dense<0.000000e+00> : vector<8x8xf32>
    %274 = vector.multi_reduction <add>, %273, %cst_94 [2] : vector<8x8x8xf32> to vector<8x8xf32>
    %275 = vector.shape_cast %274 : vector<8x8xf32> to vector<8x8x1xf32>
    %276 = tpu.reciprocal %275 {approx = true} : vector<8x8x1xf32> -> vector<8x8x1xf32>
    %277 = arith.mulf %275, %276 : vector<8x8x1xf32>
    %cst_95 = arith.constant 2.000000e+00 : f32
    %278 = vector.broadcast %cst_95 : f32 to vector<8x8x1xf32>
    %279 = arith.subf %278, %277 : vector<8x8x1xf32>
    %280 = arith.mulf %276, %279 : vector<8x8x1xf32>
    %281 = vector.broadcast %280 : vector<8x8x1xf32> to vector<8x8x8xf32>
    %282 = arith.mulf %273, %281 : vector<8x8x8xf32>
    %283 = vector.extract_strided_slice %282 {offsets = [0, 0, 0], sizes = [1, 8, 8], strides = [1, 1, 1]} : vector<8x8x8xf32> to vector<1x8x8xf32>
    %284 = vector.shape_cast %283 : vector<1x8x8xf32> to vector<8x8xf32>
    %c0_96 = arith.constant 0 : index
    %c0_97 = arith.constant 0 : index
    %285 = vector.load %arg16[%c0_96, %c0_97] : memref<16x32xf32, #tpu.memory_space<vmem>>, vector<8x8xf32>
    tpu.vector_store %arg16[%c0_96, %c0_97], %284 {strides = array<i32>} : memref<16x32xf32, #tpu.memory_space<vmem>>, vector<8x8xf32>,
    %286 = vector.extract_strided_slice %282 {offsets = [1, 0, 0], sizes = [1, 8, 8], strides = [1, 1, 1]} : vector<8x8x8xf32> to vector<1x8x8xf32>
    %287 = vector.shape_cast %286 : vector<1x8x8xf32> to vector<8x8xf32>
    %c0_98 = arith.constant 0 : index
    %c8_99 = arith.constant 8 : index
    %288 = vector.load %arg16[%c0_98, %c8_99] : memref<16x32xf32, #tpu.memory_space<vmem>>, vector<8x8xf32>
    tpu.vector_store %arg16[%c0_98, %c8_99], %287 {strides = array<i32>} : memref<16x32xf32, #tpu.memory_space<vmem>>, vector<8x8xf32>,
    %289 = vector.extract_strided_slice %282 {offsets = [2, 0, 0], sizes = [1, 8, 8], strides = [1, 1, 1]} : vector<8x8x8xf32> to vector<1x8x8xf32>
    %290 = vector.shape_cast %289 : vector<1x8x8xf32> to vector<8x8xf32>
    %c0_100 = arith.constant 0 : index
    %c16_101 = arith.constant 16 : index
    %291 = vector.load %arg16[%c0_100, %c16_101] : memref<16x32xf32, #tpu.memory_space<vmem>>, vector<8x8xf32>
    tpu.vector_store %arg16[%c0_100, %c16_101], %290 {strides = array<i32>} : memref<16x32xf32, #tpu.memory_space<vmem>>, vector<8x8xf32>,
    %292 = vector.extract_strided_slice %282 {offsets = [3, 0, 0], sizes = [1, 8, 8], strides = [1, 1, 1]} : vector<8x8x8xf32> to vector<1x8x8xf32>
    %293 = vector.shape_cast %292 : vector<1x8x8xf32> to vector<8x8xf32>
    %c0_102 = arith.constant 0 : index
    %c24_103 = arith.constant 24 : index
    %294 = vector.load %arg16[%c0_102, %c24_103] : memref<16x32xf32, #tpu.memory_space<vmem>>, vector<8x8xf32>
    tpu.vector_store %arg16[%c0_102, %c24_103], %293 {strides = array<i32>} : memref<16x32xf32, #tpu.memory_space<vmem>>, vector<8x8xf32>,
    %295 = vector.extract_strided_slice %282 {offsets = [4, 0, 0], sizes = [1, 8, 8], strides = [1, 1, 1]} : vector<8x8x8xf32> to vector<1x8x8xf32>
    %296 = vector.shape_cast %295 : vector<1x8x8xf32> to vector<8x8xf32>
    %c8_104 = arith.constant 8 : index
    %c0_105 = arith.constant 0 : index
    %297 = vector.load %arg16[%c8_104, %c0_105] : memref<16x32xf32, #tpu.memory_space<vmem>>, vector<8x8xf32>
    tpu.vector_store %arg16[%c8_104, %c0_105], %296 {strides = array<i32>} : memref<16x32xf32, #tpu.memory_space<vmem>>, vector<8x8xf32>,
    %298 = vector.extract_strided_slice %282 {offsets = [5, 0, 0], sizes = [1, 8, 8], strides = [1, 1, 1]} : vector<8x8x8xf32> to vector<1x8x8xf32>
    %299 = vector.shape_cast %298 : vector<1x8x8xf32> to vector<8x8xf32>
    %c8_106 = arith.constant 8 : index
    %c8_107 = arith.constant 8 : index
    %300 = vector.load %arg16[%c8_106, %c8_107] : memref<16x32xf32, #tpu.memory_space<vmem>>, vector<8x8xf32>
    tpu.vector_store %arg16[%c8_106, %c8_107], %299 {strides = array<i32>} : memref<16x32xf32, #tpu.memory_space<vmem>>, vector<8x8xf32>,
    %301 = vector.extract_strided_slice %282 {offsets = [6, 0, 0], sizes = [1, 8, 8], strides = [1, 1, 1]} : vector<8x8x8xf32> to vector<1x8x8xf32>
    %302 = vector.shape_cast %301 : vector<1x8x8xf32> to vector<8x8xf32>
    %c8_108 = arith.constant 8 : index
    %c16_109 = arith.constant 16 : index
    %303 = vector.load %arg16[%c8_108, %c16_109] : memref<16x32xf32, #tpu.memory_space<vmem>>, vector<8x8xf32>
    tpu.vector_store %arg16[%c8_108, %c16_109], %302 {strides = array<i32>} : memref<16x32xf32, #tpu.memory_space<vmem>>, vector<8x8xf32>,
    %304 = vector.extract_strided_slice %282 {offsets = [7, 0, 0], sizes = [1, 8, 8], strides = [1, 1, 1]} : vector<8x8x8xf32> to vector<1x8x8xf32>
    %305 = vector.shape_cast %304 : vector<1x8x8xf32> to vector<8x8xf32>
    %c8_110 = arith.constant 8 : index
    %c24_111 = arith.constant 24 : index
    %306 = vector.load %arg16[%c8_110, %c24_111] : memref<16x32xf32, #tpu.memory_space<vmem>>, vector<8x8xf32>
    tpu.vector_store %arg16[%c8_110, %c24_111], %305 {strides = array<i32>} : memref<16x32xf32, #tpu.memory_space<vmem>>, vector<8x8xf32>,
    %c0_112 = arith.constant 0 : index
    %c0_113 = arith.constant 0 : index
    %307 = vector.load %arg16[%c0_112, %c0_113] : memref<16x32xf32, #tpu.memory_space<vmem>>, vector<16x32xf32>
    %308 = arith.truncf %307 : vector<16x32xf32> to vector<16x32xbf16>
    %c0_114 = arith.constant 0 : index
    %c1_115 = arith.constant 1 : index
    %c0_116 = arith.constant 0 : index
    %c0_117 = arith.constant 0 : index
    %309 = vector.load %arg7[%c0_114, %c1_115, %c0_116, %c0_117] : memref<1x2x32x32xbf16, #tpu.memory_space<vmem>>, vector<1x1x32x32xbf16>
    %310 = vector.shape_cast %309 : vector<1x1x32x32xbf16> to vector<32x32xbf16>
    %cst_118 = arith.constant dense<0.000000e+00> : vector<16x32xf32>
    %311 = tpu.matmul %308, %310, %cst_118 {dimension_numbers = #tpu.dot_dimension_numbers<[1], [0], [0], [1], [0, 0, 1, 1], [], []>} : vector<16x32xbf16>, vector<32x32xbf16>, vector<16x32xf32> -> vector<16x32xf32>
    %c0_119 = arith.constant 0 : index
    %c1_120 = arith.constant 1 : index
    %c0_121 = arith.constant 0 : index
    %c0_122 = arith.constant 0 : index
    %312 = vector.load %arg8[%c0_119, %c1_120, %c0_121, %c0_122] : memref<1x2x1x32xf32, #tpu.memory_space<vmem>>, vector<1x1x1x32xf32>
    %313 = vector.shape_cast %312 : vector<1x1x1x32xf32> to vector<1x32xf32>
    %314 = vector.broadcast %313 : vector<1x32xf32> to vector<16x32xf32>
    %315 = arith.addf %311, %314 : vector<16x32xf32>
    %cst_123 = arith.constant dense<0.000000e+00> : vector<16xf32>
    %316 = vector.multi_reduction <add>, %189, %cst_123 [1] : vector<16x32xf32> to vector<16xf32>
    %317 = vector.shape_cast %316 : vector<16xf32> to vector<16x1xf32>
    %cst_124 = arith.constant 3.200000e+01 : f32
    %318 = vector.broadcast %cst_124 : f32 to vector<16x1xf32>
    %319 = arith.divf %317, %318 : vector<16x1xf32>
    %320 = vector.broadcast %319 : vector<16x1xf32> to vector<16x32xf32>
    %321 = arith.subf %189, %320 : vector<16x32xf32>
    %322 = arith.mulf %321, %321 : vector<16x32xf32>
    %cst_125 = arith.constant dense<0.000000e+00> : vector<16xf32>
    %323 = vector.multi_reduction <add>, %322, %cst_125 [1] : vector<16x32xf32> to vector<16xf32>
    %324 = vector.shape_cast %323 : vector<16xf32> to vector<16x1xf32>
    %cst_126 = arith.constant 3.200000e+01 : f32
    %325 = vector.broadcast %cst_126 : f32 to vector<16x1xf32>
    %326 = arith.divf %324, %325 : vector<16x1xf32>
    %327 = vector.broadcast %319 : vector<16x1xf32> to vector<16x32xf32>
    %328 = arith.subf %189, %327 : vector<16x32xf32>
    %cst_127 = arith.constant 9.99999974E-6 : f32
    %329 = vector.broadcast %cst_127 : f32 to vector<16x1xf32>
    %330 = arith.addf %326, %329 : vector<16x1xf32>
    %331 = math.rsqrt %330 : vector<16x1xf32>
    %332 = vector.broadcast %331 : vector<16x1xf32> to vector<16x32xf32>
    %333 = arith.mulf %328, %332 : vector<16x32xf32>
    %c0_128 = arith.constant 0 : index
    %c2 = arith.constant 2 : index
    %c0_129 = arith.constant 0 : index
    %334 = vector.load %arg9[%c0_128, %c2, %c0_129] : memref<1x6x32xf32, #tpu.memory_space<vmem>>, vector<1x1x32xf32>
    %335 = vector.shape_cast %334 : vector<1x1x32xf32> to vector<32xf32>
    %336 = vector.shape_cast %335 : vector<32xf32> to vector<1x32xf32>
    %337 = vector.broadcast %336 : vector<1x32xf32> to vector<16x32xf32>
    %338 = arith.mulf %333, %337 : vector<16x32xf32>
    %c0_130 = arith.constant 0 : index
    %c2_131 = arith.constant 2 : index
    %c0_132 = arith.constant 0 : index
    %339 = vector.load %arg10[%c0_130, %c2_131, %c0_132] : memref<1x6x32xf32, #tpu.memory_space<vmem>>, vector<1x1x32xf32>
    %340 = vector.shape_cast %339 : vector<1x1x32xf32> to vector<32xf32>
    %341 = vector.shape_cast %340 : vector<32xf32> to vector<1x32xf32>
    %342 = vector.broadcast %341 : vector<1x32xf32> to vector<16x32xf32>
    %343 = arith.addf %338, %342 : vector<16x32xf32>
    %344 = arith.addf %189, %343 : vector<16x32xf32>
    %cst_133 = arith.constant dense<0.000000e+00> : vector<16xf32>
    %345 = vector.multi_reduction <add>, %315, %cst_133 [1] : vector<16x32xf32> to vector<16xf32>
    %346 = vector.shape_cast %345 : vector<16xf32> to vector<16x1xf32>
    %cst_134 = arith.constant 3.200000e+01 : f32
    %347 = vector.broadcast %cst_134 : f32 to vector<16x1xf32>
    %348 = arith.divf %346, %347 : vector<16x1xf32>
    %349 = vector.broadcast %348 : vector<16x1xf32> to vector<16x32xf32>
    %350 = arith.subf %315, %349 : vector<16x32xf32>
    %351 = arith.mulf %350, %350 : vector<16x32xf32>
    %cst_135 = arith.constant dense<0.000000e+00> : vector<16xf32>
    %352 = vector.multi_reduction <add>, %351, %cst_135 [1] : vector<16x32xf32> to vector<16xf32>
    %353 = vector.shape_cast %352 : vector<16xf32> to vector<16x1xf32>
    %cst_136 = arith.constant 3.200000e+01 : f32
    %354 = vector.broadcast %cst_136 : f32 to vector<16x1xf32>
    %355 = arith.divf %353, %354 : vector<16x1xf32>
    %356 = vector.broadcast %348 : vector<16x1xf32> to vector<16x32xf32>
    %357 = arith.subf %315, %356 : vector<16x32xf32>
    %cst_137 = arith.constant 9.99999974E-6 : f32
    %358 = vector.broadcast %cst_137 : f32 to vector<16x1xf32>
    %359 = arith.addf %355, %358 : vector<16x1xf32>
    %360 = math.rsqrt %359 : vector<16x1xf32>
    %361 = vector.broadcast %360 : vector<16x1xf32> to vector<16x32xf32>
    %362 = arith.mulf %357, %361 : vector<16x32xf32>
    %c0_138 = arith.constant 0 : index
    %c3 = arith.constant 3 : index
    %c0_139 = arith.constant 0 : index
    %363 = vector.load %arg9[%c0_138, %c3, %c0_139] : memref<1x6x32xf32, #tpu.memory_space<vmem>>, vector<1x1x32xf32>
    %364 = vector.shape_cast %363 : vector<1x1x32xf32> to vector<32xf32>
    %365 = vector.shape_cast %364 : vector<32xf32> to vector<1x32xf32>
    %366 = vector.broadcast %365 : vector<1x32xf32> to vector<16x32xf32>
    %367 = arith.mulf %362, %366 : vector<16x32xf32>
    %c0_140 = arith.constant 0 : index
    %c3_141 = arith.constant 3 : index
    %c0_142 = arith.constant 0 : index
    %368 = vector.load %arg10[%c0_140, %c3_141, %c0_142] : memref<1x6x32xf32, #tpu.memory_space<vmem>>, vector<1x1x32xf32>
    %369 = vector.shape_cast %368 : vector<1x1x32xf32> to vector<32xf32>
    %370 = vector.shape_cast %369 : vector<32xf32> to vector<1x32xf32>
    %371 = vector.broadcast %370 : vector<1x32xf32> to vector<16x32xf32>
    %372 = arith.addf %367, %371 : vector<16x32xf32>
    %373 = arith.addf %315, %372 : vector<16x32xf32>
    %374 = arith.addf %344, %373 : vector<16x32xf32>
    %375 = arith.truncf %374 : vector<16x32xf32> to vector<16x32xbf16>
    %c0_143 = arith.constant 0 : index
    %c0_144 = arith.constant 0 : index
    %c0_145 = arith.constant 0 : index
    %376 = vector.load %arg11[%c0_143, %c0_144, %c0_145] : memref<1x32x64xbf16, #tpu.memory_space<vmem>>, vector<1x32x64xbf16>
    %377 = vector.shape_cast %376 : vector<1x32x64xbf16> to vector<32x64xbf16>
    %cst_146 = arith.constant dense<0.000000e+00> : vector<16x64xf32>
    %378 = tpu.matmul %375, %377, %cst_146 {dimension_numbers = #tpu.dot_dimension_numbers<[1], [0], [0], [1], [0, 0, 1, 1], [], []>} : vector<16x32xbf16>, vector<32x64xbf16>, vector<16x64xf32> -> vector<16x64xf32>
    %c0_147 = arith.constant 0 : index
    %c0_148 = arith.constant 0 : index
    %c0_149 = arith.constant 0 : index
    %379 = vector.load %arg12[%c0_147, %c0_148, %c0_149] : memref<1x1x64xf32, #tpu.memory_space<vmem>>, vector<1x1x64xf32>
    %380 = vector.shape_cast %379 : vector<1x1x64xf32> to vector<1x64xf32>
    %381 = vector.broadcast %380 : vector<1x64xf32> to vector<16x64xf32>
    %382 = arith.addf %378, %381 : vector<16x64xf32>
    %cst_150 = arith.constant 0.000000e+00 : f32
    %383 = vector.broadcast %cst_150 : f32 to vector<16x64xf32>
    %384 = arith.maximumf %382, %383 : vector<16x64xf32>
    %385 = arith.truncf %384 : vector<16x64xf32> to vector<16x64xbf16>
    %c0_151 = arith.constant 0 : index
    %c0_152 = arith.constant 0 : index
    %c0_153 = arith.constant 0 : index
    %386 = vector.load %arg13[%c0_151, %c0_152, %c0_153] : memref<1x64x32xbf16, #tpu.memory_space<vmem>>, vector<1x64x32xbf16>
    %387 = vector.shape_cast %386 : vector<1x64x32xbf16> to vector<64x32xbf16>
    %cst_154 = arith.constant dense<0.000000e+00> : vector<16x32xf32>
    %388 = tpu.matmul %385, %387, %cst_154 {dimension_numbers = #tpu.dot_dimension_numbers<[1], [0], [0], [1], [0, 0, 1, 1], [], []>} : vector<16x64xbf16>, vector<64x32xbf16>, vector<16x32xf32> -> vector<16x32xf32>
    %c0_155 = arith.constant 0 : index
    %c0_156 = arith.constant 0 : index
    %c0_157 = arith.constant 0 : index
    %389 = vector.load %arg14[%c0_155, %c0_156, %c0_157] : memref<1x1x32xf32, #tpu.memory_space<vmem>>, vector<1x1x32xf32>
    %390 = vector.shape_cast %389 : vector<1x1x32xf32> to vector<1x32xf32>
    %391 = vector.broadcast %390 : vector<1x32xf32> to vector<16x32xf32>
    %392 = arith.addf %388, %391 : vector<16x32xf32>
    %cst_158 = arith.constant dense<0.000000e+00> : vector<16xf32>
    %393 = vector.multi_reduction <add>, %374, %cst_158 [1] : vector<16x32xf32> to vector<16xf32>
    %394 = vector.shape_cast %393 : vector<16xf32> to vector<16x1xf32>
    %cst_159 = arith.constant 3.200000e+01 : f32
    %395 = vector.broadcast %cst_159 : f32 to vector<16x1xf32>
    %396 = arith.divf %394, %395 : vector<16x1xf32>
    %397 = vector.broadcast %396 : vector<16x1xf32> to vector<16x32xf32>
    %398 = arith.subf %374, %397 : vector<16x32xf32>
    %399 = arith.mulf %398, %398 : vector<16x32xf32>
    %cst_160 = arith.constant dense<0.000000e+00> : vector<16xf32>
    %400 = vector.multi_reduction <add>, %399, %cst_160 [1] : vector<16x32xf32> to vector<16xf32>
    %401 = vector.shape_cast %400 : vector<16xf32> to vector<16x1xf32>
    %cst_161 = arith.constant 3.200000e+01 : f32
    %402 = vector.broadcast %cst_161 : f32 to vector<16x1xf32>
    %403 = arith.divf %401, %402 : vector<16x1xf32>
    %404 = vector.broadcast %396 : vector<16x1xf32> to vector<16x32xf32>
    %405 = arith.subf %374, %404 : vector<16x32xf32>
    %cst_162 = arith.constant 9.99999974E-6 : f32
    %406 = vector.broadcast %cst_162 : f32 to vector<16x1xf32>
    %407 = arith.addf %403, %406 : vector<16x1xf32>
    %408 = math.rsqrt %407 : vector<16x1xf32>
    %409 = vector.broadcast %408 : vector<16x1xf32> to vector<16x32xf32>
    %410 = arith.mulf %405, %409 : vector<16x32xf32>
    %c0_163 = arith.constant 0 : index
    %c4 = arith.constant 4 : index
    %c0_164 = arith.constant 0 : index
    %411 = vector.load %arg9[%c0_163, %c4, %c0_164] : memref<1x6x32xf32, #tpu.memory_space<vmem>>, vector<1x1x32xf32>
    %412 = vector.shape_cast %411 : vector<1x1x32xf32> to vector<32xf32>
    %413 = vector.shape_cast %412 : vector<32xf32> to vector<1x32xf32>
    %414 = vector.broadcast %413 : vector<1x32xf32> to vector<16x32xf32>
    %415 = arith.mulf %410, %414 : vector<16x32xf32>
    %c0_165 = arith.constant 0 : index
    %c4_166 = arith.constant 4 : index
    %c0_167 = arith.constant 0 : index
    %416 = vector.load %arg10[%c0_165, %c4_166, %c0_167] : memref<1x6x32xf32, #tpu.memory_space<vmem>>, vector<1x1x32xf32>
    %417 = vector.shape_cast %416 : vector<1x1x32xf32> to vector<32xf32>
    %418 = vector.shape_cast %417 : vector<32xf32> to vector<1x32xf32>
    %419 = vector.broadcast %418 : vector<1x32xf32> to vector<16x32xf32>
    %420 = arith.addf %415, %419 : vector<16x32xf32>
    %421 = arith.addf %374, %420 : vector<16x32xf32>
    %cst_168 = arith.constant dense<0.000000e+00> : vector<16xf32>
    %422 = vector.multi_reduction <add>, %392, %cst_168 [1] : vector<16x32xf32> to vector<16xf32>
    %423 = vector.shape_cast %422 : vector<16xf32> to vector<16x1xf32>
    %cst_169 = arith.constant 3.200000e+01 : f32
    %424 = vector.broadcast %cst_169 : f32 to vector<16x1xf32>
    %425 = arith.divf %423, %424 : vector<16x1xf32>
    %426 = vector.broadcast %425 : vector<16x1xf32> to vector<16x32xf32>
    %427 = arith.subf %392, %426 : vector<16x32xf32>
    %428 = arith.mulf %427, %427 : vector<16x32xf32>
    %cst_170 = arith.constant dense<0.000000e+00> : vector<16xf32>
    %429 = vector.multi_reduction <add>, %428, %cst_170 [1] : vector<16x32xf32> to vector<16xf32>
    %430 = vector.shape_cast %429 : vector<16xf32> to vector<16x1xf32>
    %cst_171 = arith.constant 3.200000e+01 : f32
    %431 = vector.broadcast %cst_171 : f32 to vector<16x1xf32>
    %432 = arith.divf %430, %431 : vector<16x1xf32>
    %433 = vector.broadcast %425 : vector<16x1xf32> to vector<16x32xf32>
    %434 = arith.subf %392, %433 : vector<16x32xf32>
    %cst_172 = arith.constant 9.99999974E-6 : f32
    %435 = vector.broadcast %cst_172 : f32 to vector<16x1xf32>
    %436 = arith.addf %432, %435 : vector<16x1xf32>
    %437 = math.rsqrt %436 : vector<16x1xf32>
    %438 = vector.broadcast %437 : vector<16x1xf32> to vector<16x32xf32>
    %439 = arith.mulf %434, %438 : vector<16x32xf32>
    %c0_173 = arith.constant 0 : index
    %c5 = arith.constant 5 : index
    %c0_174 = arith.constant 0 : index
    %440 = vector.load %arg9[%c0_173, %c5, %c0_174] : memref<1x6x32xf32, #tpu.memory_space<vmem>>, vector<1x1x32xf32>
    %441 = vector.shape_cast %440 : vector<1x1x32xf32> to vector<32xf32>
    %442 = vector.shape_cast %441 : vector<32xf32> to vector<1x32xf32>
    %443 = vector.broadcast %442 : vector<1x32xf32> to vector<16x32xf32>
    %444 = arith.mulf %439, %443 : vector<16x32xf32>
    %c0_175 = arith.constant 0 : index
    %c5_176 = arith.constant 5 : index
    %c0_177 = arith.constant 0 : index
    %445 = vector.load %arg10[%c0_175, %c5_176, %c0_177] : memref<1x6x32xf32, #tpu.memory_space<vmem>>, vector<1x1x32xf32>
    %446 = vector.shape_cast %445 : vector<1x1x32xf32> to vector<32xf32>
    %447 = vector.shape_cast %446 : vector<32xf32> to vector<1x32xf32>
    %448 = vector.broadcast %447 : vector<1x32xf32> to vector<16x32xf32>
    %449 = arith.addf %444, %448 : vector<16x32xf32>
    %450 = arith.addf %392, %449 : vector<16x32xf32>
    %451 = arith.addf %421, %450 : vector<16x32xf32>
    %c0_178 = arith.constant 0 : index
    %c0_179 = arith.constant 0 : index
    %452 = vector.load %arg15[%c0_178, %c0_179] : memref<16x32xf32, #tpu.memory_space<vmem>>, vector<16x32xf32>
    tpu.vector_store %arg15[%c0_178, %c0_179], %451 {strides = array<i32>} : memref<16x32xf32, #tpu.memory_space<vmem>>, vector<16x32xf32>,
    return
  }
  func.func @transform_0(%arg0: i32) -> (i32, i32) {
    %c0_i32 = arith.constant 0 : i32
    %c0_i32_0 = arith.constant 0 : i32
    %c0_i32_1 = arith.constant 0 : i32
    return %c0_i32, %c0_i32_0 : i32, i32
  }
  func.func @transform_1(%arg0: i32) -> (i32, i32) {
    %c0_i32 = arith.constant 0 : i32
    %c0_i32_0 = arith.constant 0 : i32
    %c0_i32_1 = arith.constant 0 : i32
    return %c0_i32, %c0_i32_0 : i32, i32
  }
  func.func @transform_2(%arg0: i32) -> (i32, i32, i32, i32) {
    %c0_i32 = arith.constant 0 : i32
    %c0_i32_0 = arith.constant 0 : i32
    %c0_i32_1 = arith.constant 0 : i32
    %c0_i32_2 = arith.constant 0 : i32
    return %arg0, %c0_i32, %c0_i32_0, %c0_i32_1 : i32, i32, i32, i32
  }
  func.func @transform_3(%arg0: i32) -> (i32, i32, i32, i32) {
    %c0_i32 = arith.constant 0 : i32
    %c0_i32_0 = arith.constant 0 : i32
    %c0_i32_1 = arith.constant 0 : i32
    %c0_i32_2 = arith.constant 0 : i32
    return %arg0, %c0_i32, %c0_i32_0, %c0_i32_1 : i32, i32, i32, i32
  }
  func.func @transform_4(%arg0: i32) -> (i32, i32, i32, i32) {
    %c0_i32 = arith.constant 0 : i32
    %c0_i32_0 = arith.constant 0 : i32
    %c0_i32_1 = arith.constant 0 : i32
    %c0_i32_2 = arith.constant 0 : i32
    return %arg0, %c0_i32, %c0_i32_0, %c0_i32_1 : i32, i32, i32, i32
  }
  func.func @transform_5(%arg0: i32) -> (i32, i32, i32, i32) {
    %c0_i32 = arith.constant 0 : i32
    %c0_i32_0 = arith.constant 0 : i32
    %c0_i32_1 = arith.constant 0 : i32
    %c0_i32_2 = arith.constant 0 : i32
    return %arg0, %c0_i32, %c0_i32_0, %c0_i32_1 : i32, i32, i32, i32
  }
  func.func @transform_6(%arg0: i32) -> (i32, i32, i32, i32) {
    %c0_i32 = arith.constant 0 : i32
    %c0_i32_0 = arith.constant 0 : i32
    %c0_i32_1 = arith.constant 0 : i32
    %c0_i32_2 = arith.constant 0 : i32
    return %arg0, %c0_i32, %c0_i32_0, %c0_i32_1 : i32, i32, i32, i32
  }
  func.func @transform_7(%arg0: i32) -> (i32, i32, i32, i32) {
    %c0_i32 = arith.constant 0 : i32
    %c0_i32_0 = arith.constant 0 : i32
    %c0_i32_1 = arith.constant 0 : i32
    %c0_i32_2 = arith.constant 0 : i32
    return %arg0, %c0_i32, %c0_i32_0, %c0_i32_1 : i32, i32, i32, i32
  }
  func.func @transform_8(%arg0: i32) -> (i32, i32, i32) {
    %c0_i32 = arith.constant 0 : i32
    %c0_i32_0 = arith.constant 0 : i32
    %c0_i32_1 = arith.constant 0 : i32
    return %arg0, %c0_i32, %c0_i32_0 : i32, i32, i32
  }
  func.func @transform_9(%arg0: i32) -> (i32, i32, i32) {
    %c0_i32 = arith.constant 0 : i32
    %c0_i32_0 = arith.constant 0 : i32
    %c0_i32_1 = arith.constant 0 : i32
    return %arg0, %c0_i32, %c0_i32_0 : i32, i32, i32
  }
  func.func @transform_10(%arg0: i32) -> (i32, i32, i32) {
    %c0_i32 = arith.constant 0 : i32
    %c0_i32_0 = arith.constant 0 : i32
    %c0_i32_1 = arith.constant 0 : i32
    return %arg0, %c0_i32, %c0_i32_0 : i32, i32, i32
  }
  func.func @transform_11(%arg0: i32) -> (i32, i32, i32) {
    %c0_i32 = arith.constant 0 : i32
    %c0_i32_0 = arith.constant 0 : i32
    %c0_i32_1 = arith.constant 0 : i32
    return %arg0, %c0_i32, %c0_i32_0 : i32, i32, i32
  }
  func.func @transform_12(%arg0: i32) -> (i32, i32, i32) {
    %c0_i32 = arith.constant 0 : i32
    %c0_i32_0 = arith.constant 0 : i32
    %c0_i32_1 = arith.constant 0 : i32
    return %arg0, %c0_i32, %c0_i32_0 : i32, i32, i32
  }
  func.func @transform_13(%arg0: i32) -> (i32, i32, i32) {
    %c0_i32 = arith.constant 0 : i32
    %c0_i32_0 = arith.constant 0 : i32
    %c0_i32_1 = arith.constant 0 : i32
    return %arg0, %c0_i32, %c0_i32_0 : i32, i32, i32
  }
  func.func @transform_14(%arg0: i32) -> (i32, i32) {
    %c0_i32 = arith.constant 0 : i32
    %c0_i32_0 = arith.constant 0 : i32
    %c0_i32_1 = arith.constant 0 : i32
    return %c0_i32, %c0_i32_0 : i32, i32
  }
}

</mosaic_0001>

<bundles_post_ra>
// kernel: tpu_custom_call.1
= control target key start
LH: loop header
LB: loop body
LE: loop exit
PB: predicated region body
PF: predicated region fallthrough
CT: control target
= control target key end

     0   :  { %s6435_s0 = inlined_call_operand.hbm [shape: f32[16,32], index: 0, kind: input, shape index: {}]   ;;  %s6436_s1 = inlined_call_operand.hbm [shape: f32[16,32], index: 1, kind: input, shape index: {}]   ;;  %s6437_s2 = inlined_call_operand.vmem [shape: bf16[2,2,32,64], index: 2, kind: input, shape index: {}]   ;;  %s6438_s3 = inlined_call_operand.hbm [shape: f32[2,2,1,64], index: 3, kind: input, shape index: {}]   ;;  %s6439_s4 = inlined_call_operand.vmem [shape: bf16[2,2,32,32], index: 4, kind: input, shape index: {}]   ;;  %s6440_s5 = inlined_call_operand.hbm [shape: f32[2,2,1,32], index: 5, kind: input, shape index: {}]   ;;  %s6441_s6 = inlined_call_operand.hbm [shape: bf16[2,2,32,32], index: 6, kind: input, shape index: {}]   ;;  %s6442_s7 = inlined_call_operand.vmem [shape: f32[2,2,1,32], index: 7, kind: input, shape index: {}]   ;;  %s6443_s8 = inlined_call_operand.vmem [shape: f32[2,6,32], index: 8, kind: input, shape index: {}]   ;;  %s6444_s9 = inlined_call_operand.vmem [shape: f32[2,6,32], index: 9, kind: input, shape index: {}]   ;;  %s6445_s10 = inlined_call_operand.hbm [shape: bf16[2,32,64], index: 10, kind: input, shape index: {}]   ;;  %s6446_s11 = inlined_call_operand.vmem [shape: f32[2,1,64], index: 11, kind: input, shape index: {}]   ;;  %s6447_s12 = inlined_call_operand.vmem [shape: bf16[2,64,32], index: 12, kind: input, shape index: {}]   ;;  %s6448_s13 = inlined_call_operand.vmem [shape: f32[2,1,32], index: 13, kind: input, shape index: {}]   ;;  %s6449_s14 = inlined_call_operand.hbm [shape: f32[16,32], index: 14, kind: output, shape index: {}]  }
   0x1   :  { %6462 = sst [smem:[#allocation20_spill]] %s6435_s0 }
   0x2   :  { %6463 = sst [smem:[#allocation21_spill]] %s6436_s1 }
   0x3   :  { %6464 = sst [smem:[#allocation22_spill]] %s6437_s2 }
   0x4   :  { %6465 = sst [smem:[#allocation23_spill]] %s6438_s3 }
   0x5   :  { %6466 = sst [smem:[#allocation24_spill]] %s6439_s4 }
   0x6   :  { %6467 = sst [smem:[#allocation25_spill]] %s6440_s5 }
   0x7   :  { %6468 = sst [smem:[#allocation26_spill]] %s6441_s6 }
   0x8   :  { %6469 = sst [smem:[#allocation27_spill]] %s6442_s7 }
   0x9   :  { %6470 = sst [smem:[#allocation28_spill]] %s6443_s8 }
   0xa   :  { %6471 = sst [smem:[#allocation29_spill]] %s6444_s9 }
   0xb   :  { %6472 = sst [smem:[#allocation30_spill]] %s6445_s10 }
   0xc   :  { %6473 = sst [smem:[#allocation31_spill]] %s6446_s11 }
   0xd   :  { %6474 = sst [smem:[#allocation32_spill]] %s6447_s12 }
   0xe   :  { %6475 = sst [smem:[#allocation33_spill]] %s6448_s13 }
   0xf   :  { %6476 = sst [smem:[#allocation34_spill]] %s6449_s14 }
  0x10   :  { %19 = vsyncpa [#allocation4], 0 }
  0x11   :  { %20 = vsyncpa [#allocation7], 0 }
  0x12   :  { %21 = vsyncpa [#allocation5], 0  ;;  %s5614_s29 = smov 0   ;;  %s5616_s30 = smov 0  }
  0x13   :  { %s5618_s15 = smov 0   ;;  %s5620_s16 = smov 0  }
  0x14 LB: > { %6477 = sst [smem:[#allocation17_spill]] %s5510_s15  ;;  %s5633_s17 = sadd.s32 4294967295, %s5514_s16   ;;  %s5514_s16 = sphi %s5620_s16, %s6516_s16   ;;  %s5510_s15 = sphi %s5618_s15, %s6518_s15   ;;  %s5506_s30 = sphi %s5616_s30, %s6520_s30   ;;  %s5502_s29 = sphi %s5614_s29, %s6519_s29  }
  0x15   : > { %s5636_s18 = sadd.s32 1, %s5514_s16   ;;  %s102_s20 = sadd.s32 1, %s5510_s15 }
  0x16   : > { %6478 = sst [smem:[#allocation18_spill]] %s5636_s18  ;;  %s99_s19 = ssub.s32 %s5514_s16, %s5636_s18 }
  0x17   : > { %p100_p0 = scmp.eq.s32.totalorder %s99_s19, 0  ;;  %p109_p1 = scmp.ne.s32.totalorder %s5510_s15, %s5506_s30 }
  0x18   : > { %p110_p2 = scmp.eq.s32.totalorder %s5514_s16, 0  ;;  %p115_p3 = scmp.ne.s32.totalorder %s5506_s30, %s5502_s29 }
  0x19   : > { %s5646_s21 = scalar_select %p100_p0, %s5510_s15, %s102_s20  }
  0x1a   : > { %p5648_p4 = por %p110_p2, %p109_p1  ;;  %p6450_p5 = scmp.eq.s32.totalorder %s5633_s17, 0 }
  0x1b   : > { %6479 = sst [smem:[#allocation19_spill]] %s5646_s21  ;;  %p4605_p6 = scmp.ge.s32.totalorder %s5514_s16, 1 }
  0x1c   : > { %p407_p7 = scmp.lt.s32.totalorder %s5514_s16, 3  ;;  %p5657_p8 = por %p6450_p5, %p115_p3 }
  0x1d   : > { %s5516_s25 = smov [#allocation3]   ;;  %p5118_p13 = scmp.lt.s32.totalorder %s5514_s16, 2 }
  0x1e   : > { %s6481_s23 = scalar_select %p5657_p8, 1, 0 }
  0x1f   : > { %p5662_p10 = pnand %p4605_p6, %p407_p7  ;;  %s419_s26 = sshll.u32 %s5516_s25, 4  ;;  %s420_s26 = int_to_ptr.vmem [resolvable:$true] %s419_s26 }
  0x20   : > { %s454_s28 = sand.u32 1, %s5514_s16   ;;  %s5677_s29 = sand.u32 1, %s5510_s15  }
  0x21   : > { %s6482_s24 = scalar_select %p5662_p10, 1, 0 }
  0x22   : > { %p5096_p11 = pneg %p5662_p10  ;;  %p5681_p0 = pnand %p5118_p13, %p5648_p4 }
  0x23   : > { %s5291_s20 = scalar_lea.vmem %s420_s26, 256  ;;  %p5299_p7 = scmp.lt.s32.totalorder %s420_s26, %s420_s26 }
  0x24   : > { %p5670_p12 = pnand %p5096_p11, %p6450_p5  ;;  %p5292_p2 = scmp.ne.s32.totalorder %s420_s26, %s5291_s20 }
  0x25   : > { %p5300_p11 = scmp.lt.s32.totalorder %s5291_s20, %s5291_s20 }
  0x26   : > { %s6483_s27 = scalar_select %p5670_p12, 1, 0 }
  0x27   : > { %p6456_p1 = pneg %p5670_p12  ;;  %p5301_p9 = por %p5300_p11, %p5299_p7 }
  0x29   : > { %p5294_p3 = pnand %p5292_p2, %p6456_p1 }
  0x2b   : > { %p5295_p6 = pneg %p5294_p3 }
  0x2d   : > { %p5302_p5 = pnand %p5301_p9, %p5295_p6 }
  0x2f   : > { %5305 = shalt.err (!%p5302_p5)
}
  0x30   : > { %s6454_s25 = smov 128   ;;  %s6455_s22 = smov 8  }
  0x31   : > { %s6485_s0 = sld [smem:[#allocation20_spill]]  ;;  %s4609_s20 = sshll.u32 %s5677_s29, 1 }
  0x32   : > { %s4751_s18 = sshll.u32 %s5514_s16, 5  ;;  %s6486_s3 = sld [smem:[#allocation23_spill]] }
  0x33   : > { %s458_s11 = scalar_lea.vmem [#allocation8], %s4609_s20  ;;  %s5711_s8 = scalar_lea.sflag [#allocation4], %s454_s28 }
  0x34   : > { %s465_s9 = sshll.u32 %s458_s11, 4  ;;  %p5717_p5 = pneg %p5681_p0  ;;  %s5709_s9 = int_to_ptr.vmem [resolvable:$true] %s465_s9 }
  0x37   : > { %5099 = dma.hbm_to_vmem [thread:$0]  (!%p5670_p12), %s6485_s0, 256, %s420_s26, [#allocation4], %s6454_s25, %s6454_s25, %s6455_s22  }
  0x38   : > { %s5705_s12 = scalar_lea.hbm %s6486_s3, %s4751_s18  ;;  %s5311_s26 = scalar_lea.hbm %s6486_s3, 64 }
  0x39   : > { %s5306_s15 = scalar_lea.hbm %s5705_s12, 32  ;;  %p5312_p2 = scmp.lt.s32.totalorder %s5705_s12, %s6486_s3 }
  0x3a   : > { %p5307_p4 = scmp.ne.s32.totalorder %s5705_s12, %s5306_s15  ;;  %p5313_p3 = scmp.lt.s32.totalorder %s5311_s26, %s5306_s15 }
  0x3c   : > { %p5309_p9 = pnand %p5717_p5, %p5307_p4  ;;  %p5314_p6 = por %p5313_p3, %p5312_p2 }
  0x3e   : > { %p5310_p13 = pneg %p5309_p9 }
  0x40   : > { %p5315_p7 = pnand %p5314_p6, %p5310_p13 }
  0x42   : > { %5318 = shalt.err (!%p5315_p7)
}
  0x43   : > { %s5319_s28 = scalar_lea.vmem %s5709_s9, 32  ;;  %s5519_s22 = smov [#allocation8]  }
  0x44   : > { %p5320_p11 = scmp.ne.s32.totalorder %s5709_s9, %s5319_s28  ;;  %s5324_s13 = sshll.u32 %s5519_s22, 4  ;;  %s5325_s13 = int_to_ptr.vmem [resolvable:$false] %s5324_s13 }
  0x45   : > { %s5326_s14 = scalar_lea.vmem %s5325_s13, 64  ;;  %p5327_p1 = scmp.lt.s32.totalorder %s5709_s9, %s5325_s13 }
  0x46   : > { %p5322_p4 = pnand %p5320_p11, %p5717_p5  ;;  %p5328_p8 = scmp.lt.s32.totalorder %s5326_s14, %s5319_s28 }
  0x48   : > { %p5323_p9 = pneg %p5322_p4  ;;  %p5329_p10 = por %p5328_p8, %p5327_p1 }
  0x4a   : > { %p5330_p12 = pnand %p5329_p10, %p5323_p9 }
  0x4c   : > { %5333 = shalt.err (!%p5330_p12)
}
  0x4d   : > { %s6461_s25 = smov 16   ;;  %s5521_s15 = smov 1  }
  0x4e   : > { %5106 = dma.hbm_to_vmem [thread:$0]  (!%p5681_p0), %s5705_s12, 32, %s5709_s9, %s5711_s8, %s6461_s25, %s6461_s25, %s5521_s15  }
  0x4f   : > { %s6488_s5 = sld [smem:[#allocation25_spill]]  ;;  %s487_s28 = scalar_lea.vmem [#allocation9], %s4609_s20 }
  0x50   : > { %s494_s13 = sshll.u32 %s487_s28, 4  ;;  %s495_s13 = int_to_ptr.vmem [resolvable:$true] %s494_s13 }
  0x55   : > { %s5748_s11 = scalar_lea.hbm %s6488_s5, %s4751_s18  ;;  %s5339_s25 = scalar_lea.hbm %s6488_s5, 64 }
  0x56   : > { %s5334_s0 = scalar_lea.hbm %s5748_s11, 32  ;;  %p5340_p1 = scmp.lt.s32.totalorder %s5748_s11, %s6488_s5 }
  0x57   : > { %p5335_p8 = scmp.ne.s32.totalorder %s5748_s11, %s5334_s0  ;;  %p5341_p13 = scmp.lt.s32.totalorder %s5339_s25, %s5334_s0 }
  0x59   : > { %p5337_p10 = pnand %p5335_p8, %p5717_p5  ;;  %p5342_p2 = por %p5341_p13, %p5340_p1 }
  0x5b   : > { %p5338_p12 = pneg %p5337_p10 }
  0x5d   : > { %p5343_p3 = pnand %p5342_p2, %p5338_p12 }
  0x5f   : > { %5346 = shalt.err (!%p5343_p3)
}
  0x60   : > { %s5347_s20 = scalar_lea.vmem %s495_s13, 32  ;;  %s5522_s26 = smov [#allocation9]  }
  0x61   : > { %p5348_p6 = scmp.ne.s32.totalorder %s495_s13, %s5347_s20  ;;  %s5352_s28 = sshll.u32 %s5522_s26, 4  ;;  %s5353_s28 = int_to_ptr.vmem [resolvable:$false] %s5352_s28 }
  0x62   : > { %s5354_s14 = scalar_lea.vmem %s5353_s28, 64  ;;  %p5355_p4 = scmp.lt.s32.totalorder %s495_s13, %s5353_s28 }
  0x63   : > { %p5350_p7 = pnand %p5348_p6, %p5717_p5  ;;  %p5356_p9 = scmp.lt.s32.totalorder %s5354_s14, %s5347_s20 }
  0x65   : > { %p5351_p11 = pneg %p5350_p7  ;;  %p5357_p8 = por %p5356_p9, %p5355_p4 }
  0x67   : > { %p5358_p10 = pnand %p5357_p8, %p5351_p11 }
  0x69   : > { %5361 = shalt.err (!%p5358_p10)
}
  0x6a   : > { %s6489_s0 = smov 16   ;;  %s4753_s25 = sshll.u32 %s5514_s16, 9 }
  0x6b   : > { %5109 = dma.hbm_to_vmem [thread:$0]  (!%p5681_p0), %s5748_s11, 32, %s495_s13, %s5711_s8, %s6489_s0, %s6489_s0, %s5521_s15  }
  0x6c   : > { %s6490_s9 = sshll.u32 %s5677_s29, 5  ;;  %s6491_s6 = sld [smem:[#allocation26_spill]] }
  0x6d   : > { %s508_s12 = scalar_lea.vmem [#allocation10], %s6490_s9 }
  0x6e   : > { %s515_s22 = sshll.u32 %s508_s12, 4  ;;  %s5781_s22 = int_to_ptr.vmem [resolvable:$true] %s515_s22 }
  0x72   : > { %s5779_s20 = scalar_lea.hbm %s6491_s6, %s4753_s25  ;;  %s5367_s13 = scalar_lea.hbm %s6491_s6, 1024 }
  0x73   : > { %s5362_s26 = scalar_lea.hbm %s5779_s20, 512  ;;  %p5368_p2 = scmp.lt.s32.totalorder %s5779_s20, %s6491_s6 }
  0x74   : > { %p5363_p12 = scmp.ne.s32.totalorder %s5779_s20, %s5362_s26  ;;  %p5369_p3 = scmp.lt.s32.totalorder %s5367_s13, %s5362_s26 }
  0x76   : > { %p5365_p1 = pnand %p5363_p12, %p5717_p5  ;;  %p5370_p6 = por %p5369_p3, %p5368_p2 }
  0x78   : > { %p5366_p13 = pneg %p5365_p1 }
  0x7a   : > { %p5371_p7 = pnand %p5370_p6, %p5366_p13 }
  0x7c   : > { %5374 = shalt.err (!%p5371_p7)
}
  0x7d   : > { %s5375_s25 = scalar_lea.vmem %s5781_s22, 512  ;;  %s5523_s9 = smov [#allocation10]  }
  0x7e   : > { %p5376_p11 = scmp.ne.s32.totalorder %s5781_s22, %s5375_s25  ;;  %s5380_s12 = sshll.u32 %s5523_s9, 4  ;;  %s5381_s12 = int_to_ptr.vmem [resolvable:$false] %s5380_s12 }
  0x7f   : > { %s5382_s18 = scalar_lea.vmem %s5381_s12, 1024  ;;  %p5383_p8 = scmp.lt.s32.totalorder %s5781_s22, %s5381_s12 }
  0x80   : > { %p5378_p4 = pnand %p5376_p11, %p5717_p5  ;;  %p5384_p10 = scmp.lt.s32.totalorder %s5382_s18, %s5375_s25 }
  0x82   : > { %p5379_p9 = pneg %p5378_p4  ;;  %p5385_p12 = por %p5384_p10, %p5383_p8 }
  0x84   : > { %p5386_p1 = pnand %p5385_p12, %p5379_p9 }
  0x86   : > { %5389 = shalt.err (!%p5386_p1)
}
  0x87   : > { %s5524_s14 = smov 64   ;;  %s5525_s26 = smov 4  }
  0x88   : > { %5112 = dma.hbm_to_vmem [thread:$0]  (!%p5681_p0), %s5779_s20, 512, %s5781_s22, %s5711_s8, %s5524_s14, %s5524_s14, %s5525_s26  }
  0x89   : > { %s4618_s15 = sshll.u32 %s5677_s29, 4  ;;  %s5526_s11 = smov [#allocation6]  }
  0x8a   : > { %s432_s13 = sshll.u32 %s5526_s11, 4  ;;  %s4754_s28 = sshll.u32 %s5514_s16, 8  ;;  %s433_s13 = int_to_ptr.vmem [resolvable:$true] %s432_s13 }
  0x8b   : > { %s5401_s0 = scalar_lea.vmem %s433_s13, 256  ;;  %p6492_p2 = scmp.ne.s32.totalorder %s6483_s27, 0 }
  0x8c   : > { %p5402_p13 = scmp.ne.s32.totalorder %s433_s13, %s5401_s0  ;;  %p5409_p11 = scmp.lt.s32.totalorder %s433_s13, %s433_s13 }
  0x8d   : > { %p6493_p3 = pneg %p6492_p2  ;;  %p5410_p4 = scmp.lt.s32.totalorder %s5401_s0, %s5401_s0 }
  0x8f   : > { %p5404_p6 = pnand %p5402_p13, %p6493_p3  ;;  %p5411_p9 = por %p5410_p4, %p5409_p11 }
  0x91   : > { %p5405_p7 = pneg %p5404_p6 }
  0x93   : > { %p5412_p8 = pnand %p5411_p9, %p5405_p7 }
  0x95   : > { %5415 = shalt.err (!%p5412_p8)
}
  0x96   : > { %s6494_s25 = smov 8   ;;  %s6495_s22 = smov 128  }
  0x97   : > { %s6496_s1 = sld [smem:[#allocation21_spill]]  ;;  %s550_s18 = scalar_lea.vmem [#allocation11], %s4618_s15 }
  0x98   : > { %s6497_s10 = sld [smem:[#allocation30_spill]]  ;;  %s557_s11 = sshll.u32 %s550_s18, 4  ;;  %s558_s11 = int_to_ptr.vmem [resolvable:$true] %s557_s11 }
  0x9d   : > { %5102 = dma.hbm_to_vmem [thread:$0]  (!%p6492_p2), %s6496_s1, 256, %s433_s13, [#allocation7], %s6495_s22, %s6495_s22, %s6494_s25  }
  0x9e   : > { %s5823_s12 = scalar_lea.hbm %s6497_s10, %s4754_s28  ;;  %s5421_s13 = scalar_lea.hbm %s6497_s10, 512 }
  0x9f   : > { %s5416_s27 = scalar_lea.hbm %s5823_s12, 256  ;;  %p5422_p13 = scmp.lt.s32.totalorder %s5823_s12, %s6497_s10 }
  0xa0   : > { %p5417_p10 = scmp.ne.s32.totalorder %s5823_s12, %s5416_s27  ;;  %p5423_p2 = scmp.lt.s32.totalorder %s5421_s13, %s5416_s27 }
  0xa2   : > { %p5419_p12 = pnand %p5417_p10, %p5717_p5  ;;  %p5424_p3 = por %p5423_p2, %p5422_p13 }
  0xa4   : > { %p5420_p1 = pneg %p5419_p12 }
  0xa6   : > { %p5425_p6 = pnand %p5424_p3, %p5420_p1 }
  0xa8   : > { %5428 = shalt.err (!%p5425_p6)
}
  0xa9   : > { %s5429_s15 = scalar_lea.vmem %s558_s11, 256  ;;  %s5527_s28 = smov [#allocation11]  }
  0xaa   : > { %p5430_p7 = scmp.ne.s32.totalorder %s558_s11, %s5429_s15  ;;  %s5434_s20 = sshll.u32 %s5527_s28, 4  ;;  %s5435_s20 = int_to_ptr.vmem [resolvable:$false] %s5434_s20 }
  0xab   : > { %s5436_s16 = scalar_lea.vmem %s5435_s20, 512  ;;  %p5437_p9 = scmp.lt.s32.totalorder %s558_s11, %s5435_s20 }
  0xac   : > { %p5432_p11 = pnand %p5430_p7, %p5717_p5  ;;  %p5438_p8 = scmp.lt.s32.totalorder %s5436_s16, %s5429_s15 }
  0xae   : > { %p5433_p4 = pneg %p5432_p11  ;;  %p5439_p10 = por %p5438_p8, %p5437_p9 }
  0xb0   : > { %p5440_p12 = pnand %p5439_p10, %p5433_p4 }
  0xb2   : > { %5443 = shalt.err (!%p5440_p12)
}
  0xb3   : > { %5115 = dma.hbm_to_vmem [thread:$0]  (!%p5681_p0), %s5823_s12, 256, %s558_s11, %s5711_s8, %s5524_s14, %s5524_s14, %s5525_s26  }
  0xb4   : > { %p6498_p5 = scmp.ne.s32.totalorder %s6482_s24, 0 }
  0xb5   : > { %p6499_p1 = scmp.eq.s32.totalorder (!%p6498_p5), %s5633_s17, 0 }
  0xb6   : > { %589 = sbr.rel (%p6498_p5) target bundleno = 4311 (0x10d7), region = 76 }
  0xbb   : > { %5485 = dma.done.wait (%p6499_p1), [#allocation4], 256   ;;  %p6500_p13 = pmov %p6499_p1 }
  0xbc   : > { %p6501_p2 = pmov %p6499_p1 }
  0xbd   : > { %5487 = vsyncadd (%p6500_p13), [#allocation4], 4294967040 }
  0xbe   : > { %5489 = dma.done.wait (%p6501_p2), [#allocation7], 256   ;;  %p6502_p3 = pmov %p6499_p1 }
  0xbf   : > { %s599_s19 = sand.u32 1, %s5633_s17   ;;  %s601_s8 = sand.u32 1, %s5506_s30  }
  0xc0   : > { %5491 = vsyncadd (%p6502_p3), [#allocation7], 4294967040  ;;  %s4624_s21 = sshll.u32 %s601_s8, 1  ;;  %s600_s24 = scalar_lea.sflag [#allocation4], %s599_s19 }
  0xc1   : > { %s5857_s14 = scalar_lea.vmem [#allocation8], %s4624_s21  ;;  %p6503_p0 = scmp.ne.s32.totalorder %s6481_s23, 0 }
  0xc3   : > { %5493 = dma.done.wait (%p6503_p0), %s600_s24, 832  }
  0xc4   : > { %5495 = vsyncadd (%p6503_p0), %s600_s24, 4294966464  ;;  %s4626_s26 = sshll.u32 %s601_s8, 5  ;;  %s4627_s9 = sshll.u32 %s601_s8, 4 }
  0xc5   : > { %p718_p6 = scmp.lt.s32.totalorder %s5633_s17, 1  ;;  %s6504_s2 = sld [smem:[#allocation22_spill]] }
  0xc6   : > { %s6505_s4 = sld [smem:[#allocation24_spill]]  ;;  %s5908_s19 = scalar_lea.vmem [#allocation9], %s4624_s21 }
  0xc7   : > { %s5865_s12 = scalar_select %p718_p6, %s5633_s17, 1 }
  0xc8   : > { %s6506_s7 = sld [smem:[#allocation27_spill]]  ;;  %s5912_s1 = scalar_lea.vmem [#allocation11], %s4627_s9 }
  0xc9   : > { %s4755_s18 = sshll.u32 %s5865_s12, 5  ;;  %s4632_s11 = sshll.u32 %s5865_s12, 1 }
  0xca   : > { %s4633_s20 = sshll.u32 %s5865_s12, 3  ;;  %s6507_s8 = sld [smem:[#allocation28_spill]] }
  0xcb   : > { %s5872_s29 = scalar_lea.vmem %s6504_s2, %s4755_s18  ;;  %s6508_s0 = sld [smem:[#allocation29_spill]] }
  0xcc   : > { %s5877_s25 = scalar_lea.vmem %s6505_s4, %s4755_s18  ;;  %s6509_s13 = sld [smem:[#allocation31_spill]] }
  0xcd   : > { %s6510_s22 = sld [smem:[#allocation32_spill]]  ;;  %p6512_p7 = scmp.ne.s32.totalorder %s5633_s17, 0 }
  0xce   : > { %s5882_s28 = scalar_lea.vmem %s6506_s7, %s4632_s11  ;;  %s6511_s10 = sld [smem:[#allocation33_spill]] }
  0xd0   : > { %s5888_s24 = scalar_lea.vmem %s6507_s8, %s4633_s20  ;;  %s5910_s8 = scalar_lea.vmem [#allocation10], %s4626_s26 }
  0xd1   : > { %s5893_s2 = scalar_lea.vmem %s6508_s0, %s4633_s20  ;;  %755 = sbr.rel (%p6512_p7) target bundleno = 216 (0xd8), region = 104 }
  0xd2   : > { %s742_s4 = scalar_lea.vmem %s6509_s13, %s5865_s12 }
  0xd3   : > { %s5902_s11 = scalar_lea.vmem %s6510_s22, %s4755_s18 }
  0xd4   : > { %s750_s16 = scalar_lea.vmem %s6511_s10, %s5865_s12 }
  0xd6   : > { %v756_v0 = vld [vmem:[#allocation3] sm:$0xff]  ;;  %vm758_vm0 = vcmask 261120   ;;  %v757_v1 = vld [vmem:[#allocation3 + $0x8] sm:$0xff] }
  0xd7   : > { %759 = vst.msk [vmem:[#allocation12] sm:$0xff] %vm758_vm0, %v756_v0  ;;  %760 = vst.msk [vmem:[#allocation12 + $0x8] sm:$0xff] %vm758_vm0, %v757_v1 }
  0xd8 PF: > { %v5174_v2 = vld [vmem:[%s5872_s29 + $0x8] sm:$0xff]   ;;  %v5528_v3 = vmov 0.0   ;;  %v5175_v4 = vld [vmem:[%s5872_s29] sm:$0xff]   ;;  %vm5529_vm1 = vmmov 0   ;;  %vm789_vm2 = vcmask 261120   ;;  %s5530_s3 = smov 104  }
  0xd9   : > { %4848 = vmatprep.subr.bf16.mxu1 %v5528_v3  ;;  %4864 = vmatprep.subr.mxu0 %v5528_v3  ;;  %v5176_v7 = vld [vmem:[%s5877_s25 + $0x8] sm:$0xff]   ;;  %v5177_v9 = vld [vmem:[%s5877_s25] sm:$0xff]   ;;  %v4638_v10 = vld [vmem:[%s5857_s14] ss:$0 sm:$0xff]  ;;  %s5531_s5 = smov 120   ;;  %vm942_vm3 = vcmask 64512  }
  0xda   : > { %4849 = vmatpush3.bf16.msra.mxu1 %v5174_v2  ;;  %4852 = vmatprep.mubr.msk.bf16.mxu1 %vm5529_vm1, %v5528_v3  ;;  %v4642_v17 = vld [vmem:[%s5908_s19] ss:$0 sm:$0xff]  ;;  %s5532_s6 = smov 112   ;;  %s5533_s7 = smov 96   ;;  %vm2260_vm4 = vcmask 130112   ;;  %vm2266_vm5 = vcmask 195712  }
  0xdb   : > { %4850 = vmatprep.subr.bf16.mxu1 %v5528_v3  ;;  %4866 = vmatprep.mubr.msk.f32.mxu0 %vm5529_vm1, %v5528_v3  ;;  %s5534_s10 = smov 8   ;;  %s5535_s21 = smov 16   ;;  %vm2272_vm6 = vcmask 261312   ;;  %vm4243_vm7 = vcmask 523264  }
  0xdc   : > { %s5536_s26 = smov 24   ;;  %p5121_p11 = scmp.eq.s32.totalorder %s5633_s17, 1 }
  0xde   : > { %v5922_v5 = vld [vmem:[#allocation12] sm:$0xff]  ;;  %v5924_v6 = vld [vmem:[#allocation12 + $0x8] sm:$0xff]  ;;  %4851 = vmatpush3.bf16.msra.mxu1 %v5175_v4 }
  0xdf   : > { %v765_v8 = vpack.c.bf16 %v5924_v6, %v5922_v5  ;;  %4856 = vmatprep.subr.bf16.mxu1 %v5528_v3 }
  0xe1   : > { %4853 = vmatmul.mubr.msk.bf16.vlgmr.msra.gmra.mxu1 %vm789_vm2, %v765_v8 }
  0xe2   : > { %4857 = vmatpush3.bf16.msra.mxu1 %v5176_v7  ;;  %4860 = vmatprep.mubr.msk.bf16.mxu1 %vm5529_vm1, %v5528_v3 }
  0xe3   : > { %4858 = vmatprep.subr.bf16.mxu1 %v5528_v3 }
  0xe6   : > { %4859 = vmatpush3.bf16.msra.mxu1 %v5177_v9 }
  0xe7   : > { %4869 = vmatprep.subr.mxu1 %v5528_v3 }
  0xe9   : > { %4861 = vmatmul.mubr.msk.bf16.vlgmr.msra.gmra.mxu1 %vm789_vm2, %v765_v8 }
  0xea   : > { %4871 = vmatprep.mubr.msk.f32.mxu1 %vm5529_vm1, %v5528_v3 }
 0x1a1   : > { %v827_v11 = vpop.f32.mrf.mxu1 }
 0x1a2   : > { %v828_v12 = vadd.f32 %v4638_v10, %v827_v11 }
 0x1a3   : > { %v4854_v13 = vpop.f32.mrf.mxu1 }
 0x1a4   : > { %v898_v14 = vmul.f32 0.35355338, %v828_v12 }
 0x1a5   : > { %v830_v15 = vpop.f32.mrf.mxu1 }
 0x1a6   : > { %905 = vrot.lane.b32.xlu1 %v898_v14, %s5530_s3  ;;  %901 = vrot.lane.b32.xlu0 %v898_v14, %s5531_s5  ;;  %v5949_v22 = vadd.f32 %v4638_v10, %v830_v15 }
 0x1a7   : > { %v4855_v16 = vpop.f32.mrf.mxu1 }
 0x1a8   : > { %v899_v24 = vmul.f32 0.35355338, %v5949_v22 }
 0x1a9   : > { %v891_v18 = vpop.f32.mrf.mxu1 }
 0x1aa   : > { %v892_v19 = vadd.f32 %v4642_v17, %v891_v18 }
 0x1ab   : > { %v4862_v20 = vpop.f32.mrf.mxu1 }
 0x1ac   : > { %917 = vrot.lane.b32.xlu1 %v892_v19, %s5532_s6  ;;  %915 = vrot.lane.b32.xlu0 %v892_v19, %s5531_s5 }
 0x1ad   : > { %4865 = vmatpush3.xpose.msk.msra.mxu0 %vm942_vm3, %v892_v19  ;;  %v894_v21 = vpop.f32.mrf.mxu1 }
 0x1ae   : > { %4874 = vmatprep.subr.mxu0 %v5528_v3  ;;  %v895_v25 = vadd.f32 %v4642_v17, %v894_v21 }
 0x1af   : > { %v4863_v23 = vpop.f32.mrf.mxu1 }
 0x1b0   : > { %4867 = vmatmul.mubr.msk.f32.vlgmr.msra.gmra.mxu0 %vm942_vm3, %v898_v14  ;;  %919 = vrot.lane.b32.xlu1 %v892_v19, %s5530_s3 }
 0x1b1   : > { %903 = vrot.lane.b32.xlu0 %v898_v14, %s5532_s6  ;;  %4876 = vmatprep.mubr.msk.f32.mxu0 %vm5529_vm1, %v5528_v3 }
 0x1b4   : > { %908 = vrot.lane.b32.xlu1 %v899_v24, %s5531_s5 }
 0x1b5   : > { %922 = vrot.lane.b32.xlu0 %v895_v25, %s5531_s5 }
 0x1b8   : > { %926 = vrot.lane.b32.xlu1 %v895_v25, %s5530_s3 }
 0x1b9   : > { %924 = vrot.lane.b32.xlu0 %v895_v25, %s5532_s6 }
 0x1bc   : > { %912 = vrot.lane.b32.xlu1 %v899_v24, %s5530_s3 }
 0x1bd   : > { %910 = vrot.lane.b32.xlu0 %v899_v24, %s5532_s6 }
 0x1c0   : > { %931 = vrot.lane.b32.xlu1 %v828_v12, %s5532_s6 }
 0x1c1   : > { %929 = vrot.lane.b32.xlu0 %v828_v12, %s5531_s5 }
 0x1c4   : > { %936 = vrot.lane.b32.xlu1 %v5949_v22, %s5531_s5 }
 0x1c5   : > { %933 = vrot.lane.b32.xlu0 %v828_v12, %s5530_s3 }
 0x1c8   : > { %940 = vrot.lane.b32.xlu1 %v5949_v22, %s5530_s3 }
 0x1c9   : > { %938 = vrot.lane.b32.xlu0 %v5949_v22, %s5532_s6 }
 0x1cd   : > { %1535 = vrot.lane.b32.xlu0 %v828_v12, %s5533_s7 }
 0x218   : > { %v906_v26 = vpop.permute.xlu1 %905  ;;  %v902_v27 = vpop.permute.xlu0 %901 }
 0x21e   : > { %v918_v28 = vpop.permute.xlu1 %917  ;;  %v916_v29 = vpop.permute.xlu0 %915 }
 0x21f   : > { %4870 = vmatpush3.xpose.msk.msra.mxu1 %vm942_vm3, %v916_v29  ;;  %4875 = vmatpush3.xpose.msk.msra.mxu0 %vm942_vm3, %v918_v28 }
 0x220   : > { %4879 = vmatprep.subr.mxu1 %v5528_v3  ;;  %4884 = vmatprep.subr.mxu0 %v5528_v3 }
 0x222   : > { %v920_v30 = vpop.permute.xlu1 %919  ;;  %4872 = vmatmul.mubr.msk.f32.vlgmr.msra.gmra.mxu1 %vm942_vm3, %v902_v27 }
 0x223   : > { %v904_v31 = vpop.permute.xlu0 %903  ;;  %4880 = vmatpush3.xpose.msk.msra.mxu1 %vm942_vm3, %v920_v30  ;;  %4881 = vmatprep.mubr.msk.f32.mxu1 %vm5529_vm1, %v5528_v3 }
 0x224   : > { %4877 = vmatmul.mubr.msk.f32.vlgmr.msra.gmra.mxu0 %vm942_vm3, %v904_v31  ;;  %4889 = vmatprep.subr.mxu1 %v5528_v3 }
 0x225   : > { %4885 = vmatpush3.xpose.msk.msra.mxu0 %vm942_vm3, %v895_v25  ;;  %4886 = vmatprep.mubr.msk.f32.mxu0 %vm5529_vm1, %v5528_v3 }
 0x226   : > { %v909_v32 = vpop.permute.xlu1 %908  ;;  %4882 = vmatmul.mubr.msk.f32.vlgmr.msra.gmra.mxu1 %vm942_vm3, %v906_v26  ;;  %4894 = vmatprep.subr.mxu0 %v5528_v3 }
 0x227   : > { %v923_v33 = vpop.permute.xlu0 %922  ;;  %4891 = vmatprep.mubr.msk.f32.mxu1 %vm5529_vm1, %v5528_v3 }
 0x228   : > { %4887 = vmatmul.mubr.msk.f32.vlgmr.msra.gmra.mxu0 %vm942_vm3, %v899_v24  ;;  %4890 = vmatpush3.xpose.msk.msra.mxu1 %vm942_vm3, %v923_v33 }
 0x229   : > { %4899 = vmatprep.subr.mxu1 %v5528_v3  ;;  %4896 = vmatprep.mubr.msk.f32.mxu0 %vm5529_vm1, %v5528_v3 }
 0x22a   : > { %v927_v34 = vpop.permute.xlu1 %926 }
 0x22b   : > { %4892 = vmatmul.mubr.msk.f32.vlgmr.msra.gmra.mxu1 %vm942_vm3, %v909_v32  ;;  %v925_v35 = vpop.permute.xlu0 %924 }
 0x22c   : > { %4895 = vmatpush3.xpose.msk.msra.mxu0 %vm942_vm3, %v925_v35  ;;  %4900 = vmatpush3.xpose.msk.msra.mxu1 %vm942_vm3, %v927_v34 }
 0x22d   : > { %4901 = vmatprep.mubr.msk.f32.mxu1 %vm5529_vm1, %v5528_v3  ;;  %4904 = vmatprep.subr.mxu0 %v5528_v3 }
 0x22e   : > { %v913_v36 = vpop.permute.xlu1 %912  ;;  %4909 = vmatprep.subr.mxu1 %v5528_v3 }
 0x22f   : > { %v911_v37 = vpop.permute.xlu0 %910  ;;  %4902 = vmatmul.mubr.msk.f32.vlgmr.msra.gmra.mxu1 %vm942_vm3, %v913_v36 }
 0x230   : > { %4897 = vmatmul.mubr.msk.f32.vlgmr.msra.gmra.mxu0 %vm942_vm3, %v911_v37  ;;  %4911 = vmatprep.mubr.msk.f32.mxu1 %vm5529_vm1, %v5528_v3 }
 0x231   : > { %4906 = vmatprep.mubr.msk.f32.mxu0 %vm5529_vm1, %v5528_v3 }
 0x232   : > { %v932_v38 = vpop.permute.xlu1 %931 }
 0x233   : > { %v930_v39 = vpop.permute.xlu0 %929  ;;  %1687 = vrot.lane.b32.xlu0 %v932_v38, %s5533_s7 }
 0x234   : > { %1611 = vrot.lane.b32.xlu1 %v930_v39, %s5533_s7 }
 0x236   : > { %v937_v41 = vpop.permute.xlu1 %936 }
 0x237   : > { %v934_v40 = vpop.permute.xlu0 %933  ;;  %1839 = vrot.lane.b32.xlu0 %v5949_v22, %s5533_s7 }
 0x238   : > { %1763 = vrot.lane.b32.xlu1 %v934_v40, %s5533_s7 }
 0x23a   : > { %v941_v43 = vpop.permute.xlu1 %940 }
 0x23b   : > { %v939_v42 = vpop.permute.xlu0 %938 }
 0x23c   : > { %1915 = vrot.lane.b32.xlu1 %v937_v41, %s5533_s7  ;;  %1991 = vrot.lane.b32.xlu0 %v939_v42, %s5533_s7 }
 0x23f   : > { %v1536_v44 = vpop.permute.xlu0 %1535 }
 0x240   : > { %2067 = vrot.lane.b32.xlu1 %v941_v43, %s5533_s7  ;;  %4905 = vmatpush3.msra.mxu0 %v1536_v44 }
 0x241   : > { %4914 = vmatprep.subr.mxu0 %v5528_v3 }
 0x270   : > { %v1013_v45 = vpop.f32.mrf.mxu0 }
 0x271   : > { %4907 = vmatmul.mubr.msk.f32.vlgmr.msra.gmra.mxu0 %vm942_vm3, %v1013_v45 }
 0x272   : > { %v4868_v46 = vpop.f32.mrf.mxu0  ;;  %4916 = vmatprep.mubr.msk.f32.mxu0 %vm5529_vm1, %v5528_v3 }
 0x2a5   : > { %v1688_v47 = vpop.permute.xlu0 %1687 }
 0x2a6   : > { %v1612_v48 = vpop.permute.xlu1 %1611  ;;  %4915 = vmatpush3.msra.mxu0 %v1688_v47 }
 0x2a7   : > { %4910 = vmatpush3.msra.mxu1 %v1612_v48  ;;  %4924 = vmatprep.subr.mxu0 %v5528_v3 }
 0x2a8   : > { %4919 = vmatprep.subr.mxu1 %v5528_v3 }
 0x2a9   : > { %v1840_v51 = vpop.permute.xlu0 %1839 }
 0x2aa   : > { %v1764_v49 = vpop.permute.xlu1 %1763 }
 0x2ae   : > { %v1916_v54 = vpop.permute.xlu1 %1915  ;;  %v1992_v59 = vpop.permute.xlu0 %1991 }
 0x2b2   : > { %v2068_v62 = vpop.permute.xlu1 %2067 }
 0x2e2   : > { %v1087_v50 = vpop.f32.mrf.mxu1 }
 0x2e3   : > { %4912 = vmatmul.mubr.msk.f32.vlgmr.msra.gmra.mxu1 %vm942_vm3, %v1087_v50 }
 0x2e4   : > { %v1161_v52 = vpop.f32.mrf.mxu0  ;;  %4920 = vmatpush3.msra.mxu1 %v1764_v49  ;;  %v4873_v53 = vpop.f32.mrf.mxu1  ;;  %4921 = vmatprep.mubr.msk.f32.mxu1 %vm5529_vm1, %v5528_v3 }
 0x2e5   : > { %4917 = vmatmul.mubr.msk.f32.vlgmr.msra.gmra.mxu0 %vm942_vm3, %v1161_v52  ;;  %4929 = vmatprep.subr.mxu1 %v5528_v3 }
 0x2e6   : > { %4925 = vmatpush3.msra.mxu0 %v1840_v51  ;;  %v4878_v55 = vpop.f32.mrf.mxu0  ;;  %v1235_v56 = vpop.f32.mrf.mxu1  ;;  %4926 = vmatprep.mubr.msk.f32.mxu0 %vm5529_vm1, %v5528_v3 }
 0x2e7   : > { %4922 = vmatmul.mubr.msk.f32.vlgmr.msra.gmra.mxu1 %vm942_vm3, %v1235_v56  ;;  %4934 = vmatprep.subr.mxu0 %v5528_v3 }
 0x2e8   : > { %v1309_v57 = vpop.f32.mrf.mxu0  ;;  %4930 = vmatpush3.msra.mxu1 %v1916_v54  ;;  %v4883_v58 = vpop.f32.mrf.mxu1  ;;  %4931 = vmatprep.mubr.msk.f32.mxu1 %vm5529_vm1, %v5528_v3 }
 0x2e9   : > { %4927 = vmatmul.mubr.msk.f32.vlgmr.msra.gmra.mxu0 %vm942_vm3, %v1309_v57  ;;  %4939 = vmatprep.subr.mxu1 %v5528_v3 }
 0x2ea   : > { %4935 = vmatpush3.msra.mxu0 %v1992_v59  ;;  %v4888_v60 = vpop.f32.mrf.mxu0  ;;  %4936 = vmatprep.mubr.msk.f32.mxu0 %vm5529_vm1, %v5528_v3 }
 0x2eb   : > { %v1383_v61 = vpop.f32.mrf.mxu1  ;;  %4944 = vmatprep.subr.bf16.mxu0 %v5528_v3 }
 0x2ec   : > { %4932 = vmatmul.mubr.msk.f32.vlgmr.msra.gmra.mxu1 %vm942_vm3, %v1383_v61 }
 0x2ed   : > { %4940 = vmatpush3.msra.mxu1 %v2068_v62  ;;  %v4893_v63 = vpop.f32.mrf.mxu1  ;;  %4941 = vmatprep.mubr.msk.f32.mxu1 %vm5529_vm1, %v5528_v3 }
 0x2ee   : > { %4952 = vmatprep.subr.bf16.mxu1 %v5528_v3 }
 0x2ef   : > { %v1531_v0 = vpop.f32.mrf.mxu1 }
 0x2f0   : > { %v1457_v1 = vpop.f32.mrf.mxu0  ;;  %4942 = vmatmul.mubr.msk.f32.vlgmr.msra.gmra.mxu1 %vm942_vm3, %v1531_v0 }
 0x2f1   : > { %4937 = vmatmul.mubr.msk.f32.vlgmr.msra.gmra.mxu0 %vm942_vm3, %v1457_v1  ;;  %v4903_v2 = vpop.f32.mrf.mxu1  ;;  %4956 = vmatprep.mubr.msk.bf16.mxu1 %vm5529_vm1, %v5528_v3 }
 0x2f2   : > { %v4898_v4 = vpop.f32.mrf.mxu0  ;;  %4948 = vmatprep.mubr.msk.bf16.mxu0 %vm5529_vm1, %v5528_v3 }
 0x331   : > { %v1607_v7 = vpop.f32.mrf.mxu0 }
 0x332   : > { %v2143_v28 = vsel %vm942_vm3, %v1607_v7, -inf }
 0x333   : > { %v4908_v8 = vpop.f32.mrf.mxu0 }
 0x3a3   : > { %v1683_v9 = vpop.f32.mrf.mxu1 }
 0x3a4   : > { %v2146_v10 = vsel %vm942_vm3, %v1683_v9, -inf }
 0x3a5   : > { %v1759_v11 = vpop.f32.mrf.mxu0  ;;  %2147 = vmax.xlane.f32.xlu0 %v2146_v10  ;;  %v4913_v12 = vpop.f32.mrf.mxu1 }
 0x3a6   : > { %v2149_v15 = vsel %vm942_vm3, %v1759_v11, -inf }
 0x3a7   : > { %v4918_v13 = vpop.f32.mrf.mxu0  ;;  %v1835_v14 = vpop.f32.mrf.mxu1 }
 0x3a8   : > { %v2152_v24 = vsel %vm942_vm3, %v1835_v14, -inf }
 0x3a9   : > { %v1911_v16 = vpop.f32.mrf.mxu0  ;;  %2150 = vmax.xlane.f32.xlu0 %v2149_v15  ;;  %v4923_v17 = vpop.f32.mrf.mxu1 }
 0x3aa   : > { %v2155_v30 = vsel %vm942_vm3, %v1911_v16, -inf }
 0x3ab   : > { %v4928_v18 = vpop.f32.mrf.mxu0 }
 0x3ac   : > { %v1987_v19 = vpop.f32.mrf.mxu1 }
 0x3ad   : > { %v2158_v20 = vsel %vm942_vm3, %v1987_v19, -inf }
 0x3ae   : > { %2159 = vmax.xlane.f32.xlu1 %v2158_v20  ;;  %v4933_v21 = vpop.f32.mrf.mxu1 }
 0x3b0   : > { %v2139_v22 = vpop.f32.mrf.mxu1 }
 0x3b1   : > { %v2063_v23 = vpop.f32.mrf.mxu0  ;;  %v2164_v29 = vsel %vm942_vm3, %v2139_v22, -inf }
 0x3b2   : > { %2153 = vmax.xlane.f32.xlu1 %v2152_v24  ;;  %v2161_v25 = vsel %vm942_vm3, %v2063_v23, -inf  ;;  %v4943_v26 = vpop.f32.mrf.mxu1 }
 0x3b3   : > { %v4938_v27 = vpop.f32.mrf.mxu0  ;;  %2162 = vmax.xlane.f32.xlu0 %v2161_v25 }
 0x3b6   : > { %2144 = vmax.xlane.f32.xlu1 %v2143_v28 }
 0x3b7   : > { %2165 = vmax.xlane.f32.xlu0 %v2164_v29 }
 0x3bb   : > { %2156 = vmax.xlane.f32.xlu0 %v2155_v30 }
 0x42e   : > { %v2148_v31 = vpop.xlane.xlu0 %2147 }
 0x42f   : > { %v2168_v32 = vsub.f32 %v1683_v9, %v2148_v31 }
 0x431   : > { %v2177_v33 = vmul.f32 1.442695, %v2168_v32 }
 0x432   : > { %v2151_v34 = vpop.xlane.xlu0 %2150 }
 0x433   : > { %5192 = vpow2.f32 %v2177_v33  ;;  %v2169_v35 = vsub.f32 %v1759_v11, %v2151_v34 }
 0x435   : > { %v2179_v36 = vmul.f32 1.442695, %v2169_v35  ;;  %v5178_v35 = vld [vmem:[%s5910_s8 + $0x8] sm:$0xff]  }
 0x436   : > { %4945 = vmatpush3.bf16.msra.mxu0 %v5178_v35 }
 0x437   : > { %5194 = vpow2.f32 %v2179_v36  ;;  %v2160_v37 = vpop.xlane.xlu1 %2159  ;;  %4946 = vmatprep.subr.bf16.mxu0 %v5528_v3 }
 0x438   : > { %v2172_v38 = vsub.f32 %v1987_v19, %v2160_v37 }
 0x43a   : > { %v2185_v39 = vmul.f32 1.442695, %v2172_v38 }
 0x43b   : > { %v2154_v40 = vpop.xlane.xlu1 %2153 }
 0x43c   : > { %5196 = vpow2.f32 %v2185_v39  ;;  %v2170_v41 = vsub.f32 %v1835_v14, %v2154_v40  ;;  %v2163_v42 = vpop.xlane.xlu0 %2162  ;;  %v5179_v39 = vld [vmem:[%s5910_s8] sm:$0xff]  }
 0x43d   : > { %v2173_v43 = vsub.f32 %v2063_v23, %v2163_v42  ;;  %4947 = vmatpush3.bf16.msra.mxu0 %v5179_v39  ;;  %v5180_v39 = vld [vmem:[%s5872_s29 + $0x18] sm:$0xff]  }
 0x43e   : > { %v2181_v44 = vmul.f32 1.442695, %v2170_v41  ;;  %4960 = vmatprep.subr.bf16.mxu0 %v5528_v3  ;;  %4953 = vmatpush3.bf16.msra.mxu1 %v5180_v39 }
 0x43f   : > { %v2187_v45 = vmul.f32 1.442695, %v2173_v43  ;;  %v2145_v46 = vpop.xlane.xlu1 %2144  ;;  %4954 = vmatprep.subr.bf16.mxu1 %v5528_v3 }
 0x440   : > { %v5193_v47 = vpop.eup %5192  ;;  %5198 = vpow2.f32 %v2181_v44  ;;  %v2167_v48 = vsub.f32 %v1607_v7, %v2145_v46  ;;  %v2166_v49 = vpop.xlane.xlu0 %2165 }
 0x441   : > { %5200 = vpow2.f32 %v2187_v45  ;;  %v2174_v50 = vsub.f32 %v2139_v22, %v2166_v49  ;;  %v2194_v51 = vsel %vm942_vm3, %v5193_v47, 0.0 }
 0x442   : > { %v2175_v52 = vmul.f32 1.442695, %v2167_v48  ;;  %2195 = vadd.xlane.f32.xlu1 %v2194_v51 }
 0x443   : > { %v2189_v53 = vmul.f32 1.442695, %v2174_v50 }
 0x444   : > { %v5195_v54 = vpop.eup %5194  ;;  %5202 = vpow2.f32 %v2175_v52  ;;  %v2157_v55 = vpop.xlane.xlu0 %2156 }
 0x445   : > { %5204 = vpow2.f32 %v2189_v53  ;;  %v2171_v56 = vsub.f32 %v1911_v16, %v2157_v55  ;;  %v2197_v57 = vsel %vm942_vm3, %v5195_v54, 0.0 }
 0x446   : > { %2198 = vadd.xlane.f32.xlu1 %v2197_v57 }
 0x447   : > { %v2183_v58 = vmul.f32 1.442695, %v2171_v56 }
 0x449   : > { %v5197_v59 = vpop.eup %5196  ;;  %5206 = vpow2.f32 %v2183_v58 }
 0x44a   : > { %v2206_v60 = vsel %vm942_vm3, %v5197_v59, 0.0 }
 0x44b   : > { %2207 = vadd.xlane.f32.xlu0 %v2206_v60 }
 0x44d   : > { %v6060_v61 = vpop.eup %5198 }
 0x44e   : > { %v6062_v62 = vpop.eup %5200  ;;  %v2200_v63 = vsel %vm942_vm3, %v6060_v61, 0.0 }
 0x44f   : > { %2201 = vadd.xlane.f32.xlu1 %v2200_v63  ;;  %v2209_v0 = vsel %vm942_vm3, %v6062_v62, 0.0 }
 0x450   : > { %2210 = vadd.xlane.f32.xlu0 %v2209_v0 }
 0x451   : > { %v6068_v1 = vpop.eup %5202 }
 0x452   : > { %v6070_v2 = vpop.eup %5204  ;;  %v2191_v4 = vsel %vm942_vm3, %v6068_v1, 0.0 }
 0x453   : > { %2192 = vadd.xlane.f32.xlu1 %v2191_v4  ;;  %v2212_v7 = vsel %vm942_vm3, %v6070_v2, 0.0 }
 0x454   : > { %2213 = vadd.xlane.f32.xlu0 %v2212_v7 }
 0x456   : > { %v6076_v8 = vpop.eup %5206 }
 0x457   : > { %v2203_v9 = vsel %vm942_vm3, %v6076_v8, 0.0 }
 0x458   : > { %2204 = vadd.xlane.f32.xlu0 %v2203_v9 }
 0x4cb   : > { %v2196_v10 = vpop.xlane.xlu1 %2195 }
 0x4cc   : > { %5208 = vrcp.f32 %v2196_v10 }
 0x4cf   : > { %v2199_v11 = vpop.xlane.xlu1 %2198 }
 0x4d0   : > { %5210 = vrcp.f32 %v2199_v11 }
 0x4d4   : > { %v2208_v12 = vpop.xlane.xlu0 %2207 }
 0x4d5   : > { %5212 = vrcp.f32 %v2208_v12 }
 0x4d8   : > { %v2202_v13 = vpop.xlane.xlu1 %2201 }
 0x4d9   : > { %v5209_v14 = vpop.eup %5208  ;;  %5214 = vrcp.f32 %v2202_v13  ;;  %v2211_v15 = vpop.xlane.xlu0 %2210 }
 0x4da   : > { %v2224_v16 = vmul.f32 %v5209_v14, %v2196_v10  ;;  %5216 = vrcp.f32 %v2211_v15 }
 0x4dc   : > { %v2232_v17 = vsub.f32 2.0, %v2224_v16  ;;  %v2193_v18 = vpop.xlane.xlu1 %2192 }
 0x4dd   : > { %v5211_v19 = vpop.eup %5210  ;;  %5218 = vrcp.f32 %v2193_v18  ;;  %v2214_v20 = vpop.xlane.xlu0 %2213 }
 0x4de   : > { %v2240_v21 = vmul.f32 %v5209_v14, %v2232_v17  ;;  %v2225_v22 = vmul.f32 %v5211_v19, %v2199_v11  ;;  %5220 = vrcp.f32 %v2214_v20 }
 0x4e0   : > { %v2233_v23 = vsub.f32 2.0, %v2225_v22  ;;  %v2248_v24 = vmul.f32 %v5193_v47, %v2240_v21 }
 0x4e1   : > { %v2205_v25 = vpop.xlane.xlu0 %2204 }
 0x4e2   : > { %v5213_v26 = vpop.eup %5212  ;;  %v2241_v27 = vmul.f32 %v5211_v19, %v2233_v23  ;;  %5222 = vrcp.f32 %v2205_v25  ;;  %2257 = vrot.lane.b32.xlu1 %v2248_v24, %s5534_s10 }
 0x4e3   : > { %v2228_v28 = vmul.f32 %v5213_v26, %v2208_v12 }
 0x4e4   : > { %v2249_v29 = vmul.f32 %v5195_v54, %v2241_v27 }
 0x4e5   : > { %v2236_v30 = vsub.f32 2.0, %v2228_v28 }
 0x4e6   : > { %v5215_v31 = vpop.eup %5214  ;;  %2263 = vrot.lane.b32.xlu1 %v2249_v29, %s5535_s21 }
 0x4e7   : > { %v5217_v32 = vpop.eup %5216  ;;  %v2244_v33 = vmul.f32 %v5213_v26, %v2236_v30  ;;  %v2226_v34 = vmul.f32 %v5215_v31, %v2202_v13 }
 0x4e8   : > { %v2229_v36 = vmul.f32 %v5217_v32, %v2211_v15  ;;  %v2403_v15 = vsel %vm789_vm2, %v5922_v5, 0.0 }
 0x4e9   : > { %v2234_v37 = vsub.f32 2.0, %v2226_v34  ;;  %v2252_v38 = vmul.f32 %v5197_v59, %v2244_v33 }
 0x4ea   : > { %v5219_v40 = vpop.eup %5218  ;;  %v2237_v41 = vsub.f32 2.0, %v2229_v36 }
 0x4eb   : > { %v5221_v42 = vpop.eup %5220  ;;  %v2242_v43 = vmul.f32 %v5215_v31, %v2234_v37  ;;  %v2223_v44 = vmul.f32 %v5219_v40, %v2193_v18  ;;  %2276 = vrot.lane.b32.xlu0 %v2252_v38, %s5534_s10  ;;  %v2406_v18 = vsel %vm789_vm2, %v5924_v6, 0.0 }
 0x4ec   : > { %v2245_v45 = vmul.f32 %v5217_v32, %v2237_v41  ;;  %v2230_v46 = vmul.f32 %v5221_v42, %v2214_v20  ;;  %v763_v41 = vld [vmem:[#allocation6] sm:$0xff] }
 0x4ed   : > { %v2231_v47 = vsub.f32 2.0, %v2223_v44  ;;  %v2250_v48 = vmul.f32 %v6060_v61, %v2242_v43  ;;  %v5182_v44 = vld [vmem:[%s5877_s25 + $0x18] sm:$0xff]  }
 0x4ee   : > { %v2238_v49 = vsub.f32 2.0, %v2230_v46  ;;  %v2253_v50 = vmul.f32 %v6062_v62, %v2245_v45  ;;  %v5183_v45 = vld [vmem:[%s5877_s25 + $0x10] sm:$0xff]  }
 0x4ef   : > { %v5223_v51 = vpop.eup %5222  ;;  %v2239_v52 = vmul.f32 %v5219_v40, %v2231_v47  ;;  %2269 = vrot.lane.b32.xlu0 %v2250_v48, %s5536_s26  ;;  %v5181_v40 = vld [vmem:[%s5872_s29 + $0x10] sm:$0xff]  }
 0x4f0   : > { %v2246_v53 = vmul.f32 %v5221_v42, %v2238_v49  ;;  %v2227_v54 = vmul.f32 %v5223_v51, %v2205_v25  ;;  %2281 = vrot.lane.b32.xlu1 %v2253_v50, %s5535_s21  ;;  %4955 = vmatpush3.bf16.msra.mxu1 %v5181_v40  ;;  %v764_v42 = vld [vmem:[#allocation6 + $0x8] sm:$0xff] }
 0x4f1   : > { %v2247_v55 = vmul.f32 %v6068_v1, %v2239_v52  ;;  %v2447_v43 = vpack.c.bf16 %v764_v42, %v763_v41  ;;  %4968 = vmatprep.subr.mxu1 %v5528_v3 }
 0x4f2   : > { %v2235_v56 = vsub.f32 2.0, %v2227_v54  ;;  %v2254_v57 = vmul.f32 %v6070_v2, %v2246_v53 }
 0x4f3   : > { %2255 = vst.msk [vmem:[#allocation2] sm:$0xff] %vm942_vm3, %v2247_v55  ;;  %4957 = vmatmul.mubr.msk.bf16.vlgmr.msra.gmra.mxu1 %vm789_vm2, %v2447_v43 }
 0x4f4   : > { %v2243_v58 = vmul.f32 %v5223_v51, %v2235_v56  ;;  %2286 = vrot.lane.b32.xlu1 %v2254_v57, %s5536_s26  ;;  %4970 = vmatprep.mubr.msk.f32.mxu1 %vm5529_vm1, %v5528_v3 }
 0x4f6   : > { %v2251_v59 = vmul.f32 %v6076_v8, %v2243_v58  ;;  %v4670_v8 = vld [vmem:[%s5882_s28] ss:$0 sm:$0xff] }
 0x4f8   : > { %2274 = vst.msk [vmem:[#allocation2 + $0x8] sm:$0xff] %vm942_vm3, %v2251_v59 }
 0x554   : > { %v2258_v60 = vpop.permute.xlu1 %2257 }
 0x555   : > { %2261 = vst.msk [vmem:[#allocation2] sm:$0xff] %vm2260_vm4, %v2258_v60 }
 0x558   : > { %v2264_v61 = vpop.permute.xlu1 %2263 }
 0x559   : > { %2267 = vst.msk [vmem:[#allocation2] sm:$0xff] %vm2266_vm5, %v2264_v61  ;;  %v4674_v61 = vld [vmem:[%s5888_s24] ss:$0 sm:$0xff] }
 0x55d   : > { %v2277_v62 = vpop.permute.xlu0 %2276 }
 0x55e   : > { %2279 = vst.msk [vmem:[#allocation2 + $0x8] sm:$0xff] %vm2260_vm4, %v2277_v62 }
 0x561   : > { %v2270_v63 = vpop.permute.xlu0 %2269 }
 0x562   : > { %2273 = vst.msk [vmem:[#allocation2] sm:$0xff] %vm2272_vm6, %v2270_v63  ;;  %v2282_v0 = vpop.permute.xlu1 %2281 }
 0x563   : > { %2284 = vst.msk [vmem:[#allocation2 + $0x8] sm:$0xff] %vm2266_vm5, %v2282_v0  ;;  %v4676_v0 = vld [vmem:[%s5888_s24 + $0x1] ss:$0 sm:$0xff] }
 0x566   : > { %v2287_v1 = vpop.permute.xlu1 %2286 }
 0x567   : > { %2289 = vst.msk [vmem:[#allocation2 + $0x8] sm:$0xff] %vm2272_vm6, %v2287_v1 }
 0x569   : > { %v2290_v2 = vld [vmem:[#allocation2] sm:$0xff] }
 0x56e   : > { %v2291_v4 = vld [vmem:[#allocation2 + $0x8] sm:$0xff] }
 0x56f   : > { %v2292_v7 = vpack.c.bf16 %v2291_v4, %v2290_v2 }
 0x571   : > { %4949 = vmatmul.mubr.msk.bf16.vlgmr.msra.gmra.mxu0 %vm789_vm2, %v2292_v7  ;;  %v4677_v7 = vld [vmem:[%s5893_s2 + $0x1] ss:$0 sm:$0xff] }
 0x572   : > { %4964 = vmatprep.mubr.msk.bf16.mxu0 %vm5529_vm1, %v5528_v3  ;;  %4961 = vmatpush3.bf16.msra.mxu0 %v5182_v44 }
 0x573   : > { %4962 = vmatprep.subr.bf16.mxu0 %v5528_v3 }
 0x576   : > { %4963 = vmatpush3.bf16.msra.mxu0 %v5183_v45 }
 0x577   : > { %4978 = vmatprep.subr.mxu0 %v5528_v3 }
 0x631   : > { %v2353_v9 = vpop.f32.mrf.mxu0 }
 0x632   : > { %v6107_v10 = vadd.f32 %v4670_v8, %v2353_v9  ;;  %v4675_v9 = vld [vmem:[%s5893_s2] ss:$0 sm:$0xff] }
 0x633   : > { %v4950_v11 = vpop.f32.mrf.mxu0 }
 0x634   : > { %v2360_v12 = vsel %vm789_vm2, %v6107_v10, 0.0 }
 0x635   : > { %2361 = vadd.xlane.f32.xlu0 %v2360_v12  ;;  %v2356_v13 = vpop.f32.mrf.mxu0 }
 0x636   : > { %v6111_v14 = vadd.f32 %v4670_v8, %v2356_v13 }
 0x637   : > { %v4951_v16 = vpop.f32.mrf.mxu0 }
 0x638   : > { %v2363_v17 = vsel %vm789_vm2, %v6111_v14, 0.0 }
 0x639   : > { %2404 = vadd.xlane.f32.xlu0 %v2403_v15  ;;  %2364 = vadd.xlane.f32.xlu1 %v2363_v17 }
 0x63d   : > { %2407 = vadd.xlane.f32.xlu0 %v2406_v18 }
 0x6be   : > { %v2362_v19 = vpop.xlane.xlu0 %2361 }
 0x6bf   : > { %v2367_v20 = vmul.f32 0.03125, %v2362_v19 }
 0x6c1   : > { %v2369_v21 = vsub.f32 %v6107_v10, %v2367_v20 }
 0x6c2   : > { %v2405_v22 = vpop.xlane.xlu0 %2404  ;;  %v2365_v23 = vpop.xlane.xlu1 %2364 }
 0x6c3   : > { %v2409_v24 = vmul.f32 0.03125, %v2405_v22  ;;  %v2368_v25 = vmul.f32 0.03125, %v2365_v23  ;;  %v2371_v26 = vmul.f32 %v2369_v21, %v2369_v21 }
 0x6c5   : > { %v2411_v27 = vsub.f32 %v5922_v5, %v2409_v24  ;;  %v2370_v28 = vsub.f32 %v6111_v14, %v2368_v25  ;;  %v2373_v29 = vsel %vm789_vm2, %v2371_v26, 0.0  ;;  %v2510_v26 = vpop.f32.mrf.mxu1 }
 0x6c6   : > { %v2408_v30 = vpop.xlane.xlu0 %2407  ;;  %2374 = vadd.xlane.f32.xlu1 %v2373_v29 }
 0x6c7   : > { %v2410_v31 = vmul.f32 0.03125, %v2408_v30  ;;  %v2413_v32 = vmul.f32 %v2411_v27, %v2411_v27  ;;  %v2372_v33 = vmul.f32 %v2370_v28, %v2370_v28  ;;  %v4692_v30 = vld [vmem:[%s5908_s19 + $0x1] ss:$0 sm:$0xff] }
 0x6c9   : > { %v2412_v34 = vsub.f32 %v5924_v6, %v2410_v31  ;;  %v2415_v35 = vsel %vm789_vm2, %v2413_v32, 0.0  ;;  %v2376_v36 = vsel %vm789_vm2, %v2372_v33, 0.0 }
 0x6ca   : > { %2416 = vadd.xlane.f32.xlu1 %v2415_v35  ;;  %2377 = vadd.xlane.f32.xlu0 %v2376_v36 }
 0x6cb   : > { %v2414_v37 = vmul.f32 %v2412_v34, %v2412_v34 }
 0x6cd   : > { %v2418_v38 = vsel %vm789_vm2, %v2414_v37, 0.0 }
 0x6ce   : > { %2419 = vadd.xlane.f32.xlu0 %v2418_v38 }
 0x74f   : > { %v2375_v46 = vpop.xlane.xlu1 %2374 }
 0x750   : > { %v2379_v47 = vmul.f32 0.03125, %v2375_v46 }
 0x752   : > { %v2381_v48 = vadd.f32 1e-05, %v2379_v47 }
 0x753   : > { %v2378_v49 = vpop.xlane.xlu0 %2377  ;;  %v2417_v50 = vpop.xlane.xlu1 %2416 }
 0x754   : > { %5224 = vrsqrt.f32 %v2381_v48  ;;  %v2380_v51 = vmul.f32 0.03125, %v2378_v49  ;;  %v2421_v52 = vmul.f32 0.03125, %v2417_v50 }
 0x756   : > { %v2382_v53 = vadd.f32 1e-05, %v2380_v51  ;;  %v2423_v54 = vadd.f32 1e-05, %v2421_v52 }
 0x757   : > { %v2420_v55 = vpop.xlane.xlu0 %2419 }
 0x758   : > { %5226 = vrsqrt.f32 %v2382_v53  ;;  %v2422_v56 = vmul.f32 0.03125, %v2420_v55 }
 0x759   : > { %5228 = vrsqrt.f32 %v2423_v54 }
 0x75a   : > { %v2424_v57 = vadd.f32 1e-05, %v2422_v56 }
 0x75c   : > { %5230 = vrsqrt.f32 %v2424_v57 }
 0x761   : > { %v5225_v58 = vpop.eup %5224 }
 0x762   : > { %v2385_v59 = vmul.f32 %v5225_v58, %v2369_v21 }
 0x764   : > { %v2392_v2 = vmul.f32 %v4674_v61, %v2385_v59 }
 0x765   : > { %v5227_v60 = vpop.eup %5226 }
 0x766   : > { %v5229_v62 = vpop.eup %5228  ;;  %v2386_v63 = vmul.f32 %v5227_v60, %v2370_v28  ;;  %v2399_v15 = vadd.f32 %v4675_v9, %v2392_v2 }
 0x767   : > { %v2427_v1 = vmul.f32 %v5229_v62, %v2411_v27  ;;  %v4958_v27 = vpop.f32.mrf.mxu1 }
 0x768   : > { %v2393_v4 = vmul.f32 %v4674_v61, %v2386_v63  ;;  %v2401_v20 = vadd.f32 %v2399_v15, %v6107_v10 }
 0x769   : > { %v5231_v8 = vpop.eup %5230  ;;  %v2434_v11 = vmul.f32 %v4676_v0, %v2427_v1  ;;  %v2513_v28 = vpop.f32.mrf.mxu1 }
 0x76a   : > { %v2428_v12 = vmul.f32 %v5231_v8, %v2412_v34  ;;  %v2400_v16 = vadd.f32 %v4675_v9, %v2393_v4 }
 0x76b   : > { %v2441_v13 = vadd.f32 %v4677_v7, %v2434_v11  ;;  %v4959_v29 = vpop.f32.mrf.mxu1 }
 0x76c   : > { %v2435_v17 = vmul.f32 %v4676_v0, %v2428_v12  ;;  %v2402_v21 = vadd.f32 %v2400_v16, %v6111_v14 }
 0x76d   : > { %v2443_v18 = vadd.f32 %v2441_v13, %v5922_v5  ;;  %v4683_v5 = vld [vmem:[%s5857_s14 + $0x1] ss:$0 sm:$0xff] }
 0x76e   : > { %v2442_v19 = vadd.f32 %v4677_v7, %v2435_v17  ;;  %v2511_v10 = vadd.f32 %v4683_v5, %v2510_v26 }
 0x76f   : > { %v6146_v23 = vadd.f32 %v2443_v18, %v2401_v20 }
 0x770   : > { %v2444_v22 = vadd.f32 %v2442_v19, %v5924_v6  ;;  %v2587_v14 = vmul.f32 0.35355338, %v2511_v10  ;;  %v6156_v6 = vadd.f32 %v4683_v5, %v2513_v28 }
 0x772   : > { %v6148_v24 = vadd.f32 %v2444_v22, %v2402_v21  ;;  %2590 = vrot.lane.b32.xlu0 %v2587_v14, %s5531_s5  ;;  %2594 = vrot.lane.b32.xlu1 %v2587_v14, %s5530_s3  ;;  %v2588_v37 = vmul.f32 0.35355338, %v6156_v6 }
 0x774   : > { %v2517_v25 = vpack.c.bf16 %v6148_v24, %v6146_v23 }
 0x776   : > { %4965 = vmatmul.mubr.msk.bf16.vlgmr.msra.gmra.mxu0 %vm789_vm2, %v2517_v25  ;;  %2592 = vrot.lane.b32.xlu0 %v2587_v14, %s5532_s6 }
 0x777   : > { %4980 = vmatprep.mubr.msk.f32.mxu0 %vm5529_vm1, %v5528_v3 }
 0x7e4   : > { %v2591_v38 = vpop.permute.xlu0 %2590  ;;  %v2595_v39 = vpop.permute.xlu1 %2594 }
 0x7e8   : > { %v2593_v40 = vpop.permute.xlu0 %2592 }
 0x836   : > { %v2580_v31 = vpop.f32.mrf.mxu0 }
 0x837   : > { %v2581_v32 = vadd.f32 %v4692_v30, %v2580_v31 }
 0x838   : > { %v4966_v33 = vpop.f32.mrf.mxu0 }
 0x839   : > { %4969 = vmatpush3.xpose.msk.msra.mxu1 %vm942_vm3, %v2581_v32  ;;  %2604 = vrot.lane.b32.xlu1 %v2581_v32, %s5531_s5 }
 0x83a   : > { %v2583_v34 = vpop.f32.mrf.mxu0  ;;  %4973 = vmatprep.subr.mxu1 %v5528_v3 }
 0x83b   : > { %v2584_v35 = vadd.f32 %v4692_v30, %v2583_v34 }
 0x83c   : > { %v4967_v36 = vpop.f32.mrf.mxu0  ;;  %4971 = vmatmul.mubr.msk.f32.vlgmr.msra.gmra.mxu1 %vm942_vm3, %v2587_v14 }
 0x83d   : > { %2606 = vrot.lane.b32.xlu1 %v2581_v32, %s5532_s6  ;;  %2611 = vrot.lane.b32.xlu0 %v2584_v35, %s5531_s5 }
 0x83e   : > { %4975 = vmatprep.mubr.msk.f32.mxu1 %vm5529_vm1, %v5528_v3 }
 0x841   : > { %2608 = vrot.lane.b32.xlu1 %v2581_v32, %s5530_s3  ;;  %2613 = vrot.lane.b32.xlu0 %v2584_v35, %s5532_s6 }
 0x845   : > { %2599 = vrot.lane.b32.xlu0 %v2588_v37, %s5532_s6  ;;  %2597 = vrot.lane.b32.xlu1 %v2588_v37, %s5531_s5 }
 0x849   : > { %2618 = vrot.lane.b32.xlu0 %v2511_v10, %s5531_s5  ;;  %2615 = vrot.lane.b32.xlu1 %v2584_v35, %s5530_s3 }
 0x84d   : > { %2622 = vrot.lane.b32.xlu0 %v2511_v10, %s5530_s3  ;;  %2601 = vrot.lane.b32.xlu1 %v2588_v37, %s5530_s3 }
 0x851   : > { %2627 = vrot.lane.b32.xlu0 %v6156_v6, %s5532_s6  ;;  %2620 = vrot.lane.b32.xlu1 %v2511_v10, %s5532_s6 }
 0x855   : > { %3223 = vrot.lane.b32.xlu0 %v2511_v10, %s5533_s7  ;;  %2625 = vrot.lane.b32.xlu1 %v6156_v6, %s5531_s5 }
 0x859   : > { %2629 = vrot.lane.b32.xlu1 %v6156_v6, %s5530_s3 }
 0x8ab   : > { %v2605_v41 = vpop.permute.xlu1 %2604 }
 0x8ac   : > { %4974 = vmatpush3.xpose.msk.msra.mxu1 %vm942_vm3, %v2605_v41 }
 0x8ad   : > { %4983 = vmatprep.subr.mxu1 %v5528_v3 }
 0x8af   : > { %v2607_v42 = vpop.permute.xlu1 %2606  ;;  %v2612_v43 = vpop.permute.xlu0 %2611  ;;  %4976 = vmatmul.mubr.msk.f32.vlgmr.msra.gmra.mxu1 %vm942_vm3, %v2591_v38 }
 0x8b0   : > { %4979 = vmatpush3.xpose.msk.msra.mxu0 %vm942_vm3, %v2607_v42  ;;  %4985 = vmatprep.mubr.msk.f32.mxu1 %vm5529_vm1, %v5528_v3 }
 0x8b1   : > { %4988 = vmatprep.subr.mxu0 %v5528_v3 }
 0x8b3   : > { %v2609_v44 = vpop.permute.xlu1 %2608  ;;  %4981 = vmatmul.mubr.msk.f32.vlgmr.msra.gmra.mxu0 %vm942_vm3, %v2593_v40  ;;  %v2614_v45 = vpop.permute.xlu0 %2613 }
 0x8b4   : > { %4984 = vmatpush3.xpose.msk.msra.mxu1 %vm942_vm3, %v2609_v44  ;;  %4989 = vmatpush3.xpose.msk.msra.mxu0 %vm942_vm3, %v2584_v35 }
 0x8b5   : > { %4990 = vmatprep.mubr.msk.f32.mxu0 %vm5529_vm1, %v5528_v3  ;;  %4993 = vmatprep.subr.mxu1 %v5528_v3 }
 0x8b6   : > { %4998 = vmatprep.subr.mxu0 %v5528_v3 }
 0x8b7   : > { %4986 = vmatmul.mubr.msk.f32.vlgmr.msra.gmra.mxu1 %vm942_vm3, %v2595_v39  ;;  %v2600_v46 = vpop.permute.xlu0 %2599  ;;  %v2598_v47 = vpop.permute.xlu1 %2597  ;;  %4991 = vmatmul.mubr.msk.f32.vlgmr.msra.gmra.mxu0 %vm942_vm3, %v2588_v37 }
 0x8b8   : > { %4994 = vmatpush3.xpose.msk.msra.mxu1 %vm942_vm3, %v2612_v43  ;;  %4999 = vmatpush3.xpose.msk.msra.mxu0 %vm942_vm3, %v2614_v45 }
 0x8b9   : > { %4995 = vmatprep.mubr.msk.f32.mxu1 %vm5529_vm1, %v5528_v3  ;;  %5000 = vmatprep.mubr.msk.f32.mxu0 %vm5529_vm1, %v5528_v3 }
 0x8ba   : > { %5003 = vmatprep.subr.mxu1 %v5528_v3  ;;  %5008 = vmatprep.subr.mxu0 %v5528_v3 }
 0x8bb   : > { %v2619_v48 = vpop.permute.xlu0 %2618  ;;  %4996 = vmatmul.mubr.msk.f32.vlgmr.msra.gmra.mxu1 %vm942_vm3, %v2598_v47  ;;  %v2616_v49 = vpop.permute.xlu1 %2615  ;;  %5001 = vmatmul.mubr.msk.f32.vlgmr.msra.gmra.mxu0 %vm942_vm3, %v2600_v46 }
 0x8bc   : > { %3299 = vrot.lane.b32.xlu1 %v2619_v48, %s5533_s7  ;;  %5004 = vmatpush3.xpose.msk.msra.mxu1 %vm942_vm3, %v2616_v49 }
 0x8bd   : > { %5005 = vmatprep.mubr.msk.f32.mxu1 %vm5529_vm1, %v5528_v3  ;;  %5010 = vmatprep.mubr.msk.f32.mxu0 %vm5529_vm1, %v5528_v3 }
 0x8be   : > { %5013 = vmatprep.subr.mxu1 %v5528_v3 }
 0x8bf   : > { %v2623_v50 = vpop.permute.xlu0 %2622  ;;  %v2602_v51 = vpop.permute.xlu1 %2601 }
 0x8c0   : > { %3451 = vrot.lane.b32.xlu1 %v2623_v50, %s5533_s7  ;;  %5006 = vmatmul.mubr.msk.f32.vlgmr.msra.gmra.mxu1 %vm942_vm3, %v2602_v51 }
 0x8c1   : > { %5015 = vmatprep.mubr.msk.f32.mxu1 %vm5529_vm1, %v5528_v3 }
 0x8c3   : > { %v2628_v52 = vpop.permute.xlu0 %2627  ;;  %v2621_v53 = vpop.permute.xlu1 %2620 }
 0x8c4   : > { %3375 = vrot.lane.b32.xlu0 %v2621_v53, %s5533_s7 }
 0x8c7   : > { %v3224_v54 = vpop.permute.xlu0 %3223  ;;  %v2626_v55 = vpop.permute.xlu1 %2625 }
 0x8c8   : > { %3527 = vrot.lane.b32.xlu0 %v6156_v6, %s5533_s7  ;;  %3603 = vrot.lane.b32.xlu1 %v2626_v55, %s5533_s7 }
 0x8c9   : > { %5009 = vmatpush3.msra.mxu0 %v3224_v54 }
 0x8ca   : > { %5018 = vmatprep.subr.mxu0 %v5528_v3 }
 0x8cb   : > { %v2630_v56 = vpop.permute.xlu1 %2629 }
 0x8cc   : > { %3679 = vrot.lane.b32.xlu0 %v2628_v52, %s5533_s7  ;;  %3755 = vrot.lane.b32.xlu1 %v2630_v56, %s5533_s7 }
 0x8fc   : > { %v2701_v57 = vpop.f32.mrf.mxu1 }
 0x8fd   : > { %5011 = vmatmul.mubr.msk.f32.vlgmr.msra.gmra.mxu0 %vm942_vm3, %v2701_v57 }
 0x8fe   : > { %v4972_v58 = vpop.f32.mrf.mxu1  ;;  %5020 = vmatprep.mubr.msk.f32.mxu0 %vm5529_vm1, %v5528_v3 }
 0x92e   : > { %v3300_v59 = vpop.permute.xlu1 %3299 }
 0x92f   : > { %5014 = vmatpush3.msra.mxu1 %v3300_v59 }
 0x930   : > { %5023 = vmatprep.subr.mxu1 %v5528_v3 }
 0x932   : > { %v3452_v62 = vpop.permute.xlu1 %3451 }
 0x936   : > { %v3376_v60 = vpop.permute.xlu0 %3375 }
 0x937   : > { %5019 = vmatpush3.msra.mxu0 %v3376_v60 }
 0x938   : > { %5028 = vmatprep.subr.mxu0 %v5528_v3 }
 0x93a   : > { %v3528_v0 = vpop.permute.xlu0 %3527  ;;  %v3604_v4 = vpop.permute.xlu1 %3603 }
 0x93e   : > { %v3680_v9 = vpop.permute.xlu0 %3679  ;;  %v3756_v16 = vpop.permute.xlu1 %3755 }
 0x96f   : > { %v2775_v61 = vpop.f32.mrf.mxu1 }
 0x970   : > { %5016 = vmatmul.mubr.msk.f32.vlgmr.msra.gmra.mxu1 %vm942_vm3, %v2775_v61 }
 0x971   : > { %5024 = vmatpush3.msra.mxu1 %v3452_v62  ;;  %v4977_v63 = vpop.f32.mrf.mxu1  ;;  %5025 = vmatprep.mubr.msk.f32.mxu1 %vm5529_vm1, %v5528_v3 }
 0x972   : > { %5033 = vmatprep.subr.mxu1 %v5528_v3 }
 0x973   : > { %v2849_v1 = vpop.f32.mrf.mxu0 }
 0x974   : > { %5021 = vmatmul.mubr.msk.f32.vlgmr.msra.gmra.mxu0 %vm942_vm3, %v2849_v1 }
 0x975   : > { %5029 = vmatpush3.msra.mxu0 %v3528_v0  ;;  %v4982_v2 = vpop.f32.mrf.mxu0  ;;  %5030 = vmatprep.mubr.msk.f32.mxu0 %vm5529_vm1, %v5528_v3 }
 0x976   : > { %5038 = vmatprep.subr.mxu0 %v5528_v3 }
 0x977   : > { %v2923_v7 = vpop.f32.mrf.mxu1  ;;  %v2997_v8 = vpop.f32.mrf.mxu0 }
 0x978   : > { %5026 = vmatmul.mubr.msk.f32.vlgmr.msra.gmra.mxu1 %vm942_vm3, %v2923_v7  ;;  %5031 = vmatmul.mubr.msk.f32.vlgmr.msra.gmra.mxu0 %vm942_vm3, %v2997_v8 }
 0x979   : > { %5034 = vmatpush3.msra.mxu1 %v3604_v4  ;;  %5039 = vmatpush3.msra.mxu0 %v3680_v9  ;;  %v4987_v11 = vpop.f32.mrf.mxu1  ;;  %v4992_v12 = vpop.f32.mrf.mxu0 }
 0x97a   : > { %5035 = vmatprep.mubr.msk.f32.mxu1 %vm5529_vm1, %v5528_v3  ;;  %5040 = vmatprep.mubr.msk.f32.mxu0 %vm5529_vm1, %v5528_v3 }
 0x97b   : > { %v3071_v13 = vpop.f32.mrf.mxu1  ;;  %v3145_v15 = vpop.f32.mrf.mxu0  ;;  %5043 = vmatprep.subr.mxu1 %v5528_v3  ;;  %5048 = vmatprep.subr.bf16.mxu0 %v5528_v3 }
 0x97c   : > { %5036 = vmatmul.mubr.msk.f32.vlgmr.msra.gmra.mxu1 %vm942_vm3, %v3071_v13  ;;  %5041 = vmatmul.mubr.msk.f32.vlgmr.msra.gmra.mxu0 %vm942_vm3, %v3145_v15 }
 0x97d   : > { %5044 = vmatpush3.msra.mxu1 %v3756_v16  ;;  %v4997_v17 = vpop.f32.mrf.mxu1  ;;  %v5002_v18 = vpop.f32.mrf.mxu0  ;;  %5045 = vmatprep.mubr.msk.f32.mxu1 %vm5529_vm1, %v5528_v3 }
 0x97e   : > { %5052 = vmatprep.mubr.msk.bf16.mxu0 %vm5529_vm1, %v5528_v3  ;;  %5056 = vmatprep.subr.bf16.mxu1 %v5528_v3 }
 0x980   : > { %v3219_v19 = vpop.f32.mrf.mxu1 }
 0x981   : > { %5046 = vmatmul.mubr.msk.f32.vlgmr.msra.gmra.mxu1 %vm942_vm3, %v3219_v19 }
 0x982   : > { %v5007_v20 = vpop.f32.mrf.mxu1  ;;  %5060 = vmatprep.mubr.msk.bf16.mxu1 %vm5529_vm1, %v5528_v3 }
 0x9bd   : > { %v6262_v21 = vpop.f32.mrf.mxu0 }
 0x9be   : > { %v3831_v41 = vsel %vm942_vm3, %v6262_v21, -inf }
 0x9bf   : > { %v5012_v22 = vpop.f32.mrf.mxu0 }
 0xa30   : > { %v3371_v25 = vpop.f32.mrf.mxu1 }
 0xa31   : > { %v3834_v5 = vsel %vm942_vm3, %v3371_v25, -inf }
 0xa32   : > { %3835 = vmax.xlane.f32.xlu0 %v3834_v5  ;;  %v5017_v26 = vpop.f32.mrf.mxu1 }
 0xa34   : > { %v3447_v10 = vpop.f32.mrf.mxu0 }
 0xa35   : > { %v3837_v27 = vsel %vm942_vm3, %v3447_v10, -inf }
 0xa36   : > { %v5022_v14 = vpop.f32.mrf.mxu0  ;;  %3838 = vmax.xlane.f32.xlu0 %v3837_v27 }
 0xa38   : > { %v3523_v28 = vpop.f32.mrf.mxu1  ;;  %v3599_v6 = vpop.f32.mrf.mxu0 }
 0xa39   : > { %v3840_v38 = vsel %vm942_vm3, %v3523_v28, -inf  ;;  %v3843_v42 = vsel %vm942_vm3, %v3599_v6, -inf }
 0xa3a   : > { %v5027_v29 = vpop.f32.mrf.mxu1  ;;  %v5032_v30 = vpop.f32.mrf.mxu0 }
 0xa3c   : > { %v3675_v31 = vpop.f32.mrf.mxu1  ;;  %v3751_v32 = vpop.f32.mrf.mxu0 }
 0xa3d   : > { %v3849_v33 = vsel %vm942_vm3, %v3751_v32, -inf  ;;  %v3846_v34 = vsel %vm942_vm3, %v3675_v31, -inf }
 0xa3e   : > { %v5042_v35 = vpop.f32.mrf.mxu0  ;;  %3850 = vmax.xlane.f32.xlu0 %v3849_v33  ;;  %3847 = vmax.xlane.f32.xlu1 %v3846_v34  ;;  %v5037_v36 = vpop.f32.mrf.mxu1 }
 0xa41   : > { %v3827_v37 = vpop.f32.mrf.mxu1 }
 0xa42   : > { %3841 = vmax.xlane.f32.xlu1 %v3840_v38  ;;  %v3852_v39 = vsel %vm942_vm3, %v3827_v37, -inf }
 0xa43   : > { %3853 = vmax.xlane.f32.xlu0 %v3852_v39  ;;  %v5047_v40 = vpop.f32.mrf.mxu1 }
 0xa46   : > { %3832 = vmax.xlane.f32.xlu1 %v3831_v41 }
 0xa47   : > { %3844 = vmax.xlane.f32.xlu0 %v3843_v42 }
 0xabb   : > { %v3836_v43 = vpop.xlane.xlu0 %3835 }
 0xabc   : > { %v3856_v44 = vsub.f32 %v3371_v25, %v3836_v43 }
 0xabe   : > { %v3865_v45 = vmul.f32 1.442695, %v3856_v44 }
 0xabf   : > { %v3839_v46 = vpop.xlane.xlu0 %3838 }
 0xac0   : > { %5232 = vpow2.f32 %v3865_v45  ;;  %v3857_v47 = vsub.f32 %v3447_v10, %v3839_v46  ;;  %v5184_v46 = vld [vmem:[%s5910_s8 + $0x18] sm:$0xff]  }
 0xac1   : > { %5049 = vmatpush3.bf16.msra.mxu0 %v5184_v46 }
 0xac2   : > { %v3867_v48 = vmul.f32 1.442695, %v3857_v47  ;;  %5050 = vmatprep.subr.bf16.mxu0 %v5528_v3 }
 0xac4   : > { %5234 = vpow2.f32 %v3867_v48 }
 0xac7   : > { %v3851_v49 = vpop.xlane.xlu0 %3850  ;;  %v3848_v50 = vpop.xlane.xlu1 %3847 }
 0xac8   : > { %v3861_v51 = vsub.f32 %v3751_v32, %v3851_v49  ;;  %v3860_v52 = vsub.f32 %v3675_v31, %v3848_v50  ;;  %v5185_v50 = vld [vmem:[%s5910_s8 + $0x10] sm:$0xff]  }
 0xac9   : > { %5051 = vmatpush3.bf16.msra.mxu0 %v5185_v50 }
 0xaca   : > { %v3873_v53 = vmul.f32 1.442695, %v3860_v52  ;;  %v3875_v54 = vmul.f32 1.442695, %v3861_v51  ;;  %5064 = vmatprep.subr.bf16.mxu0 %v5528_v3 }
 0xacb   : > { %v3842_v55 = vpop.xlane.xlu1 %3841 }
 0xacc   : > { %v3858_v56 = vsub.f32 %v3523_v28, %v3842_v55  ;;  %v3854_v57 = vpop.xlane.xlu0 %3853  ;;  %5236 = vpow2.f32 %v3873_v53 }
 0xacd   : > { %v5233_v58 = vpop.eup %5232  ;;  %v3862_v59 = vsub.f32 %v3827_v37, %v3854_v57  ;;  %5238 = vpow2.f32 %v3875_v54 }
 0xace   : > { %v3869_v60 = vmul.f32 1.442695, %v3858_v56  ;;  %v3882_v61 = vsel %vm942_vm3, %v5233_v58, 0.0 }
 0xacf   : > { %v3877_v62 = vmul.f32 1.442695, %v3862_v59  ;;  %3883 = vadd.xlane.f32.xlu1 %v3882_v61  ;;  %v3833_v63 = vpop.xlane.xlu1 %3832 }
 0xad0   : > { %5240 = vpow2.f32 %v3869_v60  ;;  %v3855_v0 = vsub.f32 %v6262_v21, %v3833_v63  ;;  %v3845_v1 = vpop.xlane.xlu0 %3844 }
 0xad1   : > { %v5235_v2 = vpop.eup %5234  ;;  %v3859_v4 = vsub.f32 %v3599_v6, %v3845_v1  ;;  %5242 = vpow2.f32 %v3877_v62 }
 0xad2   : > { %v3863_v7 = vmul.f32 1.442695, %v3855_v0  ;;  %v3885_v8 = vsel %vm942_vm3, %v5235_v2, 0.0 }
 0xad3   : > { %v3871_v9 = vmul.f32 1.442695, %v3859_v4  ;;  %3886 = vadd.xlane.f32.xlu1 %v3885_v8 }
 0xad4   : > { %5244 = vpow2.f32 %v3863_v7 }
 0xad5   : > { %5246 = vpow2.f32 %v3871_v9 }
 0xad9   : > { %v5237_v11 = vpop.eup %5236 }
 0xada   : > { %v3894_v12 = vsel %vm942_vm3, %v5237_v11, 0.0  ;;  %v6277_v13 = vpop.eup %5238 }
 0xadb   : > { %3895 = vadd.xlane.f32.xlu0 %v3894_v12  ;;  %v3897_v17 = vsel %vm942_vm3, %v6277_v13, 0.0  ;;  %v4047_v12 = vsel %vm789_vm2, %v6146_v23, 0.0 }
 0xadd   : > { %v6279_v15 = vpop.eup %5240 }
 0xade   : > { %v3888_v16 = vsel %vm942_vm3, %v6279_v15, 0.0  ;;  %v6285_v18 = vpop.eup %5242 }
 0xadf   : > { %3889 = vadd.xlane.f32.xlu1 %v3888_v16  ;;  %3898 = vadd.xlane.f32.xlu0 %v3897_v17  ;;  %v3900_v21 = vsel %vm942_vm3, %v6285_v18, 0.0 }
 0xae1   : > { %v6287_v19 = vpop.eup %5244 }
 0xae2   : > { %v3879_v20 = vsel %vm942_vm3, %v6287_v19, 0.0  ;;  %v6293_v22 = vpop.eup %5246 }
 0xae3   : > { %3880 = vadd.xlane.f32.xlu1 %v3879_v20  ;;  %3901 = vadd.xlane.f32.xlu0 %v3900_v21  ;;  %v3891_v25 = vsel %vm942_vm3, %v6293_v22, 0.0 }
 0xae7   : > { %3892 = vadd.xlane.f32.xlu0 %v3891_v25 }
 0xb58   : > { %v3884_v5 = vpop.xlane.xlu1 %3883 }
 0xb59   : > { %5248 = vrcp.f32 %v3884_v5 }
 0xb5c   : > { %v3887_v26 = vpop.xlane.xlu1 %3886 }
 0xb5d   : > { %5250 = vrcp.f32 %v3887_v26 }
 0xb64   : > { %v3896_v10 = vpop.xlane.xlu0 %3895 }
 0xb65   : > { %5252 = vrcp.f32 %v3896_v10 }
 0xb66   : > { %v5249_v27 = vpop.eup %5248 }
 0xb67   : > { %v3912_v14 = vmul.f32 %v5249_v27, %v3884_v5 }
 0xb68   : > { %v3890_v28 = vpop.xlane.xlu1 %3889  ;;  %v3899_v29 = vpop.xlane.xlu0 %3898 }
 0xb69   : > { %v3920_v6 = vsub.f32 2.0, %v3912_v14  ;;  %5254 = vrcp.f32 %v3890_v28 }
 0xb6a   : > { %v5251_v30 = vpop.eup %5250  ;;  %5256 = vrcp.f32 %v3899_v29 }
 0xb6b   : > { %v3928_v31 = vmul.f32 %v5249_v27, %v3920_v6  ;;  %v3913_v32 = vmul.f32 %v5251_v30, %v3887_v26  ;;  %v4725_v6 = vld [vmem:[%s5882_s28 + $0x1] ss:$0 sm:$0xff] }
 0xb6c   : > { %v3881_v33 = vpop.xlane.xlu1 %3880  ;;  %v3902_v35 = vpop.xlane.xlu0 %3901 }
 0xb6d   : > { %v3921_v34 = vsub.f32 2.0, %v3913_v32  ;;  %5258 = vrcp.f32 %v3881_v33  ;;  %v3936_v36 = vmul.f32 %v5233_v58, %v3928_v31 }
 0xb6e   : > { %5260 = vrcp.f32 %v3902_v35 }
 0xb6f   : > { %v3929_v37 = vmul.f32 %v5251_v30, %v3921_v34  ;;  %3945 = vrot.lane.b32.xlu1 %v3936_v36, %s5534_s10 }
 0xb70   : > { %v3893_v39 = vpop.xlane.xlu0 %3892 }
 0xb71   : > { %v3937_v38 = vmul.f32 %v5235_v2, %v3929_v37  ;;  %5262 = vrcp.f32 %v3893_v39 }
 0xb72   : > { %v5253_v40 = vpop.eup %5252 }
 0xb73   : > { %3950 = vrot.lane.b32.xlu1 %v3937_v38, %s5535_s21  ;;  %v3916_v41 = vmul.f32 %v5253_v40, %v3896_v10 }
 0xb75   : > { %v3924_v43 = vsub.f32 2.0, %v3916_v41 }
 0xb76   : > { %v5255_v42 = vpop.eup %5254 }
 0xb77   : > { %v5257_v44 = vpop.eup %5256  ;;  %v3914_v45 = vmul.f32 %v5255_v42, %v3890_v28  ;;  %v3932_v47 = vmul.f32 %v5253_v40, %v3924_v43 }
 0xb78   : > { %v3917_v48 = vmul.f32 %v5257_v44, %v3899_v29 }
 0xb79   : > { %v3922_v49 = vsub.f32 2.0, %v3914_v45  ;;  %v3940_v52 = vmul.f32 %v5237_v11, %v3932_v47 }
 0xb7a   : > { %v5259_v51 = vpop.eup %5258  ;;  %v3925_v53 = vsub.f32 2.0, %v3917_v48 }
 0xb7b   : > { %v5261_v54 = vpop.eup %5260  ;;  %v3930_v55 = vmul.f32 %v5255_v42, %v3922_v49  ;;  %v3911_v56 = vmul.f32 %v5259_v51, %v3881_v33  ;;  %3961 = vrot.lane.b32.xlu0 %v3940_v52, %s5534_s10  ;;  %v5187_v52 = vld [vmem:[%s5912_s1] sm:$0xff]  }
 0xb7c   : > { %v3933_v57 = vmul.f32 %v5257_v44, %v3925_v53  ;;  %v3918_v58 = vmul.f32 %v5261_v54, %v3902_v35 }
 0xb7d   : > { %v3938_v59 = vmul.f32 %v6279_v15, %v3930_v55  ;;  %v3919_v60 = vsub.f32 2.0, %v3911_v56 }
 0xb7e   : > { %v3941_v61 = vmul.f32 %v6277_v13, %v3933_v57  ;;  %v3926_v62 = vsub.f32 2.0, %v3918_v58  ;;  %v5263_v63 = vpop.eup %5262  ;;  %v4050_v13 = vsel %vm789_vm2, %v6148_v24, 0.0 }
 0xb7f   : > { %v3927_v0 = vmul.f32 %v5259_v51, %v3919_v60  ;;  %v3915_v2 = vmul.f32 %v5263_v63, %v3893_v39  ;;  %3955 = vrot.lane.b32.xlu0 %v3938_v59, %s5536_s26  ;;  %v5186_v51 = vld [vmem:[%s5912_s1 + $0x8] sm:$0xff]  }
 0xb80   : > { %v3934_v1 = vmul.f32 %v5261_v54, %v3926_v62  ;;  %3966 = vrot.lane.b32.xlu1 %v3941_v61, %s5535_s21  ;;  %5057 = vmatpush3.bf16.msra.mxu1 %v5186_v51 }
 0xb81   : > { %v3935_v4 = vmul.f32 %v6287_v19, %v3927_v0  ;;  %v3923_v8 = vsub.f32 2.0, %v3915_v2  ;;  %5058 = vmatprep.subr.bf16.mxu1 %v5528_v3 }
 0xb82   : > { %v3942_v7 = vmul.f32 %v6285_v18, %v3934_v1 }
 0xb83   : > { %3943 = vst.msk [vmem:[#allocation2] sm:$0xff] %vm942_vm3, %v3935_v4  ;;  %v3931_v9 = vmul.f32 %v5263_v63, %v3923_v8 }
 0xb84   : > { %3971 = vrot.lane.b32.xlu1 %v3942_v7, %s5536_s26  ;;  %5059 = vmatpush3.bf16.msra.mxu1 %v5187_v52  ;;  %v4729_v7 = vld [vmem:[%s5888_s24 + $0x2] ss:$0 sm:$0xff] }
 0xb85   : > { %v3939_v11 = vmul.f32 %v6293_v22, %v3931_v9 }
 0xb87   : > { %3959 = vst.msk [vmem:[#allocation2 + $0x8] sm:$0xff] %vm942_vm3, %v3939_v11 }
 0xb9e   : > { %4048 = vadd.xlane.f32.xlu0 %v4047_v12  ;;  %v4730_v12 = vld [vmem:[%s5893_s2 + $0x2] ss:$0 sm:$0xff] }
 0xba8   : > { %4051 = vadd.xlane.f32.xlu1 %v4050_v13  ;;  %v4731_v13 = vld [vmem:[%s5888_s24 + $0x3] ss:$0 sm:$0xff] }
 0xbe1   : > { %v3946_v15 = vpop.permute.xlu1 %3945 }
 0xbe2   : > { %3948 = vst.msk [vmem:[#allocation2] sm:$0xff] %vm2260_vm4, %v3946_v15 }
 0xbe5   : > { %v3951_v16 = vpop.permute.xlu1 %3950 }
 0xbe6   : > { %3953 = vst.msk [vmem:[#allocation2] sm:$0xff] %vm2266_vm5, %v3951_v16  ;;  %v4732_v16 = vld [vmem:[%s5893_s2 + $0x3] ss:$0 sm:$0xff] }
 0xbed   : > { %v3962_v17 = vpop.permute.xlu0 %3961 }
 0xbee   : > { %3964 = vst.msk [vmem:[#allocation2 + $0x8] sm:$0xff] %vm2260_vm4, %v3962_v17 }
 0xbf1   : > { %v3956_v19 = vpop.permute.xlu0 %3955 }
 0xbf2   : > { %v3967_v18 = vpop.permute.xlu1 %3966  ;;  %3958 = vst.msk [vmem:[#allocation2] sm:$0xff] %vm2272_vm6, %v3956_v19 }
 0xbf3   : > { %3969 = vst.msk [vmem:[#allocation2 + $0x8] sm:$0xff] %vm2266_vm5, %v3967_v18 }
 0xbf6   : > { %v3972_v20 = vpop.permute.xlu1 %3971 }
 0xbf7   : > { %3974 = vst.msk [vmem:[#allocation2 + $0x8] sm:$0xff] %vm2272_vm6, %v3972_v20 }
 0xbf9   : > { %v3975_v21 = vld [vmem:[#allocation2] sm:$0xff] }
 0xbfe   : > { %v3976_v22 = vld [vmem:[#allocation2 + $0x8] sm:$0xff] }
 0xbff   : > { %v3977_v25 = vpack.c.bf16 %v3976_v22, %v3975_v21 }
 0xc01   : > { %5053 = vmatmul.mubr.msk.bf16.vlgmr.msra.gmra.mxu0 %vm789_vm2, %v3977_v25 }
 0xc02   : > { %5072 = vmatprep.mubr.msk.bf16.mxu0 %vm5529_vm1, %v5528_v3 }
 0xc27   : > { %v4049_v5 = vpop.xlane.xlu0 %4048 }
 0xc28   : > { %v4053_v26 = vmul.f32 0.03125, %v4049_v5 }
 0xc2a   : > { %v4055_v10 = vsub.f32 %v6146_v23, %v4053_v26 }
 0xc2c   : > { %v4057_v27 = vmul.f32 %v4055_v10, %v4055_v10 }
 0xc2e   : > { %v4059_v14 = vsel %vm789_vm2, %v4057_v27, 0.0 }
 0xc2f   : > { %4060 = vadd.xlane.f32.xlu1 %v4059_v14 }
 0xc31   : > { %v4052_v28 = vpop.xlane.xlu1 %4051 }
 0xc32   : > { %v4054_v29 = vmul.f32 0.03125, %v4052_v28 }
 0xc34   : > { %v4056_v33 = vsub.f32 %v6148_v24, %v4054_v29 }
 0xc36   : > { %v4058_v39 = vmul.f32 %v4056_v33, %v4056_v33 }
 0xc38   : > { %v4062_v40 = vsel %vm789_vm2, %v4058_v39, 0.0 }
 0xcb8   : > { %v4061_v53 = vpop.xlane.xlu1 %4060 }
 0xcb9   : > { %v4065_v54 = vmul.f32 0.03125, %v4061_v53 }
 0xcbb   : > { %v4067_v56 = vadd.f32 1e-05, %v4065_v54 }
 0xcbd   : > { %5264 = vrsqrt.f32 %v4067_v56 }
 0xcc1   : > { %v4040_v30 = vpop.f32.mrf.mxu0 }
 0xcc2   : > { %v6330_v31 = vadd.f32 %v4725_v6, %v4040_v30 }
 0xcc3   : > { %v5054_v32 = vpop.f32.mrf.mxu0 }
 0xcc4   : > { %v4089_v34 = vsel %vm789_vm2, %v6330_v31, 0.0  ;;  %v5188_v32 = vld [vmem:[%s5902_s11 + $0x18] sm:$0xff]  }
 0xcc5   : > { %4090 = vadd.xlane.f32.xlu0 %v4089_v34  ;;  %v4043_v35 = vpop.f32.mrf.mxu0  ;;  %5065 = vmatpush3.bf16.msra.mxu0 %v5188_v32  ;;  %v5191_v34 = vld [vmem:[%s5902_s11] sm:$0xff]  }
 0xcc6   : > { %v6335_v36 = vadd.f32 %v4725_v6, %v4043_v35  ;;  %5066 = vmatprep.subr.bf16.mxu0 %v5528_v3  ;;  %v4733_v35 = vld [vmem:[%s742_s4] ss:$0 sm:$0xff]  ;;  %v4745_v32 = vld [vmem:[%s5888_s24 + $0x5] ss:$0 sm:$0xff]  ;;  %s5537_s4 = smov [#allocation12]  }
 0xcc7   : > { %v5055_v37 = vpop.f32.mrf.mxu0  ;;  %s4382_s12 = sshll.u32 %s5537_s4, 4  ;;  %s4383_s12 = int_to_ptr.vmem [resolvable:$true] %s4382_s12 }
 0xcc8   : > { %v4092_v38 = vsel %vm789_vm2, %v6335_v36, 0.0  ;;  %p5451_p10 = scmp.lt.s32.totalorder %s4383_s12, %s4383_s12 }
 0xcc9   : > { %4093 = vadd.xlane.f32.xlu0 %v4092_v38 }
 0xcca   : > { %v5265_v1 = vpop.eup %5264 }
 0xccb   : > { %v4071_v2 = vmul.f32 %v5265_v1, %v4055_v10 }
 0xccd   : > { %4063 = vadd.xlane.f32.xlu0 %v4062_v40  ;;  %v4078_v9 = vmul.f32 %v4729_v7, %v4071_v2 }
 0xccf   : > { %v4085_v17 = vadd.f32 %v4730_v12, %v4078_v9 }
 0xcd1   : > { %v4087_v25 = vadd.f32 %v4085_v17, %v6146_v23 }
 0xd4e   : > { %v4091_v41 = vpop.xlane.xlu0 %4090 }
 0xd4f   : > { %v4095_v42 = vmul.f32 0.03125, %v4091_v41 }
 0xd51   : > { %v4097_v43 = vsub.f32 %v6330_v31, %v4095_v42 }
 0xd52   : > { %v4094_v44 = vpop.xlane.xlu0 %4093 }
 0xd53   : > { %v4096_v45 = vmul.f32 0.03125, %v4094_v44  ;;  %v4099_v46 = vmul.f32 %v4097_v43, %v4097_v43 }
 0xd55   : > { %v4098_v47 = vsub.f32 %v6335_v36, %v4096_v45  ;;  %v4101_v48 = vsel %vm789_vm2, %v4099_v46, 0.0 }
 0xd56   : > { %4102 = vadd.xlane.f32.xlu1 %v4101_v48  ;;  %v4064_v55 = vpop.xlane.xlu0 %4063 }
 0xd57   : > { %v4100_v49 = vmul.f32 %v4098_v47, %v4098_v47  ;;  %v4066_v57 = vmul.f32 0.03125, %v4064_v55 }
 0xd59   : > { %v4104_v50 = vsel %vm789_vm2, %v4100_v49, 0.0  ;;  %v4068_v58 = vadd.f32 1e-05, %v4066_v57 }
 0xd5a   : > { %4105 = vadd.xlane.f32.xlu0 %v4104_v50 }
 0xd5b   : > { %5266 = vrsqrt.f32 %v4068_v58 }
 0xd68   : > { %v5267_v4 = vpop.eup %5266 }
 0xd69   : > { %v4072_v8 = vmul.f32 %v5267_v4, %v4056_v33  ;;  %v5190_v33 = vld [vmem:[%s5902_s11 + $0x8] sm:$0xff]  }
 0xd6b   : > { %v4079_v19 = vmul.f32 %v4729_v7, %v4072_v8 }
 0xd6d   : > { %v4086_v26 = vadd.f32 %v4730_v12, %v4079_v19 }
 0xd6f   : > { %v4088_v6 = vadd.f32 %v4086_v26, %v6148_v24  ;;  %v5189_v24 = vld [vmem:[%s5902_s11 + $0x10] sm:$0xff]  }
 0xd70   : > { %5067 = vmatpush3.bf16.msra.mxu0 %v5189_v24  ;;  %v4744_v24 = vld [vmem:[%s5893_s2 + $0x4] ss:$0 sm:$0xff] }
 0xd71   : > { %5068 = vmatprep.subr.bf16.mxu0 %v5528_v3 }
 0xd74   : > { %5069 = vmatpush3.bf16.msra.mxu0 %v5190_v33 }
 0xd75   : > { %5070 = vmatprep.subr.bf16.mxu0 %v5528_v3 }
 0xd78   : > { %5071 = vmatpush3.bf16.msra.mxu0 %v5191_v34  ;;  %v4746_v34 = vld [vmem:[%s5893_s2 + $0x5] ss:$0 sm:$0xff]  ;;  %s5444_s2 = scalar_lea.vmem %s4383_s12, 256 }
 0xd79   : > { %p5445_p4 = scmp.ne.s32.totalorder %s4383_s12, %s5444_s2  ;;  %p5452_p12 = scmp.lt.s32.totalorder %s5444_s2, %s5444_s2 }
 0xd7b   : > { %p5446_p9 = pnand %p5445_p4, %p5121_p11  ;;  %p5453_p5 = por %p5452_p12, %p5451_p10 }
 0xd7d   : > { %p5447_p8 = pneg %p5446_p9 }
 0xd7f   : > { %p5454_p1 = pnand %p5453_p5, %p5447_p8 }
 0xddf   : > { %v4103_v59 = vpop.xlane.xlu1 %4102 }
 0xde0   : > { %v4107_v60 = vmul.f32 0.03125, %v4103_v59 }
 0xde2   : > { %v4109_v61 = vadd.f32 1e-05, %v4107_v60 }
 0xde3   : > { %v4106_v62 = vpop.xlane.xlu0 %4105 }
 0xde4   : > { %5268 = vrsqrt.f32 %v4109_v61  ;;  %v4108_v63 = vmul.f32 0.03125, %v4106_v62 }
 0xde6   : > { %v4110_v0 = vadd.f32 1e-05, %v4108_v63 }
 0xde8   : > { %5270 = vrsqrt.f32 %v4110_v0 }
 0xdf1   : > { %v5269_v11 = vpop.eup %5268 }
 0xdf2   : > { %v4113_v15 = vmul.f32 %v5269_v11, %v4097_v43 }
 0xdf4   : > { %v4120_v18 = vmul.f32 %v4731_v13, %v4113_v15 }
 0xdf5   : > { %v5271_v20 = vpop.eup %5270 }
 0xdf6   : > { %v4114_v21 = vmul.f32 %v5271_v20, %v4098_v47  ;;  %v4127_v22 = vadd.f32 %v4732_v16, %v4120_v18  ;;  %v4737_v47 = vld [vmem:[%s750_s16] ss:$0 sm:$0xff] }
 0xdf8   : > { %v4129_v5 = vadd.f32 %v4127_v22, %v6330_v31  ;;  %v4121_v10 = vmul.f32 %v4731_v13, %v4114_v21 }
 0xdfa   : > { %v6353_v27 = vadd.f32 %v4129_v5, %v4087_v25  ;;  %v4128_v14 = vadd.f32 %v4732_v16, %v4121_v10 }
 0xdfc   : > { %v4288_v28 = vsel %vm789_vm2, %v6353_v27, 0.0  ;;  %v4130_v29 = vadd.f32 %v4128_v14, %v6335_v36 }
 0xdfd   : > { %4289 = vadd.xlane.f32.xlu1 %v4288_v28 }
 0xdfe   : > { %v6359_v30 = vadd.f32 %v4130_v29, %v4088_v6  ;;  %v4743_v6 = vld [vmem:[%s5888_s24 + $0x4] ss:$0 sm:$0xff] }
 0xe00   : > { %v4291_v23 = vsel %vm789_vm2, %v6359_v30, 0.0  ;;  %v4133_v31 = vpack.c.bf16 %v6359_v30, %v6353_v27 }
 0xe01   : > { %4292 = vadd.xlane.f32.xlu0 %v4291_v23 }
 0xe02   : > { %5061 = vmatmul.mubr.msk.bf16.vlgmr.msra.gmra.mxu1 %vm789_vm2, %v4133_v31 }
 0xe86   : > { %v4290_v3 = vpop.xlane.xlu1 %4289 }
 0xe87   : > { %v4294_v45 = vmul.f32 0.03125, %v4290_v3 }
 0xe89   : > { %v4296_v48 = vsub.f32 %v6353_v27, %v4294_v45 }
 0xe8a   : > { %v4293_v46 = vpop.xlane.xlu0 %4292 }
 0xe8b   : > { %v4295_v49 = vmul.f32 0.03125, %v4293_v46  ;;  %v4298_v55 = vmul.f32 %v4296_v48, %v4296_v48 }
 0xe8d   : > { %v4297_v53 = vsub.f32 %v6359_v30, %v4295_v49  ;;  %v4300_v59 = vsel %vm789_vm2, %v4298_v55, 0.0 }
 0xe8f   : > { %v4299_v61 = vmul.f32 %v4297_v53, %v4297_v53 }
 0xe91   : > { %v4303_v62 = vsel %vm789_vm2, %v4299_v61, 0.0 }
 0xec2   : > { %v4194_v36 = vpop.f32.mrf.mxu1 }
 0xec3   : > { %v4195_v38 = vadd.f32 %v4733_v35, %v4194_v36 }
 0xec4   : > { %v5062_v37 = vpop.f32.mrf.mxu1 }
 0xec5   : > { %v4201_v42 = vmax.f32 %v4195_v38, 0.0 }
 0xec6   : > { %v4197_v39 = vpop.f32.mrf.mxu1 }
 0xec7   : > { %v4198_v40 = vadd.f32 %v4733_v35, %v4197_v39 }
 0xec8   : > { %v5063_v41 = vpop.f32.mrf.mxu1 }
 0xec9   : > { %v4202_v43 = vmax.f32 %v4198_v40, 0.0 }
 0xecb   : > { %v4203_v44 = vpack.c.bf16 %v4202_v43, %v4201_v42 }
 0xecd   : > { %5073 = vmatmul.mubr.msk.bf16.vlgmr.msra.gmra.mxu0 %vm4243_vm7, %v4203_v44 }
 0xf8d   : > { %v4281_v50 = vpop.f32.mrf.mxu0 }
 0xf8e   : > { %v6384_v51 = vadd.f32 %v4737_v47, %v4281_v50 }
 0xf8f   : > { %v5074_v52 = vpop.f32.mrf.mxu0 }
 0xf90   : > { %v4330_v54 = vsel %vm789_vm2, %v6384_v51, 0.0 }
 0xf91   : > { %4331 = vadd.xlane.f32.xlu1 %v4330_v54  ;;  %v4284_v56 = vpop.f32.mrf.mxu0 }
 0xf92   : > { %v6389_v57 = vadd.f32 %v4737_v47, %v4284_v56 }
 0xf93   : > { %v5075_v58 = vpop.f32.mrf.mxu0 }
 0xf94   : > { %v4333_v60 = vsel %vm789_vm2, %v6389_v57, 0.0 }
 0xf95   : > { %4301 = vadd.xlane.f32.xlu1 %v4300_v59  ;;  %4334 = vadd.xlane.f32.xlu0 %v4333_v60 }
 0xf99   : > { %4304 = vadd.xlane.f32.xlu0 %v4303_v62 }
0x101a   : > { %v4332_v63 = vpop.xlane.xlu1 %4331 }
0x101b   : > { %v4336_v0 = vmul.f32 0.03125, %v4332_v63 }
0x101d   : > { %v4338_v1 = vsub.f32 %v6384_v51, %v4336_v0 }
0x101e   : > { %v4335_v2 = vpop.xlane.xlu0 %4334  ;;  %v4302_v13 = vpop.xlane.xlu1 %4301 }
0x101f   : > { %v4337_v4 = vmul.f32 0.03125, %v4335_v2  ;;  %v4340_v7 = vmul.f32 %v4338_v1, %v4338_v1  ;;  %v4306_v15 = vmul.f32 0.03125, %v4302_v13 }
0x1021   : > { %v4339_v8 = vsub.f32 %v6389_v57, %v4337_v4  ;;  %v4342_v9 = vsel %vm789_vm2, %v4340_v7, 0.0  ;;  %v4308_v17 = vadd.f32 1e-05, %v4306_v15 }
0x1022   : > { %4343 = vadd.xlane.f32.xlu1 %v4342_v9  ;;  %v4305_v16 = vpop.xlane.xlu0 %4304 }
0x1023   : > { %v4341_v11 = vmul.f32 %v4339_v8, %v4339_v8  ;;  %v4307_v18 = vmul.f32 0.03125, %v4305_v16  ;;  %5272 = vrsqrt.f32 %v4308_v17 }
0x1025   : > { %v4345_v12 = vsel %vm789_vm2, %v4341_v11, 0.0  ;;  %v4309_v19 = vadd.f32 1e-05, %v4307_v18 }
0x1026   : > { %4346 = vadd.xlane.f32.xlu0 %v4345_v12 }
0x1027   : > { %5274 = vrsqrt.f32 %v4309_v19 }
0x1030   : > { %v5273_v10 = vpop.eup %5272 }
0x1031   : > { %v4312_v14 = vmul.f32 %v5273_v10, %v4296_v48 }
0x1033   : > { %v4319_v29 = vmul.f32 %v4743_v6, %v4312_v14 }
0x1034   : > { %v5275_v28 = vpop.eup %5274 }
0x1035   : > { %v4313_v23 = vmul.f32 %v5275_v28, %v4297_v53  ;;  %v4326_v37 = vadd.f32 %v4744_v24, %v4319_v29 }
0x1037   : > { %v4320_v35 = vmul.f32 %v4743_v6, %v4313_v23  ;;  %v4328_v43 = vadd.f32 %v4326_v37, %v6353_v27 }
0x1039   : > { %v4327_v42 = vadd.f32 %v4744_v24, %v4320_v35 }
0x103b   : > { %v4329_v46 = vadd.f32 %v4327_v42, %v6359_v30 }
0x10ab   : > { %v4344_v20 = vpop.xlane.xlu1 %4343 }
0x10ac   : > { %v4348_v21 = vmul.f32 0.03125, %v4344_v20 }
0x10ae   : > { %v4350_v22 = vadd.f32 1e-05, %v4348_v21 }
0x10af   : > { %v4347_v25 = vpop.xlane.xlu0 %4346 }
0x10b0   : > { %5276 = vrsqrt.f32 %v4350_v22  ;;  %v4349_v5 = vmul.f32 0.03125, %v4347_v25 }
0x10b2   : > { %v4351_v26 = vadd.f32 1e-05, %v4349_v5 }
0x10b4   : > { %5278 = vrsqrt.f32 %v4351_v26 }
0x10bd   : > { %v5277_v31 = vpop.eup %5276 }
0x10be   : > { %v4354_v33 = vmul.f32 %v5277_v31, %v4338_v1 }
0x10c0   : > { %v4361_v36 = vmul.f32 %v4745_v32, %v4354_v33 }
0x10c1   : > { %v5279_v38 = vpop.eup %5278 }
0x10c2   : > { %v4355_v39 = vmul.f32 %v5279_v38, %v4339_v8  ;;  %v4368_v40 = vadd.f32 %v4746_v34, %v4361_v36 }
0x10c4   : > { %v4362_v41 = vmul.f32 %v4745_v32, %v4355_v39  ;;  %v4370_v44 = vadd.f32 %v4368_v40, %v6384_v51 }
0x10c6   : > { %v4369_v3 = vadd.f32 %v4746_v34, %v4362_v41  ;;  %v4372_v45 = vadd.f32 %v4370_v44, %v4328_v43 }
0x10c8   : > { %v4371_v47 = vadd.f32 %v4369_v3, %v6389_v57  ;;  %4374 = vst.msk [vmem:[#allocation12] sm:$0xff] %vm789_vm2, %v4372_v45 }
0x10ca   : > { %v4373_v48 = vadd.f32 %v4371_v47, %v4329_v46 }
0x10cc   : > { %4375 = vst.msk [vmem:[#allocation12 + $0x8] sm:$0xff] %vm789_vm2, %v4373_v48 }
0x10cd   : > { %5457 = shalt.err (!%p5454_p1)
}
0x10ce   : > { %s5538_s20 = smov 128   ;;  %s6515_s0 = sld [smem:[#allocation34_spill]] }
0x10d4   : > { %5093 = dma.vmem_to_hbm [thread:$0]  (%p5121_p11), %s4383_s12, 256, %s6515_s0, [#allocation5], %s5538_s20, %s5538_s20, %s5534_s10  }
0x10d5   : > { %5497 = dma.done.wait (%p5121_p11), [#allocation5], 256  }
0x10d6   : > { %5499 = vsyncadd (%p5121_p11), [#allocation5], 4294967040 }
0x10d7 PF: > { %s6516_s16 = sld [smem:[#allocation18_spill]]  ;;  %s6519_s29 = smov %s5506_s30 }
0x10d8   : > { %s6517_s23 = sld [smem:[#allocation17_spill]] }
0x10d9   : > { %s6518_s15 = sld [smem:[#allocation19_spill]] }
0x10dd   : > { %p24_p13 = scmp.ge.s32.totalorder %s6516_s16, 4  }
0x10de   : > { %s6520_s30 = smov %s6517_s23 }
0x10df   :  { %26 = sbr.rel (!%p24_p13) target bundleno = 20 (0x14), region = 187 }
0x10e4   :  { %4398 = vsyncpa [#allocation4], 1 }
0x10e5   :  { %4400 = vsyncpa [#allocation4 + $0x1], 1 }
0x10e6   :  { %4401 = vsyncpa [#allocation7], 1 }
0x10e7   :  { %4402 = vsyncpa [#allocation5], 1 }
0x10e8   :  { %4404 = vsyncpa [#allocation5 + $0x1], 1 }

</bundles_post_ra>
